<compile_context>
chip_gen: v5e
topology: v5e:2x2
jax: 0.10.0
libtpu: 0.0.40
codegen_flags: <defaults>
</compile_context>

<pallas_src>
import jax
import jax.numpy as jnp
from jax import lax
from jax.experimental import pallas as pl
from jax.experimental.pallas import tpu as pltpu

SEQ = 8
BATCH = 8
IN_FEATURES = 16
HIDDEN = 32
NUM_LAYERS = 2
NEG_SLOPE = 0.01  # PyTorch nn.LeakyReLU default

# pl.multiple_of sublane-alignment hint below relies on BATCH being a
# multiple of the 8-row sublane tile.
assert BATCH % 8 == 0, "BATCH must be a multiple of 8 for the alignment hint"


def _leaky_relu(x):
    return jnp.where(x > 0, x, NEG_SLOPE * x)


def _gru_cell_from_gates(gi, gh, h):
    """PyTorch nn.GRU cell from precomputed gate projections.

    gi = x @ W_ih^T + b_ih,  gh = h @ W_hh^T + b_hh, gate order (r, z, n).
    Because b_hn lives inside gh, `r * gh_n` reproduces PyTorch's
    n = tanh(i_n + b_in + r * (h_n + b_hn)).
    """
    H = HIDDEN
    r = jax.nn.sigmoid(gi[:, 0 * H:1 * H] + gh[:, 0 * H:1 * H])
    z = jax.nn.sigmoid(gi[:, 1 * H:2 * H] + gh[:, 1 * H:2 * H])
    n = jnp.tanh(gi[:, 2 * H:3 * H] + r * gh[:, 2 * H:3 * H])
    return (1.0 - z) * n + z * h


def value_gru_kernel(x_ref, ws_ref, bs_ref,
                     wih0_ref, bih0_ref,
                     wih1_ref, bih1_ref,
                     whh_blk_ref, bhh_blk_ref,
                     wv1_ref, bv1_ref, wv2_ref, bv2_ref,
                     val_ref, hid_ref,
                     gi0_scratch, gru_scratch):
    H = HIDDEN

    # shared_net: Linear + LeakyReLU on the flattened (S*B, F) slab.
    shared = _leaky_relu(
        jnp.dot(x_ref[...], ws_ref[...], preferred_element_type=jnp.float32)
        + bs_ref[...])

    # Hoisted layer-0 input projection (+ bias) for all timesteps at once;
    # written to VMEM scratch so the loop does cheap aligned sublane loads.
    gi0_scratch[...] = (
        jnp.dot(shared, wih0_ref[...], preferred_element_type=jnp.float32)
        + bih0_ref[...])

    # Hoisted weights / pre-broadcast biases (outside the serial recurrence).
    wih1 = wih1_ref[...]                                             # (H, 3H)
    whh_blk = whh_blk_ref[...]                                       # (2H, 6H)
    bhh_blk = jnp.broadcast_to(bhh_blk_ref[...], (BATCH, 6 * H))     # (B, 6H)
    bih1 = jnp.broadcast_to(bih1_ref[...], (BATCH, 3 * H))           # (B, 3H)

    h_init = jnp.zeros((BATCH, HIDDEN), jnp.float32)

    def step(t, carry):
        h1, h2 = carry
        row = pl.multiple_of(t * BATCH, BATCH)
        # Layer-0 input gates: aligned sublane load from scratch.
        gi0 = gi0_scratch[pl.ds(row, BATCH), :]                      # (B, 3H)
        # Fused hidden-state projection for both layers: one MXU op on the
        # block-diagonal (2H, 6H) weight.
        h_cat = jnp.concatenate([h1, h2], axis=1)                    # (B, 2H)
        gh_all = (jnp.dot(h_cat, whh_blk,
                          preferred_element_type=jnp.float32) + bhh_blk)
        gh0 = gh_all[:, :3 * H]
        gh1 = gh_all[:, 3 * H:]
        # Layer 0 cell.
        h1_new = _gru_cell_from_gates(gi0, gh0, h1)
        # Layer 1 cell (its input projection depends on h1_new -> serial).
        gi1 = (jnp.dot(h1_new, wih1,
                       preferred_element_type=jnp.float32) + bih1)
        h2_new = _gru_cell_from_gates(gi1, gh1, h2)
        gru_scratch[pl.ds(row, BATCH), :] = h2_new
        return h1_new, h2_new

    h1, h2 = lax.fori_loop(0, SEQ, step, (h_init, h_init), unroll=True)

    # value_net: Linear + LeakyReLU + Linear(hidden, 1) on all timesteps.
    gru_all = gru_scratch[...]
    v_hidden = _leaky_relu(
        jnp.dot(gru_all, wv1_ref[...], preferred_element_type=jnp.float32)
        + bv1_ref[...])
    # N=1 output matmul replaced with VPU multiply + lane reduction.
    value = jnp.sum(v_hidden * wv2_ref[...], axis=-1, keepdims=True) + bv2_ref[...]

    val_ref[...] = value
    hid_ref[:BATCH, :] = h1
    hid_ref[BATCH:, :] = h2


def _prepare_kernel_params(params):
    """Build the fused / pre-transposed parameter set consumed by the kernel."""
    (w_shared, b_shared, wih0, whh0, bih0, bhh0,
     wih1, whh1, bih1, bhh1, wv1, bv1, wv2, bv2) = params
    H = HIDDEN
    # Block-diagonal hidden-state weight: [h1, h2] @ W_blk = [h1@whh0, h2@whh1].
    whh_blk = jnp.zeros((2 * H, 6 * H), jnp.float32)
    whh_blk = whh_blk.at[:H, :3 * H].set(whh0)
    whh_blk = whh_blk.at[H:, 3 * H:].set(whh1)
    bhh_blk = jnp.concatenate([bhh0, bhh1], axis=1)                  # (1, 6H)
    wv2_row = wv2.T                                                  # (1, H)
    return (w_shared, b_shared, wih0, bih0, wih1, bih1,
            whh_blk, bhh_blk, wv1, bv1, wv2_row, bv2)


def value_network_gru_forward(x, params):
    """x: (seq, batch, in_features) f32 -> (value (S,B,1), hidden (L,B,H))."""
    S, B, F = x.shape
    assert (S, B, F) == (SEQ, BATCH, IN_FEATURES)
    x2d = x.reshape(S * B, F)
    kparams = _prepare_kernel_params(params)
    vmem = pl.BlockSpec(memory_space=pltpu.MemorySpace.VMEM)
    n_in = 1 + len(kparams)
    val2d, hid2d = pl.pallas_call(
        value_gru_kernel,
        out_shape=(jax.ShapeDtypeStruct((S * B, 1), jnp.float32),
                   jax.ShapeDtypeStruct((NUM_LAYERS * B, HIDDEN), jnp.float32)),
        in_specs=[vmem] * n_in,
        out_specs=(vmem, vmem),
        scratch_shapes=[pltpu.VMEM((S * B, 3 * HIDDEN), jnp.float32),  # gi0
                        pltpu.VMEM((S * B, HIDDEN), jnp.float32)],     # gru out
    )(x2d, *kparams)
    return val2d.reshape(S, B, 1), hid2d.reshape(NUM_LAYERS, B, HIDDEN)


def init_params(key):
    """Xavier-uniform weights (as init_weights()); small nonzero biases so the
    correctness check also exercises the GRU bias placement.

    All weights are stored pre-transposed (fan_in, fan_out) for x @ W layout.
    """
    def xavier(k, shape):
        fan_in, fan_out = shape
        bound = (6.0 / (fan_in + fan_out)) ** 0.5
        return jax.random.uniform(k, shape, jnp.float32, -bound, bound)

    def small(k, shape):
        return jax.random.uniform(k, shape, jnp.float32, -0.1, 0.1)

    ks = jax.random.split(key, 16)
    w_shared = xavier(ks[0], (IN_FEATURES, HIDDEN))
    b_shared = small(ks[7], (1, HIDDEN))
    wih0 = xavier(ks[1], (HIDDEN, 3 * HIDDEN))
    whh0 = xavier(ks[2], (HIDDEN, 3 * HIDDEN))
    bih0 = small(ks[8], (1, 3 * HIDDEN))
    bhh0 = small(ks[9], (1, 3 * HIDDEN))
    wih1 = xavier(ks[3], (HIDDEN, 3 * HIDDEN))
    whh1 = xavier(ks[4], (HIDDEN, 3 * HIDDEN))
    bih1 = small(ks[10], (1, 3 * HIDDEN))
    bhh1 = small(ks[11], (1, 3 * HIDDEN))
    wv1 = xavier(ks[5], (HIDDEN, HIDDEN))
    bv1 = small(ks[12], (1, HIDDEN))
    wv2 = xavier(ks[6], (HIDDEN, 1))
    bv2 = small(ks[13], (1, 1))
    return (w_shared, b_shared, wih0, whh0, bih0, bhh0,
            wih1, whh1, bih1, bhh1, wv1, bv1, wv2, bv2)


def _ref_gru_cell(x, h, w_ih, w_hh, b_ih, b_hh):
    """Standalone reference GRU cell (PyTorch semantics, gate order r, z, n)."""
    H = HIDDEN
    gi = x @ w_ih + b_ih
    gh = h @ w_hh + b_hh
    r = jax.nn.sigmoid(gi[:, :H] + gh[:, :H])
    z = jax.nn.sigmoid(gi[:, H:2 * H] + gh[:, H:2 * H])
    n = jnp.tanh(gi[:, 2 * H:] + r * gh[:, 2 * H:])
    return (1.0 - z) * n + z * h


def reference_forward(x, params):
    """Pure-JAX reference identical to the PyTorch forward (dones=None path)."""
    (w_shared, b_shared, wih0, whh0, bih0, bhh0,
     wih1, whh1, bih1, bhh1, wv1, bv1, wv2, bv2) = params
    S, B, _ = x.shape
    shared = _leaky_relu(jnp.einsum('sbf,fh->sbh', x, w_shared) + b_shared)
    h1 = jnp.zeros((B, HIDDEN), jnp.float32)
    h2 = jnp.zeros((B, HIDDEN), jnp.float32)
    outs = []
    for t in range(S):
        h1 = _ref_gru_cell(shared[t], h1, wih0, whh0, bih0, bhh0)
        h2 = _ref_gru_cell(h1, h2, wih1, whh1, bih1, bhh1)
        outs.append(h2)
    gru_out = jnp.stack(outs)                                  # (S, B, H)
    v = _leaky_relu(jnp.einsum('sbh,hk->sbk', gru_out, wv1) + bv1)
    v = jnp.einsum('sbh,hk->sbk', v, wv2) + bv2                # (S, B, 1)
    hidden = jnp.stack([h1, h2])                               # (L, B, H)
    return v, hidden


if __name__ == "__main__":
    key = jax.random.PRNGKey(0)
    x = jax.random.normal(key, (SEQ, BATCH, IN_FEATURES), jnp.float32)
    params = init_params(jax.random.PRNGKey(42))

    value, hidden = value_network_gru_forward(x, params)
    jax.block_until_ready((value, hidden))

    v_ref, h_ref = reference_forward(x, params)
    assert value.shape == (SEQ, BATCH, 1)
    assert hidden.shape == (NUM_LAYERS, BATCH, HIDDEN)
    assert jnp.allclose(value, v_ref, atol=1e-5, rtol=1e-5)
    assert jnp.allclose(hidden, h_ref, atol=1e-5, rtol=1e-5)
    print("KERNEL_OK")
</pallas_src>

<mosaic_0001>
module attributes {stable_mosaic.version = 11 : i64} {
  func.func @value_gru_kernel(%arg0: memref<64x16xf32, #tpu.memory_space<vmem>>, %arg1: memref<16x32xf32, #tpu.memory_space<vmem>>, %arg2: memref<1x32xf32, #tpu.memory_space<vmem>>, %arg3: memref<32x96xf32, #tpu.memory_space<vmem>>, %arg4: memref<1x96xf32, #tpu.memory_space<vmem>>, %arg5: memref<32x96xf32, #tpu.memory_space<vmem>>, %arg6: memref<1x96xf32, #tpu.memory_space<vmem>>, %arg7: memref<64x192xf32, #tpu.memory_space<vmem>>, %arg8: memref<1x192xf32, #tpu.memory_space<vmem>>, %arg9: memref<32x32xf32, #tpu.memory_space<vmem>>, %arg10: memref<1x32xf32, #tpu.memory_space<vmem>>, %arg11: memref<1x32xf32, #tpu.memory_space<vmem>>, %arg12: memref<1x1xf32, #tpu.memory_space<vmem>>, %arg13: memref<64x1xf32, #tpu.memory_space<vmem>>, %arg14: memref<16x32xf32, #tpu.memory_space<vmem>>, %arg15: memref<64x96xf32, #tpu.memory_space<vmem>>, %arg16: memref<64x32xf32, #tpu.memory_space<vmem>>) attributes {dimension_semantics = [], scalar_prefetch = 0 : i64, scratch_operands = 2 : i64, tpu.core_type = #tpu.core_type<tc>} {
    %c0 = arith.constant 0 : index
    %c0_0 = arith.constant 0 : index
    %0 = vector.load %arg0[%c0, %c0_0] : memref<64x16xf32, #tpu.memory_space<vmem>>, vector<64x16xf32>
    %c0_1 = arith.constant 0 : index
    %c0_2 = arith.constant 0 : index
    %1 = vector.load %arg1[%c0_1, %c0_2] : memref<16x32xf32, #tpu.memory_space<vmem>>, vector<16x32xf32>
    %cst = arith.constant dense<0.000000e+00> : vector<64x32xf32>
    %2 = tpu.matmul %0, %1, %cst {dimension_numbers = #tpu.dot_dimension_numbers<[1], [0], [0], [1], [0, 0, 1, 1], [], []>} : vector<64x16xf32>, vector<16x32xf32>, vector<64x32xf32> -> vector<64x32xf32>
    %c0_3 = arith.constant 0 : index
    %c0_4 = arith.constant 0 : index
    %3 = vector.load %arg2[%c0_3, %c0_4] : memref<1x32xf32, #tpu.memory_space<vmem>>, vector<1x32xf32>
    %4 = vector.broadcast %3 : vector<1x32xf32> to vector<64x32xf32>
    %5 = arith.addf %2, %4 : vector<64x32xf32>
    %cst_5 = arith.constant 0.000000e+00 : f32
    %6 = vector.broadcast %cst_5 : f32 to vector<64x32xf32>
    %7 = arith.cmpf ogt, %5, %6 : vector<64x32xf32>
    %cst_6 = arith.constant 0.00999999977 : f32
    %8 = vector.broadcast %cst_6 : f32 to vector<64x32xf32>
    %9 = arith.mulf %8, %5 : vector<64x32xf32>
    %10 = arith.select %7, %5, %9 : vector<64x32xi1>, vector<64x32xf32>
    %c0_7 = arith.constant 0 : index
    %c0_8 = arith.constant 0 : index
    %11 = vector.load %arg3[%c0_7, %c0_8] : memref<32x96xf32, #tpu.memory_space<vmem>>, vector<32x96xf32>
    %cst_9 = arith.constant dense<0.000000e+00> : vector<64x96xf32>
    %12 = tpu.matmul %10, %11, %cst_9 {dimension_numbers = #tpu.dot_dimension_numbers<[1], [0], [0], [1], [0, 0, 1, 1], [], []>} : vector<64x32xf32>, vector<32x96xf32>, vector<64x96xf32> -> vector<64x96xf32>
    %c0_10 = arith.constant 0 : index
    %c0_11 = arith.constant 0 : index
    %13 = vector.load %arg4[%c0_10, %c0_11] : memref<1x96xf32, #tpu.memory_space<vmem>>, vector<1x96xf32>
    %14 = vector.broadcast %13 : vector<1x96xf32> to vector<64x96xf32>
    %15 = arith.addf %12, %14 : vector<64x96xf32>
    %c0_12 = arith.constant 0 : index
    %c0_13 = arith.constant 0 : index
    %16 = vector.load %arg15[%c0_12, %c0_13] : memref<64x96xf32, #tpu.memory_space<vmem>>, vector<64x96xf32>
    tpu.vector_store %arg15[%c0_12, %c0_13], %15 {strides = array<i32>} : memref<64x96xf32, #tpu.memory_space<vmem>>, vector<64x96xf32>,
    %c0_14 = arith.constant 0 : index
    %c0_15 = arith.constant 0 : index
    %17 = vector.load %arg5[%c0_14, %c0_15] : memref<32x96xf32, #tpu.memory_space<vmem>>, vector<32x96xf32>
    %c0_16 = arith.constant 0 : index
    %c0_17 = arith.constant 0 : index
    %18 = vector.load %arg7[%c0_16, %c0_17] : memref<64x192xf32, #tpu.memory_space<vmem>>, vector<64x192xf32>
    %c0_18 = arith.constant 0 : index
    %c0_19 = arith.constant 0 : index
    %19 = vector.load %arg8[%c0_18, %c0_19] : memref<1x192xf32, #tpu.memory_space<vmem>>, vector<1x192xf32>
    %20 = vector.shape_cast %19 : vector<1x192xf32> to vector<1x192xf32>
    %21 = vector.broadcast %20 : vector<1x192xf32> to vector<8x192xf32>
    %c0_20 = arith.constant 0 : index
    %c0_21 = arith.constant 0 : index
    %22 = vector.load %arg6[%c0_20, %c0_21] : memref<1x96xf32, #tpu.memory_space<vmem>>, vector<1x96xf32>
    %23 = vector.shape_cast %22 : vector<1x96xf32> to vector<1x96xf32>
    %24 = vector.broadcast %23 : vector<1x96xf32> to vector<8x96xf32>
    %cst_22 = arith.constant 0.000000e+00 : f32
    %25 = vector.broadcast %cst_22 : f32 to vector<8x32xf32>
    %c0_i32 = arith.constant 0 : i32
    %c8_i32 = arith.constant 8 : i32
    %26 = arith.muli %c0_i32, %c8_i32 : i32
    %27 = tpu.assume_multiple %26, 8 : i32
    %28 = arith.index_cast %27 : i32 to index
    %c0_23 = arith.constant 0 : index
    %29 = vector.load %arg15[%28, %c0_23] : memref<64x96xf32, #tpu.memory_space<vmem>>, vector<8x96xf32>
    %30 = tpu.concatenate %25, %25 in 1 : vector<8x32xf32>, vector<8x32xf32> -> vector<8x64xf32>
    %cst_24 = arith.constant dense<0.000000e+00> : vector<8x192xf32>
    %31 = tpu.matmul %30, %18, %cst_24 {dimension_numbers = #tpu.dot_dimension_numbers<[1], [0], [0], [1], [0, 0, 1, 1], [], []>} : vector<8x64xf32>, vector<64x192xf32>, vector<8x192xf32> -> vector<8x192xf32>
    %32 = arith.addf %31, %21 : vector<8x192xf32>
    %33 = vector.extract_strided_slice %32 {offsets = [0, 0], sizes = [8, 96], strides = [1, 1]} : vector<8x192xf32> to vector<8x96xf32>
    %34 = vector.extract_strided_slice %32 {offsets = [0, 96], sizes = [8, 96], strides = [1, 1]} : vector<8x192xf32> to vector<8x96xf32>
    %35 = vector.extract_strided_slice %29 {offsets = [0, 0], sizes = [8, 32], strides = [1, 1]} : vector<8x96xf32> to vector<8x32xf32>
    %36 = vector.extract_strided_slice %33 {offsets = [0, 0], sizes = [8, 32], strides = [1, 1]} : vector<8x96xf32> to vector<8x32xf32>
    %37 = arith.addf %35, %36 : vector<8x32xf32>
    %38 = arith.negf %37 : vector<8x32xf32>
    %39 = math.exp %38 : vector<8x32xf32>
    %cst_25 = arith.constant 1.000000e+00 : f32
    %40 = vector.broadcast %cst_25 : f32 to vector<8x32xf32>
    %41 = arith.addf %40, %39 : vector<8x32xf32>
    %42 = arith.divf %40, %41 : vector<8x32xf32>
    %43 = vector.extract_strided_slice %29 {offsets = [0, 32], sizes = [8, 32], strides = [1, 1]} : vector<8x96xf32> to vector<8x32xf32>
    %44 = vector.extract_strided_slice %33 {offsets = [0, 32], sizes = [8, 32], strides = [1, 1]} : vector<8x96xf32> to vector<8x32xf32>
    %45 = arith.addf %43, %44 : vector<8x32xf32>
    %46 = arith.negf %45 : vector<8x32xf32>
    %47 = math.exp %46 : vector<8x32xf32>
    %cst_26 = arith.constant 1.000000e+00 : f32
    %48 = vector.broadcast %cst_26 : f32 to vector<8x32xf32>
    %49 = arith.addf %48, %47 : vector<8x32xf32>
    %50 = arith.divf %48, %49 : vector<8x32xf32>
    %51 = vector.extract_strided_slice %29 {offsets = [0, 64], sizes = [8, 32], strides = [1, 1]} : vector<8x96xf32> to vector<8x32xf32>
    %52 = vector.extract_strided_slice %33 {offsets = [0, 64], sizes = [8, 32], strides = [1, 1]} : vector<8x96xf32> to vector<8x32xf32>
    %53 = arith.mulf %42, %52 : vector<8x32xf32>
    %54 = arith.addf %51, %53 : vector<8x32xf32>
    %55 = math.tanh %54 : vector<8x32xf32>
    %cst_27 = arith.constant 1.000000e+00 : f32
    %56 = vector.broadcast %cst_27 : f32 to vector<8x32xf32>
    %57 = arith.subf %56, %50 : vector<8x32xf32>
    %58 = arith.mulf %57, %55 : vector<8x32xf32>
    %59 = arith.mulf %50, %25 : vector<8x32xf32>
    %60 = arith.addf %58, %59 : vector<8x32xf32>
    %cst_28 = arith.constant dense<0.000000e+00> : vector<8x96xf32>
    %61 = tpu.matmul %60, %17, %cst_28 {dimension_numbers = #tpu.dot_dimension_numbers<[1], [0], [0], [1], [0, 0, 1, 1], [], []>} : vector<8x32xf32>, vector<32x96xf32>, vector<8x96xf32> -> vector<8x96xf32>
    %62 = arith.addf %61, %24 : vector<8x96xf32>
    %63 = vector.extract_strided_slice %62 {offsets = [0, 0], sizes = [8, 32], strides = [1, 1]} : vector<8x96xf32> to vector<8x32xf32>
    %64 = vector.extract_strided_slice %34 {offsets = [0, 0], sizes = [8, 32], strides = [1, 1]} : vector<8x96xf32> to vector<8x32xf32>
    %65 = arith.addf %63, %64 : vector<8x32xf32>
    %66 = arith.negf %65 : vector<8x32xf32>
    %67 = math.exp %66 : vector<8x32xf32>
    %cst_29 = arith.constant 1.000000e+00 : f32
    %68 = vector.broadcast %cst_29 : f32 to vector<8x32xf32>
    %69 = arith.addf %68, %67 : vector<8x32xf32>
    %70 = arith.divf %68, %69 : vector<8x32xf32>
    %71 = vector.extract_strided_slice %62 {offsets = [0, 32], sizes = [8, 32], strides = [1, 1]} : vector<8x96xf32> to vector<8x32xf32>
    %72 = vector.extract_strided_slice %34 {offsets = [0, 32], sizes = [8, 32], strides = [1, 1]} : vector<8x96xf32> to vector<8x32xf32>
    %73 = arith.addf %71, %72 : vector<8x32xf32>
    %74 = arith.negf %73 : vector<8x32xf32>
    %75 = math.exp %74 : vector<8x32xf32>
    %cst_30 = arith.constant 1.000000e+00 : f32
    %76 = vector.broadcast %cst_30 : f32 to vector<8x32xf32>
    %77 = arith.addf %76, %75 : vector<8x32xf32>
    %78 = arith.divf %76, %77 : vector<8x32xf32>
    %79 = vector.extract_strided_slice %62 {offsets = [0, 64], sizes = [8, 32], strides = [1, 1]} : vector<8x96xf32> to vector<8x32xf32>
    %80 = vector.extract_strided_slice %34 {offsets = [0, 64], sizes = [8, 32], strides = [1, 1]} : vector<8x96xf32> to vector<8x32xf32>
    %81 = arith.mulf %70, %80 : vector<8x32xf32>
    %82 = arith.addf %79, %81 : vector<8x32xf32>
    %83 = math.tanh %82 : vector<8x32xf32>
    %cst_31 = arith.constant 1.000000e+00 : f32
    %84 = vector.broadcast %cst_31 : f32 to vector<8x32xf32>
    %85 = arith.subf %84, %78 : vector<8x32xf32>
    %86 = arith.mulf %85, %83 : vector<8x32xf32>
    %87 = arith.mulf %78, %25 : vector<8x32xf32>
    %88 = arith.addf %86, %87 : vector<8x32xf32>
    %89 = arith.index_cast %27 : i32 to index
    %c0_32 = arith.constant 0 : index
    %90 = vector.load %arg16[%89, %c0_32] : memref<64x32xf32, #tpu.memory_space<vmem>>, vector<8x32xf32>
    tpu.vector_store %arg16[%89, %c0_32], %88 {strides = array<i32>} : memref<64x32xf32, #tpu.memory_space<vmem>>, vector<8x32xf32>,
    %c1_i32 = arith.constant 1 : i32
    %c8_i32_33 = arith.constant 8 : i32
    %91 = arith.muli %c1_i32, %c8_i32_33 : i32
    %92 = tpu.assume_multiple %91, 8 : i32
    %93 = arith.index_cast %92 : i32 to index
    %c0_34 = arith.constant 0 : index
    %94 = vector.load %arg15[%93, %c0_34] : memref<64x96xf32, #tpu.memory_space<vmem>>, vector<8x96xf32>
    %95 = tpu.concatenate %60, %88 in 1 : vector<8x32xf32>, vector<8x32xf32> -> vector<8x64xf32>
    %cst_35 = arith.constant dense<0.000000e+00> : vector<8x192xf32>
    %96 = tpu.matmul %95, %18, %cst_35 {dimension_numbers = #tpu.dot_dimension_numbers<[1], [0], [0], [1], [0, 0, 1, 1], [], []>} : vector<8x64xf32>, vector<64x192xf32>, vector<8x192xf32> -> vector<8x192xf32>
    %97 = arith.addf %96, %21 : vector<8x192xf32>
    %98 = vector.extract_strided_slice %97 {offsets = [0, 0], sizes = [8, 96], strides = [1, 1]} : vector<8x192xf32> to vector<8x96xf32>
    %99 = vector.extract_strided_slice %97 {offsets = [0, 96], sizes = [8, 96], strides = [1, 1]} : vector<8x192xf32> to vector<8x96xf32>
    %100 = vector.extract_strided_slice %94 {offsets = [0, 0], sizes = [8, 32], strides = [1, 1]} : vector<8x96xf32> to vector<8x32xf32>
    %101 = vector.extract_strided_slice %98 {offsets = [0, 0], sizes = [8, 32], strides = [1, 1]} : vector<8x96xf32> to vector<8x32xf32>
    %102 = arith.addf %100, %101 : vector<8x32xf32>
    %103 = arith.negf %102 : vector<8x32xf32>
    %104 = math.exp %103 : vector<8x32xf32>
    %cst_36 = arith.constant 1.000000e+00 : f32
    %105 = vector.broadcast %cst_36 : f32 to vector<8x32xf32>
    %106 = arith.addf %105, %104 : vector<8x32xf32>
    %107 = arith.divf %105, %106 : vector<8x32xf32>
    %108 = vector.extract_strided_slice %94 {offsets = [0, 32], sizes = [8, 32], strides = [1, 1]} : vector<8x96xf32> to vector<8x32xf32>
    %109 = vector.extract_strided_slice %98 {offsets = [0, 32], sizes = [8, 32], strides = [1, 1]} : vector<8x96xf32> to vector<8x32xf32>
    %110 = arith.addf %108, %109 : vector<8x32xf32>
    %111 = arith.negf %110 : vector<8x32xf32>
    %112 = math.exp %111 : vector<8x32xf32>
    %cst_37 = arith.constant 1.000000e+00 : f32
    %113 = vector.broadcast %cst_37 : f32 to vector<8x32xf32>
    %114 = arith.addf %113, %112 : vector<8x32xf32>
    %115 = arith.divf %113, %114 : vector<8x32xf32>
    %116 = vector.extract_strided_slice %94 {offsets = [0, 64], sizes = [8, 32], strides = [1, 1]} : vector<8x96xf32> to vector<8x32xf32>
    %117 = vector.extract_strided_slice %98 {offsets = [0, 64], sizes = [8, 32], strides = [1, 1]} : vector<8x96xf32> to vector<8x32xf32>
    %118 = arith.mulf %107, %117 : vector<8x32xf32>
    %119 = arith.addf %116, %118 : vector<8x32xf32>
    %120 = math.tanh %119 : vector<8x32xf32>
    %cst_38 = arith.constant 1.000000e+00 : f32
    %121 = vector.broadcast %cst_38 : f32 to vector<8x32xf32>
    %122 = arith.subf %121, %115 : vector<8x32xf32>
    %123 = arith.mulf %122, %120 : vector<8x32xf32>
    %124 = arith.mulf %115, %60 : vector<8x32xf32>
    %125 = arith.addf %123, %124 : vector<8x32xf32>
    %cst_39 = arith.constant dense<0.000000e+00> : vector<8x96xf32>
    %126 = tpu.matmul %125, %17, %cst_39 {dimension_numbers = #tpu.dot_dimension_numbers<[1], [0], [0], [1], [0, 0, 1, 1], [], []>} : vector<8x32xf32>, vector<32x96xf32>, vector<8x96xf32> -> vector<8x96xf32>
    %127 = arith.addf %126, %24 : vector<8x96xf32>
    %128 = vector.extract_strided_slice %127 {offsets = [0, 0], sizes = [8, 32], strides = [1, 1]} : vector<8x96xf32> to vector<8x32xf32>
    %129 = vector.extract_strided_slice %99 {offsets = [0, 0], sizes = [8, 32], strides = [1, 1]} : vector<8x96xf32> to vector<8x32xf32>
    %130 = arith.addf %128, %129 : vector<8x32xf32>
    %131 = arith.negf %130 : vector<8x32xf32>
    %132 = math.exp %131 : vector<8x32xf32>
    %cst_40 = arith.constant 1.000000e+00 : f32
    %133 = vector.broadcast %cst_40 : f32 to vector<8x32xf32>
    %134 = arith.addf %133, %132 : vector<8x32xf32>
    %135 = arith.divf %133, %134 : vector<8x32xf32>
    %136 = vector.extract_strided_slice %127 {offsets = [0, 32], sizes = [8, 32], strides = [1, 1]} : vector<8x96xf32> to vector<8x32xf32>
    %137 = vector.extract_strided_slice %99 {offsets = [0, 32], sizes = [8, 32], strides = [1, 1]} : vector<8x96xf32> to vector<8x32xf32>
    %138 = arith.addf %136, %137 : vector<8x32xf32>
    %139 = arith.negf %138 : vector<8x32xf32>
    %140 = math.exp %139 : vector<8x32xf32>
    %cst_41 = arith.constant 1.000000e+00 : f32
    %141 = vector.broadcast %cst_41 : f32 to vector<8x32xf32>
    %142 = arith.addf %141, %140 : vector<8x32xf32>
    %143 = arith.divf %141, %142 : vector<8x32xf32>
    %144 = vector.extract_strided_slice %127 {offsets = [0, 64], sizes = [8, 32], strides = [1, 1]} : vector<8x96xf32> to vector<8x32xf32>
    %145 = vector.extract_strided_slice %99 {offsets = [0, 64], sizes = [8, 32], strides = [1, 1]} : vector<8x96xf32> to vector<8x32xf32>
    %146 = arith.mulf %135, %145 : vector<8x32xf32>
    %147 = arith.addf %144, %146 : vector<8x32xf32>
    %148 = math.tanh %147 : vector<8x32xf32>
    %cst_42 = arith.constant 1.000000e+00 : f32
    %149 = vector.broadcast %cst_42 : f32 to vector<8x32xf32>
    %150 = arith.subf %149, %143 : vector<8x32xf32>
    %151 = arith.mulf %150, %148 : vector<8x32xf32>
    %152 = arith.mulf %143, %88 : vector<8x32xf32>
    %153 = arith.addf %151, %152 : vector<8x32xf32>
    %154 = arith.index_cast %92 : i32 to index
    %c0_43 = arith.constant 0 : index
    %155 = vector.load %arg16[%154, %c0_43] : memref<64x32xf32, #tpu.memory_space<vmem>>, vector<8x32xf32>
    tpu.vector_store %arg16[%154, %c0_43], %153 {strides = array<i32>} : memref<64x32xf32, #tpu.memory_space<vmem>>, vector<8x32xf32>,
    %c2_i32 = arith.constant 2 : i32
    %c8_i32_44 = arith.constant 8 : i32
    %156 = arith.muli %c2_i32, %c8_i32_44 : i32
    %157 = tpu.assume_multiple %156, 8 : i32
    %158 = arith.index_cast %157 : i32 to index
    %c0_45 = arith.constant 0 : index
    %159 = vector.load %arg15[%158, %c0_45] : memref<64x96xf32, #tpu.memory_space<vmem>>, vector<8x96xf32>
    %160 = tpu.concatenate %125, %153 in 1 : vector<8x32xf32>, vector<8x32xf32> -> vector<8x64xf32>
    %cst_46 = arith.constant dense<0.000000e+00> : vector<8x192xf32>
    %161 = tpu.matmul %160, %18, %cst_46 {dimension_numbers = #tpu.dot_dimension_numbers<[1], [0], [0], [1], [0, 0, 1, 1], [], []>} : vector<8x64xf32>, vector<64x192xf32>, vector<8x192xf32> -> vector<8x192xf32>
    %162 = arith.addf %161, %21 : vector<8x192xf32>
    %163 = vector.extract_strided_slice %162 {offsets = [0, 0], sizes = [8, 96], strides = [1, 1]} : vector<8x192xf32> to vector<8x96xf32>
    %164 = vector.extract_strided_slice %162 {offsets = [0, 96], sizes = [8, 96], strides = [1, 1]} : vector<8x192xf32> to vector<8x96xf32>
    %165 = vector.extract_strided_slice %159 {offsets = [0, 0], sizes = [8, 32], strides = [1, 1]} : vector<8x96xf32> to vector<8x32xf32>
    %166 = vector.extract_strided_slice %163 {offsets = [0, 0], sizes = [8, 32], strides = [1, 1]} : vector<8x96xf32> to vector<8x32xf32>
    %167 = arith.addf %165, %166 : vector<8x32xf32>
    %168 = arith.negf %167 : vector<8x32xf32>
    %169 = math.exp %168 : vector<8x32xf32>
    %cst_47 = arith.constant 1.000000e+00 : f32
    %170 = vector.broadcast %cst_47 : f32 to vector<8x32xf32>
    %171 = arith.addf %170, %169 : vector<8x32xf32>
    %172 = arith.divf %170, %171 : vector<8x32xf32>
    %173 = vector.extract_strided_slice %159 {offsets = [0, 32], sizes = [8, 32], strides = [1, 1]} : vector<8x96xf32> to vector<8x32xf32>
    %174 = vector.extract_strided_slice %163 {offsets = [0, 32], sizes = [8, 32], strides = [1, 1]} : vector<8x96xf32> to vector<8x32xf32>
    %175 = arith.addf %173, %174 : vector<8x32xf32>
    %176 = arith.negf %175 : vector<8x32xf32>
    %177 = math.exp %176 : vector<8x32xf32>
    %cst_48 = arith.constant 1.000000e+00 : f32
    %178 = vector.broadcast %cst_48 : f32 to vector<8x32xf32>
    %179 = arith.addf %178, %177 : vector<8x32xf32>
    %180 = arith.divf %178, %179 : vector<8x32xf32>
    %181 = vector.extract_strided_slice %159 {offsets = [0, 64], sizes = [8, 32], strides = [1, 1]} : vector<8x96xf32> to vector<8x32xf32>
    %182 = vector.extract_strided_slice %163 {offsets = [0, 64], sizes = [8, 32], strides = [1, 1]} : vector<8x96xf32> to vector<8x32xf32>
    %183 = arith.mulf %172, %182 : vector<8x32xf32>
    %184 = arith.addf %181, %183 : vector<8x32xf32>
    %185 = math.tanh %184 : vector<8x32xf32>
    %cst_49 = arith.constant 1.000000e+00 : f32
    %186 = vector.broadcast %cst_49 : f32 to vector<8x32xf32>
    %187 = arith.subf %186, %180 : vector<8x32xf32>
    %188 = arith.mulf %187, %185 : vector<8x32xf32>
    %189 = arith.mulf %180, %125 : vector<8x32xf32>
    %190 = arith.addf %188, %189 : vector<8x32xf32>
    %cst_50 = arith.constant dense<0.000000e+00> : vector<8x96xf32>
    %191 = tpu.matmul %190, %17, %cst_50 {dimension_numbers = #tpu.dot_dimension_numbers<[1], [0], [0], [1], [0, 0, 1, 1], [], []>} : vector<8x32xf32>, vector<32x96xf32>, vector<8x96xf32> -> vector<8x96xf32>
    %192 = arith.addf %191, %24 : vector<8x96xf32>
    %193 = vector.extract_strided_slice %192 {offsets = [0, 0], sizes = [8, 32], strides = [1, 1]} : vector<8x96xf32> to vector<8x32xf32>
    %194 = vector.extract_strided_slice %164 {offsets = [0, 0], sizes = [8, 32], strides = [1, 1]} : vector<8x96xf32> to vector<8x32xf32>
    %195 = arith.addf %193, %194 : vector<8x32xf32>
    %196 = arith.negf %195 : vector<8x32xf32>
    %197 = math.exp %196 : vector<8x32xf32>
    %cst_51 = arith.constant 1.000000e+00 : f32
    %198 = vector.broadcast %cst_51 : f32 to vector<8x32xf32>
    %199 = arith.addf %198, %197 : vector<8x32xf32>
    %200 = arith.divf %198, %199 : vector<8x32xf32>
    %201 = vector.extract_strided_slice %192 {offsets = [0, 32], sizes = [8, 32], strides = [1, 1]} : vector<8x96xf32> to vector<8x32xf32>
    %202 = vector.extract_strided_slice %164 {offsets = [0, 32], sizes = [8, 32], strides = [1, 1]} : vector<8x96xf32> to vector<8x32xf32>
    %203 = arith.addf %201, %202 : vector<8x32xf32>
    %204 = arith.negf %203 : vector<8x32xf32>
    %205 = math.exp %204 : vector<8x32xf32>
    %cst_52 = arith.constant 1.000000e+00 : f32
    %206 = vector.broadcast %cst_52 : f32 to vector<8x32xf32>
    %207 = arith.addf %206, %205 : vector<8x32xf32>
    %208 = arith.divf %206, %207 : vector<8x32xf32>
    %209 = vector.extract_strided_slice %192 {offsets = [0, 64], sizes = [8, 32], strides = [1, 1]} : vector<8x96xf32> to vector<8x32xf32>
    %210 = vector.extract_strided_slice %164 {offsets = [0, 64], sizes = [8, 32], strides = [1, 1]} : vector<8x96xf32> to vector<8x32xf32>
    %211 = arith.mulf %200, %210 : vector<8x32xf32>
    %212 = arith.addf %209, %211 : vector<8x32xf32>
    %213 = math.tanh %212 : vector<8x32xf32>
    %cst_53 = arith.constant 1.000000e+00 : f32
    %214 = vector.broadcast %cst_53 : f32 to vector<8x32xf32>
    %215 = arith.subf %214, %208 : vector<8x32xf32>
    %216 = arith.mulf %215, %213 : vector<8x32xf32>
    %217 = arith.mulf %208, %153 : vector<8x32xf32>
    %218 = arith.addf %216, %217 : vector<8x32xf32>
    %219 = arith.index_cast %157 : i32 to index
    %c0_54 = arith.constant 0 : index
    %220 = vector.load %arg16[%219, %c0_54] : memref<64x32xf32, #tpu.memory_space<vmem>>, vector<8x32xf32>
    tpu.vector_store %arg16[%219, %c0_54], %218 {strides = array<i32>} : memref<64x32xf32, #tpu.memory_space<vmem>>, vector<8x32xf32>,
    %c3_i32 = arith.constant 3 : i32
    %c8_i32_55 = arith.constant 8 : i32
    %221 = arith.muli %c3_i32, %c8_i32_55 : i32
    %222 = tpu.assume_multiple %221, 8 : i32
    %223 = arith.index_cast %222 : i32 to index
    %c0_56 = arith.constant 0 : index
    %224 = vector.load %arg15[%223, %c0_56] : memref<64x96xf32, #tpu.memory_space<vmem>>, vector<8x96xf32>
    %225 = tpu.concatenate %190, %218 in 1 : vector<8x32xf32>, vector<8x32xf32> -> vector<8x64xf32>
    %cst_57 = arith.constant dense<0.000000e+00> : vector<8x192xf32>
    %226 = tpu.matmul %225, %18, %cst_57 {dimension_numbers = #tpu.dot_dimension_numbers<[1], [0], [0], [1], [0, 0, 1, 1], [], []>} : vector<8x64xf32>, vector<64x192xf32>, vector<8x192xf32> -> vector<8x192xf32>
    %227 = arith.addf %226, %21 : vector<8x192xf32>
    %228 = vector.extract_strided_slice %227 {offsets = [0, 0], sizes = [8, 96], strides = [1, 1]} : vector<8x192xf32> to vector<8x96xf32>
    %229 = vector.extract_strided_slice %227 {offsets = [0, 96], sizes = [8, 96], strides = [1, 1]} : vector<8x192xf32> to vector<8x96xf32>
    %230 = vector.extract_strided_slice %224 {offsets = [0, 0], sizes = [8, 32], strides = [1, 1]} : vector<8x96xf32> to vector<8x32xf32>
    %231 = vector.extract_strided_slice %228 {offsets = [0, 0], sizes = [8, 32], strides = [1, 1]} : vector<8x96xf32> to vector<8x32xf32>
    %232 = arith.addf %230, %231 : vector<8x32xf32>
    %233 = arith.negf %232 : vector<8x32xf32>
    %234 = math.exp %233 : vector<8x32xf32>
    %cst_58 = arith.constant 1.000000e+00 : f32
    %235 = vector.broadcast %cst_58 : f32 to vector<8x32xf32>
    %236 = arith.addf %235, %234 : vector<8x32xf32>
    %237 = arith.divf %235, %236 : vector<8x32xf32>
    %238 = vector.extract_strided_slice %224 {offsets = [0, 32], sizes = [8, 32], strides = [1, 1]} : vector<8x96xf32> to vector<8x32xf32>
    %239 = vector.extract_strided_slice %228 {offsets = [0, 32], sizes = [8, 32], strides = [1, 1]} : vector<8x96xf32> to vector<8x32xf32>
    %240 = arith.addf %238, %239 : vector<8x32xf32>
    %241 = arith.negf %240 : vector<8x32xf32>
    %242 = math.exp %241 : vector<8x32xf32>
    %cst_59 = arith.constant 1.000000e+00 : f32
    %243 = vector.broadcast %cst_59 : f32 to vector<8x32xf32>
    %244 = arith.addf %243, %242 : vector<8x32xf32>
    %245 = arith.divf %243, %244 : vector<8x32xf32>
    %246 = vector.extract_strided_slice %224 {offsets = [0, 64], sizes = [8, 32], strides = [1, 1]} : vector<8x96xf32> to vector<8x32xf32>
    %247 = vector.extract_strided_slice %228 {offsets = [0, 64], sizes = [8, 32], strides = [1, 1]} : vector<8x96xf32> to vector<8x32xf32>
    %248 = arith.mulf %237, %247 : vector<8x32xf32>
    %249 = arith.addf %246, %248 : vector<8x32xf32>
    %250 = math.tanh %249 : vector<8x32xf32>
    %cst_60 = arith.constant 1.000000e+00 : f32
    %251 = vector.broadcast %cst_60 : f32 to vector<8x32xf32>
    %252 = arith.subf %251, %245 : vector<8x32xf32>
    %253 = arith.mulf %252, %250 : vector<8x32xf32>
    %254 = arith.mulf %245, %190 : vector<8x32xf32>
    %255 = arith.addf %253, %254 : vector<8x32xf32>
    %cst_61 = arith.constant dense<0.000000e+00> : vector<8x96xf32>
    %256 = tpu.matmul %255, %17, %cst_61 {dimension_numbers = #tpu.dot_dimension_numbers<[1], [0], [0], [1], [0, 0, 1, 1], [], []>} : vector<8x32xf32>, vector<32x96xf32>, vector<8x96xf32> -> vector<8x96xf32>
    %257 = arith.addf %256, %24 : vector<8x96xf32>
    %258 = vector.extract_strided_slice %257 {offsets = [0, 0], sizes = [8, 32], strides = [1, 1]} : vector<8x96xf32> to vector<8x32xf32>
    %259 = vector.extract_strided_slice %229 {offsets = [0, 0], sizes = [8, 32], strides = [1, 1]} : vector<8x96xf32> to vector<8x32xf32>
    %260 = arith.addf %258, %259 : vector<8x32xf32>
    %261 = arith.negf %260 : vector<8x32xf32>
    %262 = math.exp %261 : vector<8x32xf32>
    %cst_62 = arith.constant 1.000000e+00 : f32
    %263 = vector.broadcast %cst_62 : f32 to vector<8x32xf32>
    %264 = arith.addf %263, %262 : vector<8x32xf32>
    %265 = arith.divf %263, %264 : vector<8x32xf32>
    %266 = vector.extract_strided_slice %257 {offsets = [0, 32], sizes = [8, 32], strides = [1, 1]} : vector<8x96xf32> to vector<8x32xf32>
    %267 = vector.extract_strided_slice %229 {offsets = [0, 32], sizes = [8, 32], strides = [1, 1]} : vector<8x96xf32> to vector<8x32xf32>
    %268 = arith.addf %266, %267 : vector<8x32xf32>
    %269 = arith.negf %268 : vector<8x32xf32>
    %270 = math.exp %269 : vector<8x32xf32>
    %cst_63 = arith.constant 1.000000e+00 : f32
    %271 = vector.broadcast %cst_63 : f32 to vector<8x32xf32>
    %272 = arith.addf %271, %270 : vector<8x32xf32>
    %273 = arith.divf %271, %272 : vector<8x32xf32>
    %274 = vector.extract_strided_slice %257 {offsets = [0, 64], sizes = [8, 32], strides = [1, 1]} : vector<8x96xf32> to vector<8x32xf32>
    %275 = vector.extract_strided_slice %229 {offsets = [0, 64], sizes = [8, 32], strides = [1, 1]} : vector<8x96xf32> to vector<8x32xf32>
    %276 = arith.mulf %265, %275 : vector<8x32xf32>
    %277 = arith.addf %274, %276 : vector<8x32xf32>
    %278 = math.tanh %277 : vector<8x32xf32>
    %cst_64 = arith.constant 1.000000e+00 : f32
    %279 = vector.broadcast %cst_64 : f32 to vector<8x32xf32>
    %280 = arith.subf %279, %273 : vector<8x32xf32>
    %281 = arith.mulf %280, %278 : vector<8x32xf32>
    %282 = arith.mulf %273, %218 : vector<8x32xf32>
    %283 = arith.addf %281, %282 : vector<8x32xf32>
    %284 = arith.index_cast %222 : i32 to index
    %c0_65 = arith.constant 0 : index
    %285 = vector.load %arg16[%284, %c0_65] : memref<64x32xf32, #tpu.memory_space<vmem>>, vector<8x32xf32>
    tpu.vector_store %arg16[%284, %c0_65], %283 {strides = array<i32>} : memref<64x32xf32, #tpu.memory_space<vmem>>, vector<8x32xf32>,
    %c4_i32 = arith.constant 4 : i32
    %c8_i32_66 = arith.constant 8 : i32
    %286 = arith.muli %c4_i32, %c8_i32_66 : i32
    %287 = tpu.assume_multiple %286, 8 : i32
    %288 = arith.index_cast %287 : i32 to index
    %c0_67 = arith.constant 0 : index
    %289 = vector.load %arg15[%288, %c0_67] : memref<64x96xf32, #tpu.memory_space<vmem>>, vector<8x96xf32>
    %290 = tpu.concatenate %255, %283 in 1 : vector<8x32xf32>, vector<8x32xf32> -> vector<8x64xf32>
    %cst_68 = arith.constant dense<0.000000e+00> : vector<8x192xf32>
    %291 = tpu.matmul %290, %18, %cst_68 {dimension_numbers = #tpu.dot_dimension_numbers<[1], [0], [0], [1], [0, 0, 1, 1], [], []>} : vector<8x64xf32>, vector<64x192xf32>, vector<8x192xf32> -> vector<8x192xf32>
    %292 = arith.addf %291, %21 : vector<8x192xf32>
    %293 = vector.extract_strided_slice %292 {offsets = [0, 0], sizes = [8, 96], strides = [1, 1]} : vector<8x192xf32> to vector<8x96xf32>
    %294 = vector.extract_strided_slice %292 {offsets = [0, 96], sizes = [8, 96], strides = [1, 1]} : vector<8x192xf32> to vector<8x96xf32>
    %295 = vector.extract_strided_slice %289 {offsets = [0, 0], sizes = [8, 32], strides = [1, 1]} : vector<8x96xf32> to vector<8x32xf32>
    %296 = vector.extract_strided_slice %293 {offsets = [0, 0], sizes = [8, 32], strides = [1, 1]} : vector<8x96xf32> to vector<8x32xf32>
    %297 = arith.addf %295, %296 : vector<8x32xf32>
    %298 = arith.negf %297 : vector<8x32xf32>
    %299 = math.exp %298 : vector<8x32xf32>
    %cst_69 = arith.constant 1.000000e+00 : f32
    %300 = vector.broadcast %cst_69 : f32 to vector<8x32xf32>
    %301 = arith.addf %300, %299 : vector<8x32xf32>
    %302 = arith.divf %300, %301 : vector<8x32xf32>
    %303 = vector.extract_strided_slice %289 {offsets = [0, 32], sizes = [8, 32], strides = [1, 1]} : vector<8x96xf32> to vector<8x32xf32>
    %304 = vector.extract_strided_slice %293 {offsets = [0, 32], sizes = [8, 32], strides = [1, 1]} : vector<8x96xf32> to vector<8x32xf32>
    %305 = arith.addf %303, %304 : vector<8x32xf32>
    %306 = arith.negf %305 : vector<8x32xf32>
    %307 = math.exp %306 : vector<8x32xf32>
    %cst_70 = arith.constant 1.000000e+00 : f32
    %308 = vector.broadcast %cst_70 : f32 to vector<8x32xf32>
    %309 = arith.addf %308, %307 : vector<8x32xf32>
    %310 = arith.divf %308, %309 : vector<8x32xf32>
    %311 = vector.extract_strided_slice %289 {offsets = [0, 64], sizes = [8, 32], strides = [1, 1]} : vector<8x96xf32> to vector<8x32xf32>
    %312 = vector.extract_strided_slice %293 {offsets = [0, 64], sizes = [8, 32], strides = [1, 1]} : vector<8x96xf32> to vector<8x32xf32>
    %313 = arith.mulf %302, %312 : vector<8x32xf32>
    %314 = arith.addf %311, %313 : vector<8x32xf32>
    %315 = math.tanh %314 : vector<8x32xf32>
    %cst_71 = arith.constant 1.000000e+00 : f32
    %316 = vector.broadcast %cst_71 : f32 to vector<8x32xf32>
    %317 = arith.subf %316, %310 : vector<8x32xf32>
    %318 = arith.mulf %317, %315 : vector<8x32xf32>
    %319 = arith.mulf %310, %255 : vector<8x32xf32>
    %320 = arith.addf %318, %319 : vector<8x32xf32>
    %cst_72 = arith.constant dense<0.000000e+00> : vector<8x96xf32>
    %321 = tpu.matmul %320, %17, %cst_72 {dimension_numbers = #tpu.dot_dimension_numbers<[1], [0], [0], [1], [0, 0, 1, 1], [], []>} : vector<8x32xf32>, vector<32x96xf32>, vector<8x96xf32> -> vector<8x96xf32>
    %322 = arith.addf %321, %24 : vector<8x96xf32>
    %323 = vector.extract_strided_slice %322 {offsets = [0, 0], sizes = [8, 32], strides = [1, 1]} : vector<8x96xf32> to vector<8x32xf32>
    %324 = vector.extract_strided_slice %294 {offsets = [0, 0], sizes = [8, 32], strides = [1, 1]} : vector<8x96xf32> to vector<8x32xf32>
    %325 = arith.addf %323, %324 : vector<8x32xf32>
    %326 = arith.negf %325 : vector<8x32xf32>
    %327 = math.exp %326 : vector<8x32xf32>
    %cst_73 = arith.constant 1.000000e+00 : f32
    %328 = vector.broadcast %cst_73 : f32 to vector<8x32xf32>
    %329 = arith.addf %328, %327 : vector<8x32xf32>
    %330 = arith.divf %328, %329 : vector<8x32xf32>
    %331 = vector.extract_strided_slice %322 {offsets = [0, 32], sizes = [8, 32], strides = [1, 1]} : vector<8x96xf32> to vector<8x32xf32>
    %332 = vector.extract_strided_slice %294 {offsets = [0, 32], sizes = [8, 32], strides = [1, 1]} : vector<8x96xf32> to vector<8x32xf32>
    %333 = arith.addf %331, %332 : vector<8x32xf32>
    %334 = arith.negf %333 : vector<8x32xf32>
    %335 = math.exp %334 : vector<8x32xf32>
    %cst_74 = arith.constant 1.000000e+00 : f32
    %336 = vector.broadcast %cst_74 : f32 to vector<8x32xf32>
    %337 = arith.addf %336, %335 : vector<8x32xf32>
    %338 = arith.divf %336, %337 : vector<8x32xf32>
    %339 = vector.extract_strided_slice %322 {offsets = [0, 64], sizes = [8, 32], strides = [1, 1]} : vector<8x96xf32> to vector<8x32xf32>
    %340 = vector.extract_strided_slice %294 {offsets = [0, 64], sizes = [8, 32], strides = [1, 1]} : vector<8x96xf32> to vector<8x32xf32>
    %341 = arith.mulf %330, %340 : vector<8x32xf32>
    %342 = arith.addf %339, %341 : vector<8x32xf32>
    %343 = math.tanh %342 : vector<8x32xf32>
    %cst_75 = arith.constant 1.000000e+00 : f32
    %344 = vector.broadcast %cst_75 : f32 to vector<8x32xf32>
    %345 = arith.subf %344, %338 : vector<8x32xf32>
    %346 = arith.mulf %345, %343 : vector<8x32xf32>
    %347 = arith.mulf %338, %283 : vector<8x32xf32>
    %348 = arith.addf %346, %347 : vector<8x32xf32>
    %349 = arith.index_cast %287 : i32 to index
    %c0_76 = arith.constant 0 : index
    %350 = vector.load %arg16[%349, %c0_76] : memref<64x32xf32, #tpu.memory_space<vmem>>, vector<8x32xf32>
    tpu.vector_store %arg16[%349, %c0_76], %348 {strides = array<i32>} : memref<64x32xf32, #tpu.memory_space<vmem>>, vector<8x32xf32>,
    %c5_i32 = arith.constant 5 : i32
    %c8_i32_77 = arith.constant 8 : i32
    %351 = arith.muli %c5_i32, %c8_i32_77 : i32
    %352 = tpu.assume_multiple %351, 8 : i32
    %353 = arith.index_cast %352 : i32 to index
    %c0_78 = arith.constant 0 : index
    %354 = vector.load %arg15[%353, %c0_78] : memref<64x96xf32, #tpu.memory_space<vmem>>, vector<8x96xf32>
    %355 = tpu.concatenate %320, %348 in 1 : vector<8x32xf32>, vector<8x32xf32> -> vector<8x64xf32>
    %cst_79 = arith.constant dense<0.000000e+00> : vector<8x192xf32>
    %356 = tpu.matmul %355, %18, %cst_79 {dimension_numbers = #tpu.dot_dimension_numbers<[1], [0], [0], [1], [0, 0, 1, 1], [], []>} : vector<8x64xf32>, vector<64x192xf32>, vector<8x192xf32> -> vector<8x192xf32>
    %357 = arith.addf %356, %21 : vector<8x192xf32>
    %358 = vector.extract_strided_slice %357 {offsets = [0, 0], sizes = [8, 96], strides = [1, 1]} : vector<8x192xf32> to vector<8x96xf32>
    %359 = vector.extract_strided_slice %357 {offsets = [0, 96], sizes = [8, 96], strides = [1, 1]} : vector<8x192xf32> to vector<8x96xf32>
    %360 = vector.extract_strided_slice %354 {offsets = [0, 0], sizes = [8, 32], strides = [1, 1]} : vector<8x96xf32> to vector<8x32xf32>
    %361 = vector.extract_strided_slice %358 {offsets = [0, 0], sizes = [8, 32], strides = [1, 1]} : vector<8x96xf32> to vector<8x32xf32>
    %362 = arith.addf %360, %361 : vector<8x32xf32>
    %363 = arith.negf %362 : vector<8x32xf32>
    %364 = math.exp %363 : vector<8x32xf32>
    %cst_80 = arith.constant 1.000000e+00 : f32
    %365 = vector.broadcast %cst_80 : f32 to vector<8x32xf32>
    %366 = arith.addf %365, %364 : vector<8x32xf32>
    %367 = arith.divf %365, %366 : vector<8x32xf32>
    %368 = vector.extract_strided_slice %354 {offsets = [0, 32], sizes = [8, 32], strides = [1, 1]} : vector<8x96xf32> to vector<8x32xf32>
    %369 = vector.extract_strided_slice %358 {offsets = [0, 32], sizes = [8, 32], strides = [1, 1]} : vector<8x96xf32> to vector<8x32xf32>
    %370 = arith.addf %368, %369 : vector<8x32xf32>
    %371 = arith.negf %370 : vector<8x32xf32>
    %372 = math.exp %371 : vector<8x32xf32>
    %cst_81 = arith.constant 1.000000e+00 : f32
    %373 = vector.broadcast %cst_81 : f32 to vector<8x32xf32>
    %374 = arith.addf %373, %372 : vector<8x32xf32>
    %375 = arith.divf %373, %374 : vector<8x32xf32>
    %376 = vector.extract_strided_slice %354 {offsets = [0, 64], sizes = [8, 32], strides = [1, 1]} : vector<8x96xf32> to vector<8x32xf32>
    %377 = vector.extract_strided_slice %358 {offsets = [0, 64], sizes = [8, 32], strides = [1, 1]} : vector<8x96xf32> to vector<8x32xf32>
    %378 = arith.mulf %367, %377 : vector<8x32xf32>
    %379 = arith.addf %376, %378 : vector<8x32xf32>
    %380 = math.tanh %379 : vector<8x32xf32>
    %cst_82 = arith.constant 1.000000e+00 : f32
    %381 = vector.broadcast %cst_82 : f32 to vector<8x32xf32>
    %382 = arith.subf %381, %375 : vector<8x32xf32>
    %383 = arith.mulf %382, %380 : vector<8x32xf32>
    %384 = arith.mulf %375, %320 : vector<8x32xf32>
    %385 = arith.addf %383, %384 : vector<8x32xf32>
    %cst_83 = arith.constant dense<0.000000e+00> : vector<8x96xf32>
    %386 = tpu.matmul %385, %17, %cst_83 {dimension_numbers = #tpu.dot_dimension_numbers<[1], [0], [0], [1], [0, 0, 1, 1], [], []>} : vector<8x32xf32>, vector<32x96xf32>, vector<8x96xf32> -> vector<8x96xf32>
    %387 = arith.addf %386, %24 : vector<8x96xf32>
    %388 = vector.extract_strided_slice %387 {offsets = [0, 0], sizes = [8, 32], strides = [1, 1]} : vector<8x96xf32> to vector<8x32xf32>
    %389 = vector.extract_strided_slice %359 {offsets = [0, 0], sizes = [8, 32], strides = [1, 1]} : vector<8x96xf32> to vector<8x32xf32>
    %390 = arith.addf %388, %389 : vector<8x32xf32>
    %391 = arith.negf %390 : vector<8x32xf32>
    %392 = math.exp %391 : vector<8x32xf32>
    %cst_84 = arith.constant 1.000000e+00 : f32
    %393 = vector.broadcast %cst_84 : f32 to vector<8x32xf32>
    %394 = arith.addf %393, %392 : vector<8x32xf32>
    %395 = arith.divf %393, %394 : vector<8x32xf32>
    %396 = vector.extract_strided_slice %387 {offsets = [0, 32], sizes = [8, 32], strides = [1, 1]} : vector<8x96xf32> to vector<8x32xf32>
    %397 = vector.extract_strided_slice %359 {offsets = [0, 32], sizes = [8, 32], strides = [1, 1]} : vector<8x96xf32> to vector<8x32xf32>
    %398 = arith.addf %396, %397 : vector<8x32xf32>
    %399 = arith.negf %398 : vector<8x32xf32>
    %400 = math.exp %399 : vector<8x32xf32>
    %cst_85 = arith.constant 1.000000e+00 : f32
    %401 = vector.broadcast %cst_85 : f32 to vector<8x32xf32>
    %402 = arith.addf %401, %400 : vector<8x32xf32>
    %403 = arith.divf %401, %402 : vector<8x32xf32>
    %404 = vector.extract_strided_slice %387 {offsets = [0, 64], sizes = [8, 32], strides = [1, 1]} : vector<8x96xf32> to vector<8x32xf32>
    %405 = vector.extract_strided_slice %359 {offsets = [0, 64], sizes = [8, 32], strides = [1, 1]} : vector<8x96xf32> to vector<8x32xf32>
    %406 = arith.mulf %395, %405 : vector<8x32xf32>
    %407 = arith.addf %404, %406 : vector<8x32xf32>
    %408 = math.tanh %407 : vector<8x32xf32>
    %cst_86 = arith.constant 1.000000e+00 : f32
    %409 = vector.broadcast %cst_86 : f32 to vector<8x32xf32>
    %410 = arith.subf %409, %403 : vector<8x32xf32>
    %411 = arith.mulf %410, %408 : vector<8x32xf32>
    %412 = arith.mulf %403, %348 : vector<8x32xf32>
    %413 = arith.addf %411, %412 : vector<8x32xf32>
    %414 = arith.index_cast %352 : i32 to index
    %c0_87 = arith.constant 0 : index
    %415 = vector.load %arg16[%414, %c0_87] : memref<64x32xf32, #tpu.memory_space<vmem>>, vector<8x32xf32>
    tpu.vector_store %arg16[%414, %c0_87], %413 {strides = array<i32>} : memref<64x32xf32, #tpu.memory_space<vmem>>, vector<8x32xf32>,
    %c6_i32 = arith.constant 6 : i32
    %c8_i32_88 = arith.constant 8 : i32
    %416 = arith.muli %c6_i32, %c8_i32_88 : i32
    %417 = tpu.assume_multiple %416, 8 : i32
    %418 = arith.index_cast %417 : i32 to index
    %c0_89 = arith.constant 0 : index
    %419 = vector.load %arg15[%418, %c0_89] : memref<64x96xf32, #tpu.memory_space<vmem>>, vector<8x96xf32>
    %420 = tpu.concatenate %385, %413 in 1 : vector<8x32xf32>, vector<8x32xf32> -> vector<8x64xf32>
    %cst_90 = arith.constant dense<0.000000e+00> : vector<8x192xf32>
    %421 = tpu.matmul %420, %18, %cst_90 {dimension_numbers = #tpu.dot_dimension_numbers<[1], [0], [0], [1], [0, 0, 1, 1], [], []>} : vector<8x64xf32>, vector<64x192xf32>, vector<8x192xf32> -> vector<8x192xf32>
    %422 = arith.addf %421, %21 : vector<8x192xf32>
    %423 = vector.extract_strided_slice %422 {offsets = [0, 0], sizes = [8, 96], strides = [1, 1]} : vector<8x192xf32> to vector<8x96xf32>
    %424 = vector.extract_strided_slice %422 {offsets = [0, 96], sizes = [8, 96], strides = [1, 1]} : vector<8x192xf32> to vector<8x96xf32>
    %425 = vector.extract_strided_slice %419 {offsets = [0, 0], sizes = [8, 32], strides = [1, 1]} : vector<8x96xf32> to vector<8x32xf32>
    %426 = vector.extract_strided_slice %423 {offsets = [0, 0], sizes = [8, 32], strides = [1, 1]} : vector<8x96xf32> to vector<8x32xf32>
    %427 = arith.addf %425, %426 : vector<8x32xf32>
    %428 = arith.negf %427 : vector<8x32xf32>
    %429 = math.exp %428 : vector<8x32xf32>
    %cst_91 = arith.constant 1.000000e+00 : f32
    %430 = vector.broadcast %cst_91 : f32 to vector<8x32xf32>
    %431 = arith.addf %430, %429 : vector<8x32xf32>
    %432 = arith.divf %430, %431 : vector<8x32xf32>
    %433 = vector.extract_strided_slice %419 {offsets = [0, 32], sizes = [8, 32], strides = [1, 1]} : vector<8x96xf32> to vector<8x32xf32>
    %434 = vector.extract_strided_slice %423 {offsets = [0, 32], sizes = [8, 32], strides = [1, 1]} : vector<8x96xf32> to vector<8x32xf32>
    %435 = arith.addf %433, %434 : vector<8x32xf32>
    %436 = arith.negf %435 : vector<8x32xf32>
    %437 = math.exp %436 : vector<8x32xf32>
    %cst_92 = arith.constant 1.000000e+00 : f32
    %438 = vector.broadcast %cst_92 : f32 to vector<8x32xf32>
    %439 = arith.addf %438, %437 : vector<8x32xf32>
    %440 = arith.divf %438, %439 : vector<8x32xf32>
    %441 = vector.extract_strided_slice %419 {offsets = [0, 64], sizes = [8, 32], strides = [1, 1]} : vector<8x96xf32> to vector<8x32xf32>
    %442 = vector.extract_strided_slice %423 {offsets = [0, 64], sizes = [8, 32], strides = [1, 1]} : vector<8x96xf32> to vector<8x32xf32>
    %443 = arith.mulf %432, %442 : vector<8x32xf32>
    %444 = arith.addf %441, %443 : vector<8x32xf32>
    %445 = math.tanh %444 : vector<8x32xf32>
    %cst_93 = arith.constant 1.000000e+00 : f32
    %446 = vector.broadcast %cst_93 : f32 to vector<8x32xf32>
    %447 = arith.subf %446, %440 : vector<8x32xf32>
    %448 = arith.mulf %447, %445 : vector<8x32xf32>
    %449 = arith.mulf %440, %385 : vector<8x32xf32>
    %450 = arith.addf %448, %449 : vector<8x32xf32>
    %cst_94 = arith.constant dense<0.000000e+00> : vector<8x96xf32>
    %451 = tpu.matmul %450, %17, %cst_94 {dimension_numbers = #tpu.dot_dimension_numbers<[1], [0], [0], [1], [0, 0, 1, 1], [], []>} : vector<8x32xf32>, vector<32x96xf32>, vector<8x96xf32> -> vector<8x96xf32>
    %452 = arith.addf %451, %24 : vector<8x96xf32>
    %453 = vector.extract_strided_slice %452 {offsets = [0, 0], sizes = [8, 32], strides = [1, 1]} : vector<8x96xf32> to vector<8x32xf32>
    %454 = vector.extract_strided_slice %424 {offsets = [0, 0], sizes = [8, 32], strides = [1, 1]} : vector<8x96xf32> to vector<8x32xf32>
    %455 = arith.addf %453, %454 : vector<8x32xf32>
    %456 = arith.negf %455 : vector<8x32xf32>
    %457 = math.exp %456 : vector<8x32xf32>
    %cst_95 = arith.constant 1.000000e+00 : f32
    %458 = vector.broadcast %cst_95 : f32 to vector<8x32xf32>
    %459 = arith.addf %458, %457 : vector<8x32xf32>
    %460 = arith.divf %458, %459 : vector<8x32xf32>
    %461 = vector.extract_strided_slice %452 {offsets = [0, 32], sizes = [8, 32], strides = [1, 1]} : vector<8x96xf32> to vector<8x32xf32>
    %462 = vector.extract_strided_slice %424 {offsets = [0, 32], sizes = [8, 32], strides = [1, 1]} : vector<8x96xf32> to vector<8x32xf32>
    %463 = arith.addf %461, %462 : vector<8x32xf32>
    %464 = arith.negf %463 : vector<8x32xf32>
    %465 = math.exp %464 : vector<8x32xf32>
    %cst_96 = arith.constant 1.000000e+00 : f32
    %466 = vector.broadcast %cst_96 : f32 to vector<8x32xf32>
    %467 = arith.addf %466, %465 : vector<8x32xf32>
    %468 = arith.divf %466, %467 : vector<8x32xf32>
    %469 = vector.extract_strided_slice %452 {offsets = [0, 64], sizes = [8, 32], strides = [1, 1]} : vector<8x96xf32> to vector<8x32xf32>
    %470 = vector.extract_strided_slice %424 {offsets = [0, 64], sizes = [8, 32], strides = [1, 1]} : vector<8x96xf32> to vector<8x32xf32>
    %471 = arith.mulf %460, %470 : vector<8x32xf32>
    %472 = arith.addf %469, %471 : vector<8x32xf32>
    %473 = math.tanh %472 : vector<8x32xf32>
    %cst_97 = arith.constant 1.000000e+00 : f32
    %474 = vector.broadcast %cst_97 : f32 to vector<8x32xf32>
    %475 = arith.subf %474, %468 : vector<8x32xf32>
    %476 = arith.mulf %475, %473 : vector<8x32xf32>
    %477 = arith.mulf %468, %413 : vector<8x32xf32>
    %478 = arith.addf %476, %477 : vector<8x32xf32>
    %479 = arith.index_cast %417 : i32 to index
    %c0_98 = arith.constant 0 : index
    %480 = vector.load %arg16[%479, %c0_98] : memref<64x32xf32, #tpu.memory_space<vmem>>, vector<8x32xf32>
    tpu.vector_store %arg16[%479, %c0_98], %478 {strides = array<i32>} : memref<64x32xf32, #tpu.memory_space<vmem>>, vector<8x32xf32>,
    %c7_i32 = arith.constant 7 : i32
    %c8_i32_99 = arith.constant 8 : i32
    %481 = arith.muli %c7_i32, %c8_i32_99 : i32
    %482 = tpu.assume_multiple %481, 8 : i32
    %483 = arith.index_cast %482 : i32 to index
    %c0_100 = arith.constant 0 : index
    %484 = vector.load %arg15[%483, %c0_100] : memref<64x96xf32, #tpu.memory_space<vmem>>, vector<8x96xf32>
    %485 = tpu.concatenate %450, %478 in 1 : vector<8x32xf32>, vector<8x32xf32> -> vector<8x64xf32>
    %cst_101 = arith.constant dense<0.000000e+00> : vector<8x192xf32>
    %486 = tpu.matmul %485, %18, %cst_101 {dimension_numbers = #tpu.dot_dimension_numbers<[1], [0], [0], [1], [0, 0, 1, 1], [], []>} : vector<8x64xf32>, vector<64x192xf32>, vector<8x192xf32> -> vector<8x192xf32>
    %487 = arith.addf %486, %21 : vector<8x192xf32>
    %488 = vector.extract_strided_slice %487 {offsets = [0, 0], sizes = [8, 96], strides = [1, 1]} : vector<8x192xf32> to vector<8x96xf32>
    %489 = vector.extract_strided_slice %487 {offsets = [0, 96], sizes = [8, 96], strides = [1, 1]} : vector<8x192xf32> to vector<8x96xf32>
    %490 = vector.extract_strided_slice %484 {offsets = [0, 0], sizes = [8, 32], strides = [1, 1]} : vector<8x96xf32> to vector<8x32xf32>
    %491 = vector.extract_strided_slice %488 {offsets = [0, 0], sizes = [8, 32], strides = [1, 1]} : vector<8x96xf32> to vector<8x32xf32>
    %492 = arith.addf %490, %491 : vector<8x32xf32>
    %493 = arith.negf %492 : vector<8x32xf32>
    %494 = math.exp %493 : vector<8x32xf32>
    %cst_102 = arith.constant 1.000000e+00 : f32
    %495 = vector.broadcast %cst_102 : f32 to vector<8x32xf32>
    %496 = arith.addf %495, %494 : vector<8x32xf32>
    %497 = arith.divf %495, %496 : vector<8x32xf32>
    %498 = vector.extract_strided_slice %484 {offsets = [0, 32], sizes = [8, 32], strides = [1, 1]} : vector<8x96xf32> to vector<8x32xf32>
    %499 = vector.extract_strided_slice %488 {offsets = [0, 32], sizes = [8, 32], strides = [1, 1]} : vector<8x96xf32> to vector<8x32xf32>
    %500 = arith.addf %498, %499 : vector<8x32xf32>
    %501 = arith.negf %500 : vector<8x32xf32>
    %502 = math.exp %501 : vector<8x32xf32>
    %cst_103 = arith.constant 1.000000e+00 : f32
    %503 = vector.broadcast %cst_103 : f32 to vector<8x32xf32>
    %504 = arith.addf %503, %502 : vector<8x32xf32>
    %505 = arith.divf %503, %504 : vector<8x32xf32>
    %506 = vector.extract_strided_slice %484 {offsets = [0, 64], sizes = [8, 32], strides = [1, 1]} : vector<8x96xf32> to vector<8x32xf32>
    %507 = vector.extract_strided_slice %488 {offsets = [0, 64], sizes = [8, 32], strides = [1, 1]} : vector<8x96xf32> to vector<8x32xf32>
    %508 = arith.mulf %497, %507 : vector<8x32xf32>
    %509 = arith.addf %506, %508 : vector<8x32xf32>
    %510 = math.tanh %509 : vector<8x32xf32>
    %cst_104 = arith.constant 1.000000e+00 : f32
    %511 = vector.broadcast %cst_104 : f32 to vector<8x32xf32>
    %512 = arith.subf %511, %505 : vector<8x32xf32>
    %513 = arith.mulf %512, %510 : vector<8x32xf32>
    %514 = arith.mulf %505, %450 : vector<8x32xf32>
    %515 = arith.addf %513, %514 : vector<8x32xf32>
    %cst_105 = arith.constant dense<0.000000e+00> : vector<8x96xf32>
    %516 = tpu.matmul %515, %17, %cst_105 {dimension_numbers = #tpu.dot_dimension_numbers<[1], [0], [0], [1], [0, 0, 1, 1], [], []>} : vector<8x32xf32>, vector<32x96xf32>, vector<8x96xf32> -> vector<8x96xf32>
    %517 = arith.addf %516, %24 : vector<8x96xf32>
    %518 = vector.extract_strided_slice %517 {offsets = [0, 0], sizes = [8, 32], strides = [1, 1]} : vector<8x96xf32> to vector<8x32xf32>
    %519 = vector.extract_strided_slice %489 {offsets = [0, 0], sizes = [8, 32], strides = [1, 1]} : vector<8x96xf32> to vector<8x32xf32>
    %520 = arith.addf %518, %519 : vector<8x32xf32>
    %521 = arith.negf %520 : vector<8x32xf32>
    %522 = math.exp %521 : vector<8x32xf32>
    %cst_106 = arith.constant 1.000000e+00 : f32
    %523 = vector.broadcast %cst_106 : f32 to vector<8x32xf32>
    %524 = arith.addf %523, %522 : vector<8x32xf32>
    %525 = arith.divf %523, %524 : vector<8x32xf32>
    %526 = vector.extract_strided_slice %517 {offsets = [0, 32], sizes = [8, 32], strides = [1, 1]} : vector<8x96xf32> to vector<8x32xf32>
    %527 = vector.extract_strided_slice %489 {offsets = [0, 32], sizes = [8, 32], strides = [1, 1]} : vector<8x96xf32> to vector<8x32xf32>
    %528 = arith.addf %526, %527 : vector<8x32xf32>
    %529 = arith.negf %528 : vector<8x32xf32>
    %530 = math.exp %529 : vector<8x32xf32>
    %cst_107 = arith.constant 1.000000e+00 : f32
    %531 = vector.broadcast %cst_107 : f32 to vector<8x32xf32>
    %532 = arith.addf %531, %530 : vector<8x32xf32>
    %533 = arith.divf %531, %532 : vector<8x32xf32>
    %534 = vector.extract_strided_slice %517 {offsets = [0, 64], sizes = [8, 32], strides = [1, 1]} : vector<8x96xf32> to vector<8x32xf32>
    %535 = vector.extract_strided_slice %489 {offsets = [0, 64], sizes = [8, 32], strides = [1, 1]} : vector<8x96xf32> to vector<8x32xf32>
    %536 = arith.mulf %525, %535 : vector<8x32xf32>
    %537 = arith.addf %534, %536 : vector<8x32xf32>
    %538 = math.tanh %537 : vector<8x32xf32>
    %cst_108 = arith.constant 1.000000e+00 : f32
    %539 = vector.broadcast %cst_108 : f32 to vector<8x32xf32>
    %540 = arith.subf %539, %533 : vector<8x32xf32>
    %541 = arith.mulf %540, %538 : vector<8x32xf32>
    %542 = arith.mulf %533, %478 : vector<8x32xf32>
    %543 = arith.addf %541, %542 : vector<8x32xf32>
    %544 = arith.index_cast %482 : i32 to index
    %c0_109 = arith.constant 0 : index
    %545 = vector.load %arg16[%544, %c0_109] : memref<64x32xf32, #tpu.memory_space<vmem>>, vector<8x32xf32>
    tpu.vector_store %arg16[%544, %c0_109], %543 {strides = array<i32>} : memref<64x32xf32, #tpu.memory_space<vmem>>, vector<8x32xf32>,
    %c8_i32_110 = arith.constant 8 : i32
    %c0_111 = arith.constant 0 : index
    %c0_112 = arith.constant 0 : index
    %546 = vector.load %arg16[%c0_111, %c0_112] : memref<64x32xf32, #tpu.memory_space<vmem>>, vector<64x32xf32>
    %c0_113 = arith.constant 0 : index
    %c0_114 = arith.constant 0 : index
    %547 = vector.load %arg9[%c0_113, %c0_114] : memref<32x32xf32, #tpu.memory_space<vmem>>, vector<32x32xf32>
    %cst_115 = arith.constant dense<0.000000e+00> : vector<64x32xf32>
    %548 = tpu.matmul %546, %547, %cst_115 {dimension_numbers = #tpu.dot_dimension_numbers<[1], [0], [0], [1], [0, 0, 1, 1], [], []>} : vector<64x32xf32>, vector<32x32xf32>, vector<64x32xf32> -> vector<64x32xf32>
    %c0_116 = arith.constant 0 : index
    %c0_117 = arith.constant 0 : index
    %549 = vector.load %arg10[%c0_116, %c0_117] : memref<1x32xf32, #tpu.memory_space<vmem>>, vector<1x32xf32>
    %550 = vector.broadcast %549 : vector<1x32xf32> to vector<64x32xf32>
    %551 = arith.addf %548, %550 : vector<64x32xf32>
    %cst_118 = arith.constant 0.000000e+00 : f32
    %552 = vector.broadcast %cst_118 : f32 to vector<64x32xf32>
    %553 = arith.cmpf ogt, %551, %552 : vector<64x32xf32>
    %cst_119 = arith.constant 0.00999999977 : f32
    %554 = vector.broadcast %cst_119 : f32 to vector<64x32xf32>
    %555 = arith.mulf %554, %551 : vector<64x32xf32>
    %556 = arith.select %553, %551, %555 : vector<64x32xi1>, vector<64x32xf32>
    %c0_120 = arith.constant 0 : index
    %c0_121 = arith.constant 0 : index
    %557 = vector.load %arg11[%c0_120, %c0_121] : memref<1x32xf32, #tpu.memory_space<vmem>>, vector<1x32xf32>
    %558 = vector.broadcast %557 : vector<1x32xf32> to vector<64x32xf32>
    %559 = arith.mulf %556, %558 : vector<64x32xf32>
    %cst_122 = arith.constant dense<0.000000e+00> : vector<64xf32>
    %560 = vector.multi_reduction <add>, %559, %cst_122 [1] : vector<64x32xf32> to vector<64xf32>
    %561 = vector.shape_cast %560 : vector<64xf32> to vector<64x1xf32>
    %c0_123 = arith.constant 0 : index
    %c0_124 = arith.constant 0 : index
    %562 = vector.load %arg12[%c0_123, %c0_124] : memref<1x1xf32, #tpu.memory_space<vmem>>, vector<1x1xf32>
    %563 = vector.broadcast %562 : vector<1x1xf32> to vector<64x1xf32>
    %564 = arith.addf %561, %563 : vector<64x1xf32>
    %c0_125 = arith.constant 0 : index
    %c0_126 = arith.constant 0 : index
    %565 = vector.load %arg13[%c0_125, %c0_126] : memref<64x1xf32, #tpu.memory_space<vmem>>, vector<64x1xf32>
    tpu.vector_store %arg13[%c0_125, %c0_126], %564 {strides = array<i32>} : memref<64x1xf32, #tpu.memory_space<vmem>>, vector<64x1xf32>,
    %c0_127 = arith.constant 0 : index
    %c0_128 = arith.constant 0 : index
    %566 = vector.load %arg14[%c0_127, %c0_128] : memref<16x32xf32, #tpu.memory_space<vmem>>, vector<8x32xf32>
    tpu.vector_store %arg14[%c0_127, %c0_128], %515 {strides = array<i32>} : memref<16x32xf32, #tpu.memory_space<vmem>>, vector<8x32xf32>,
    %c8 = arith.constant 8 : index
    %c0_129 = arith.constant 0 : index
    %567 = vector.load %arg14[%c8, %c0_129] : memref<16x32xf32, #tpu.memory_space<vmem>>, vector<8x32xf32>
    tpu.vector_store %arg14[%c8, %c0_129], %543 {strides = array<i32>} : memref<16x32xf32, #tpu.memory_space<vmem>>, vector<8x32xf32>,
    return
  }
}

</mosaic_0001>

<bundles_post_ra>
// kernel: tpu_custom_call.1
= control target key start
LH: loop header
LB: loop body
LE: loop exit
PB: predicated region body
PF: predicated region fallthrough
CT: control target
= control target key end

     0   :  { %s3024_s0 = inlined_call_operand.vmem [shape: f32[64,16], index: 0, kind: input, shape index: {}]   ;;  %s3025_s1 = inlined_call_operand.vmem [shape: f32[16,32], index: 1, kind: input, shape index: {}]   ;;  %s3026_s2 = inlined_call_operand.vmem [shape: f32[1,32], index: 2, kind: input, shape index: {}]   ;;  %s3027_s3 = inlined_call_operand.vmem [shape: f32[32,96], index: 3, kind: input, shape index: {}]   ;;  %s3028_s4 = inlined_call_operand.vmem [shape: f32[1,96], index: 4, kind: input, shape index: {}]   ;;  %s3029_s5 = inlined_call_operand.vmem [shape: f32[32,96], index: 5, kind: input, shape index: {}]   ;;  %s3030_s6 = inlined_call_operand.vmem [shape: f32[1,96], index: 6, kind: input, shape index: {}]   ;;  %s3031_s7 = inlined_call_operand.hbm [shape: f32[64,192], index: 7, kind: input, shape index: {}]   ;;  %s3032_s8 = inlined_call_operand.vmem [shape: f32[1,192], index: 8, kind: input, shape index: {}]   ;;  %s3033_s9 = inlined_call_operand.hbm [shape: f32[32,32], index: 9, kind: input, shape index: {}]   ;;  %s3034_s10 = inlined_call_operand.vmem [shape: f32[1,32], index: 10, kind: input, shape index: {}]   ;;  %s3035_s11 = inlined_call_operand.vmem [shape: f32[1,32], index: 11, kind: input, shape index: {}]   ;;  %s3036_s12 = inlined_call_operand.<no memory space> [shape: f32[1,1], index: 12, kind: input, shape index: {}]   ;;  %s3037_s13 = inlined_call_operand.vmem [shape: f32[64,1], index: 13, kind: output, shape index: {0}]   ;;  %s3038_s14 = inlined_call_operand.hbm [shape: f32[16,32], index: 14, kind: output, shape index: {1}]  }
   0x1   :  { %v20_v0 = vstv %s3036_s12 }
   0x2   :  { %21 = vst [vmem:[#allocation4] sm:$0x1] %v20_v0 }
   0x3   :  { %22 = vsyncpa [#allocation6], 0 }
   0x4   :  { %23 = vsyncpa [#allocation9], 0 }
   0x5   :  { %24 = vsyncpa [#allocation7], 0  ;;  %s43_s17 = sshll.u32 %s3031_s7, 4  ;;  %s2262_s18 = smov [#allocation5]   ;;  %s44_s17 = int_to_ptr.hbm [resolvable:$true] %s43_s17 }
   0x6   :  { %s45_s19 = sshll.u32 %s2262_s18, 4  ;;  %s58_s22 = sshll.u32 %s3033_s9, 4  ;;  %s46_s19 = int_to_ptr.vmem [resolvable:$true] %s45_s19  ;;  %s59_s22 = int_to_ptr.hbm [resolvable:$true] %s58_s22 }
   0x7   :  { %s2263_s23 = smov 256   ;;  %s2264_s24 = smov 16  }
   0x8   :  { %51 = dma.hbm_to_vmem [thread:$0]  %s44_s17, 2048, %s46_s19, [#allocation6], %s2263_s23, %s2263_s23, %s2264_s24  }
   0x9   :  { %s2265_s12 = smov [#allocation8]   ;;  %s2266_s26 = smov 128  }
   0xa   :  { %s60_s25 = sshll.u32 %s2265_s12, 4  ;;  %s2267_s27 = smov 8   ;;  %s61_s25 = int_to_ptr.vmem [resolvable:$true] %s60_s25 }
   0xb   :  { %66 = dma.hbm_to_vmem [thread:$0]  %s59_s22, 512, %s61_s25, [#allocation9], %s2266_s26, %s2266_s26, %s2267_s27  }
   0xc   :  { %2256 = dma.done.wait [#allocation6], 2048  }
   0xd   :  { %2257 = vsyncadd [#allocation6], 4294965248 }
   0xe   :  { %2258 = dma.done.wait [#allocation9], 512  }
   0xf   :  { %2259 = vsyncadd [#allocation9], 4294966784  ;;  %v90_v1 = vld [vmem:[%s3025_s1 + $0x8] sm:$0xff]  ;;  %v89_v2 = vld [vmem:[%s3025_s1] sm:$0xff]  ;;  %vm95_vm0 = vcmask 130048   ;;  %vm193_vm2 = vcmask 261120  }
  0x10   :  { %134 = vmatpush.msra.mxu0 %v90_v1  ;;  %v81_v3 = vld [vmem:[%s3024_s0] sm:$0xff]  ;;  %v188_v4 = vld [vmem:[%s3027_s3 + $0x18] sm:$0xff]  ;;  %v82_v5 = vld [vmem:[%s3024_s0 + $0x8] sm:$0xff]  ;;  %v2268_v31 = vmov 0.0   ;;  %vm259_vm5 = vcmask 785408   ;;  %s2270_s30 = smov 64  }
  0x11   :  { %230 = vmatpush.msra.mxu1 %v188_v4  ;;  %2010 = vmatpush.msra.mxu2 %v188_v4  ;;  %v83_v6 = vld [vmem:[%s3024_s0 + $0x10] sm:$0xff]  ;;  %v186_v8 = vld [vmem:[%s3027_s3 + $0x8] sm:$0xff]  ;;  %v185_v9 = vld [vmem:[%s3027_s3] sm:$0xff]  ;;  %s2271_s21 = smov 96   ;;  %s2272_s7 = smov [#allocation10]  }
  0x12   :  { %135 = vmatpush.msra.mxu0 %v89_v2  ;;  %2011 = vmatpush.msra.mxu3 %v188_v4  ;;  %v187_v7 = vld [vmem:[%s3027_s3 + $0x10] sm:$0xff]  ;;  %v2394_v11 = vld [vmem:[#allocation5 + $0x60] sm:$0xff]  ;;  %v2423_v18 = vld [vmem:[%s3026_s2] ss:$0 sm:$0xff]  ;;  %s1922_s2 = sshll.u32 %s2272_s7, 4  ;;  %s1924_s29 = sshll.u32 %s3038_s14, 4  ;;  %s1923_s2 = int_to_ptr.vmem [resolvable:$true] %s1922_s2  ;;  %s1925_s29 = int_to_ptr.hbm [resolvable:$true] %s1924_s29 }
  0x13   :  { %1940 = vmatmul.msk.f32.vlgmr.msra.gmra.mxu0 %vm95_vm0, %v81_v3  ;;  %231 = vmatpush.msra.mxu1 %v187_v7  ;;  %v2390_v10 = vld [vmem:[#allocation5 + $0x70] sm:$0xff]  ;;  %v2401_v13 = vld [vmem:[#allocation5 + $0x40] sm:$0xff]  ;;  %v2437_v32 = vld [vmem:[%s3028_s4] ss:$0 sm:$0xff]  ;;  %s2269_s4 = smov 32  }
  0x14   :  { %2012 = vmatpush.msra.mxu2 %v187_v7  ;;  %2013 = vmatpush.msra.mxu3 %v187_v7  ;;  %v2398_v12 = vld [vmem:[#allocation5 + $0x50] sm:$0xff]  ;;  %v2408_v15 = vld [vmem:[#allocation5 + $0x20] sm:$0xff]  ;;  %v2464_v61 = vld [vmem:[#allocation5 + $0x78] sm:$0xff] }
  0x15   :  { %232 = vmatpush.msra.mxu1 %v186_v8  ;;  %v2406_v14 = vld [vmem:[#allocation5 + $0x30] sm:$0xff]  ;;  %v2416_v17 = vld [vmem:[#allocation5] sm:$0xff]  ;;  %v2466_v62 = vld [vmem:[#allocation5 + $0x68] sm:$0xff]  ;;  %331 = vmatpush.msrb.mxu0 %v2464_v61 }
  0x16   :  { %2014 = vmatpush.msra.mxu2 %v186_v8  ;;  %2015 = vmatpush.msra.mxu3 %v186_v8  ;;  %v2412_v16 = vld [vmem:[#allocation5 + $0x10] sm:$0xff]  ;;  %v2447_v39 = vld [vmem:[%s3032_s8] sm:$0x3]  ;;  %v86_v1 = vld [vmem:[%s3024_s0 + $0x28] sm:$0xff] }
  0x17   :  { %233 = vmatpush.msra.mxu1 %v185_v9  ;;  %v2451_v40 = vperm.slane %v2447_v39, 0  ;;  %v84_v60 = vld [vmem:[%s3024_s0 + $0x18] sm:$0xff]  ;;  %332 = vmatpush.msrb.mxu0 %v2466_v62  ;;  %v85_v0 = vld [vmem:[%s3024_s0 + $0x20] sm:$0xff]  ;;  %v87_v3 = vld [vmem:[%s3024_s0 + $0x30] sm:$0xff] }
  0x18   :  { %2016 = vmatpush.msra.mxu2 %v185_v9  ;;  %2017 = vmatpush.msra.mxu3 %v185_v9  ;;  %v2470_v63 = vld [vmem:[#allocation5 + $0x58] sm:$0xff]  ;;  %v2501_v9 = vld [vmem:[#allocation5 + $0x28] sm:$0xff] }
  0x19   :  { %876 = vmatpush.msrb.mxu1 %v2464_v61  ;;  %333 = vmatpush.msrb.mxu0 %v2470_v63  ;;  %v88_v7 = vld [vmem:[%s3024_s0 + $0x38] sm:$0xff] }
  0x1a   :  { %311 = vmatpush.msrb.mxu2 %v2390_v10  ;;  %492 = vmatpush.msrb.mxu3 %v2390_v10  ;;  %v2497_v8 = vld [vmem:[#allocation5 + $0x38] sm:$0xff] }
  0x1b   :  { %1941 = vmatmul.msk.f32.gmra.mxu0 %vm95_vm0, %v82_v5  ;;  %877 = vmatpush.msrb.mxu1 %v2466_v62 }
  0x1c   :  { %312 = vmatpush.msrb.mxu2 %v2394_v11  ;;  %493 = vmatpush.msrb.mxu3 %v2394_v11 }
  0x1d   :  { %878 = vmatpush.msrb.mxu1 %v2470_v63 }
  0x1e   :  { %313 = vmatpush.msrb.mxu2 %v2398_v12  ;;  %494 = vmatpush.msrb.mxu3 %v2398_v12 }
  0x20   :  { %314 = vmatpush.msrb.mxu2 %v2401_v13  ;;  %495 = vmatpush.msrb.mxu3 %v2401_v13 }
  0x22   :  { %315 = vmatpush.msrb.mxu2 %v2406_v14  ;;  %496 = vmatpush.msrb.mxu3 %v2406_v14 }
  0x23   :  { %1942 = vmatmul.msk.f32.gmra.mxu0 %vm95_vm0, %v83_v6  ;;  %v2489_v6 = vld [vmem:[#allocation5 + $0x48] sm:$0xff] }
  0x24   :  { %316 = vmatpush.msrb.mxu2 %v2408_v15  ;;  %497 = vmatpush.msrb.mxu3 %v2408_v15 }
  0x25   :  { %334 = vmatpush.msrb.mxu0 %v2489_v6  ;;  %879 = vmatpush.msrb.mxu1 %v2489_v6 }
  0x26   :  { %317 = vmatpush.msrb.mxu2 %v2412_v16  ;;  %498 = vmatpush.msrb.mxu3 %v2412_v16 }
  0x27   :  { %335 = vmatpush.msrb.mxu0 %v2497_v8  ;;  %880 = vmatpush.msrb.mxu1 %v2497_v8 }
  0x28   :  { %318 = vmatpush.msrb.mxu2 %v2416_v17  ;;  %499 = vmatpush.msrb.mxu3 %v2416_v17 }
  0x29   :  { %336 = vmatpush.msrb.mxu0 %v2501_v9  ;;  %881 = vmatpush.msrb.mxu1 %v2501_v9 }
  0x2b   :  { %1943 = vmatmul.msk.f32.gmra.mxu0 %vm95_vm0, %v84_v60 }
  0x33   :  { %1944 = vmatmul.msk.f32.gmra.mxu0 %vm95_vm0, %v85_v0 }
  0x3b   :  { %1945 = vmatmul.msk.f32.gmra.mxu0 %vm95_vm0, %v86_v1 }
  0x43   :  { %1946 = vmatmul.msk.f32.gmra.mxu0 %vm95_vm0, %v87_v3 }
  0x4b   :  { %1947 = vmatmul.msk.f32.gmra.mxu0 %vm95_vm0, %v88_v7 }
  0x90   :  { %v137_v19 = vpop.f32.mrf.mxu0 }
  0x91   :  { %v138_v20 = vadd.f32 %v2423_v18, %v137_v19  ;;  %v2503_v19 = vld [vmem:[#allocation5 + $0x18] sm:$0xff] }
  0x92   :  { %337 = vmatpush.msrb.mxu0 %v2503_v19  ;;  %882 = vmatpush.msrb.mxu1 %v2503_v19 }
  0x93   :  { %v169_v21 = vmul.f32 0.01, %v138_v20  ;;  %vm161_vm1 = vcmp.gt.f32.partialorder %v138_v20, 0.0 }
  0x95   :  { %v177_v22 = vsel %vm161_vm1, %v138_v20, %v169_v21  ;;  %v2509_v20 = vld [vmem:[%s3029_s5 + $0x18] sm:$0xff]  ;;  %v2514_v21 = vld [vmem:[%s3029_s5 + $0x10] sm:$0xff] }
  0x96   :  { %1948 = vmatmul.msk.f32.vlgmr.msra.gmra.mxu1 %vm193_vm2, %v177_v22  ;;  %v2517_v22 = vld [vmem:[#allocation5 + $0x8] sm:$0xff] }
  0x97   :  { %338 = vmatpush.msrb.mxu0 %v2517_v22  ;;  %883 = vmatpush.msrb.mxu1 %v2517_v22 }
  0x98   :  { %v140_v23 = vpop.f32.mrf.mxu0  ;;  %339 = vmatmul.f32.vlgmr.msrb.gmra.mxu0 %v2268_v31 }
  0x99   :  { %v141_v24 = vadd.f32 %v2423_v18, %v140_v23  ;;  %v2524_v23 = vld [vmem:[%s3029_s5 + $0x8] sm:$0xff]  ;;  %856 = vmatpush.msra.mxu0 %v2390_v10  ;;  %1220 = vmatpush.msra.mxu1 %v2390_v10 }
  0x9b   :  { %v170_v25 = vmul.f32 0.01, %v141_v24  ;;  %vm162_vm3 = vcmp.gt.f32.partialorder %v141_v24, 0.0  ;;  %857 = vmatpush.msra.mxu0 %v2394_v11  ;;  %1221 = vmatpush.msra.mxu1 %v2394_v11 }
  0x9d   :  { %v178_v26 = vsel %vm162_vm3, %v141_v24, %v170_v25  ;;  %v2532_v24 = vld [vmem:[%s3029_s5] sm:$0xff]  ;;  %858 = vmatpush.msra.mxu0 %v2398_v12  ;;  %1222 = vmatpush.msra.mxu1 %v2398_v12 }
  0x9e   :  { %1949 = vmatmul.msk.f32.gmra.mxu1 %vm193_vm2, %v178_v26 }
  0x9f   :  { %859 = vmatpush.msra.mxu0 %v2401_v13  ;;  %1223 = vmatpush.msra.mxu1 %v2401_v13 }
  0xa0   :  { %v143_v27 = vpop.f32.mrf.mxu0 }
  0xa1   :  { %v144_v28 = vadd.f32 %v2423_v18, %v143_v27  ;;  %860 = vmatpush.msra.mxu0 %v2406_v14  ;;  %1224 = vmatpush.msra.mxu1 %v2406_v14 }
  0xa3   :  { %v171_v29 = vmul.f32 0.01, %v144_v28  ;;  %vm163_vm4 = vcmp.gt.f32.partialorder %v144_v28, 0.0  ;;  %861 = vmatpush.msra.mxu0 %v2408_v15  ;;  %1225 = vmatpush.msra.mxu1 %v2408_v15 }
  0xa5   :  { %v179_v30 = vsel %vm163_vm4, %v144_v28, %v171_v29  ;;  %862 = vmatpush.msra.mxu0 %v2412_v16  ;;  %1226 = vmatpush.msra.mxu1 %v2412_v16 }
  0xa6   :  { %1950 = vmatmul.msk.f32.vlgmr.msra.gmra.mxu2 %vm193_vm2, %v179_v30 }
  0xa7   :  { %399 = vmatpush.msra.mxu2 %v2509_v20  ;;  %863 = vmatpush.msra.mxu0 %v2416_v17 }
  0xa8   :  { %1227 = vmatpush.msra.mxu1 %v2416_v17  ;;  %v146_v30 = vpop.f32.mrf.mxu0 }
  0xa9   :  { %400 = vmatpush.msra.mxu2 %v2514_v21  ;;  %1126 = vmatpush.msrb.mxu0 %v2509_v20 }
  0xab   :  { %401 = vmatpush.msra.mxu2 %v2524_v23  ;;  %1127 = vmatpush.msrb.mxu0 %v2514_v21 }
  0xad   :  { %402 = vmatpush.msra.mxu2 %v2532_v24  ;;  %1128 = vmatpush.msrb.mxu0 %v2524_v23 }
  0xae   :  { %319 = vmatmul.f32.vlgmr.msrb.gmra.mxu2 %v2268_v31 }
  0xaf   :  { %512 = vmatpush.msrb.mxu2 %v2464_v61  ;;  %1129 = vmatpush.msrb.mxu0 %v2532_v24 }
  0xb0   :  { %v149_v31 = vpop.f32.mrf.mxu0 }
  0xb1   :  { %513 = vmatpush.msrb.mxu2 %v2466_v62 }
  0xb3   :  { %514 = vmatpush.msrb.mxu2 %v2470_v63 }
  0xb5   :  { %515 = vmatpush.msrb.mxu2 %v2489_v6 }
  0xb7   :  { %516 = vmatpush.msrb.mxu2 %v2497_v8 }
  0xb9   :  { %517 = vmatpush.msrb.mxu2 %v2501_v9 }
  0xbb   :  { %518 = vmatpush.msrb.mxu2 %v2503_v19 }
  0xbd   :  { %519 = vmatpush.msrb.mxu2 %v2517_v22 }
 0x113   :  { %v235_v33 = vpop.f32.mrf.mxu1 }
 0x114   :  { %v236_v34 = vadd.f32 %v2437_v32, %v235_v33  ;;  %v152_v33 = vpop.f32.mrf.mxu0 }
 0x116   :  { %260 = vst.msk [vmem:[#allocation2] sm:$0xff] %vm259_vm5, %v236_v34  ;;  %v147_v34 = vadd.f32 %v2423_v18, %v146_v30 }
 0x118   :  { %vm164_vm10 = vcmp.gt.f32.partialorder %v147_v34, 0.0 }
 0x11b   :  { %v238_v35 = vpop.f32.mrf.mxu1 }
 0x11c   :  { %v239_v36 = vadd.f32 %v2437_v32, %v238_v35  ;;  %v172_v35 = vmul.f32 0.01, %v147_v34 }
 0x11d   :  { %v298_v43 = vld [vmem:[#allocation2] sm:$0xff] }
 0x11e   :  { %261 = vst.msk [vmem:[#allocation2 + $0x8] sm:$0xff] %vm259_vm5, %v239_v36  ;;  %v150_v36 = vadd.f32 %v2423_v18, %v149_v31 }
 0x120   :  { %vm165_vm11 = vcmp.gt.f32.partialorder %v150_v36, 0.0 }
 0x129   :  { %v241_v37 = vpop.f32.mrf.mxu2 }
 0x12a   :  { %v242_v38 = vadd.f32 %v2437_v32, %v241_v37  ;;  %v155_v37 = vpop.f32.mrf.mxu0 }
 0x12c   :  { %262 = vst.msk [vmem:[#allocation2 + $0x10] sm:$0xff] %vm259_vm5, %v242_v38  ;;  %v180_v38 = vsel %vm164_vm10, %v147_v34, %v172_v35 }
 0x12d   :  { %1951 = vmatmul.msk.f32.vlgmr.msra.gmra.mxu3 %vm193_vm2, %v180_v38 }
 0x12e   :  { %580 = vmatpush.msra.mxu3 %v2509_v20 }
 0x130   :  { %581 = vmatpush.msra.mxu3 %v2514_v21 }
 0x131   :  { %v320_v41 = vpop.f32.mrf.mxu2 }
 0x132   :  { %v321_v42 = vadd.f32 %v320_v41, %v2451_v40  ;;  %v173_v41 = vmul.f32 0.01, %v150_v36  ;;  %582 = vmatpush.msra.mxu3 %v2524_v23 }
 0x134   :  { %407 = vrot.lane.b32.xlu2 %v321_v42, %s2269_s4  ;;  %364 = vrot.lane.b32.xlu0 %v321_v42, %s2270_s30  ;;  %v343_v44 = vadd.f32 %v321_v42, %v298_v43  ;;  %v153_v42 = vadd.f32 %v2423_v18, %v152_v33 }
 0x135   :  { %583 = vmatpush.msra.mxu3 %v2532_v24 }
 0x136   :  { %v1956_v45 = vmul.f32 -1.442695, %v343_v44  ;;  %v158_v44 = vpop.f32.mrf.mxu0  ;;  %vm166_vm12 = vcmp.gt.f32.partialorder %v153_v42, 0.0 }
 0x138   :  { %2035 = vpow2.f32 %v1956_v45  ;;  %v174_v45 = vmul.f32 0.01, %v153_v42 }
 0x13e   :  { %v2036_v46 = vpop.eup %2035 }
 0x13f   :  { %v347_v47 = vadd.f32 1.0, %v2036_v46  ;;  %v2582_v46 = vperm.slane %v2447_v39, 1 }
 0x141   :  { %2037 = vrcp.f32 %v347_v47  ;;  %v359_v53 = vand.u32 2147483648, %v347_v47  ;;  %vm353_vm7 = vweird.f32 %v347_v47  ;;  %v357_v54 = vand.u32 2147483647, %v347_v47 }
 0x143   :  { %v360_v56 = vor.u32 1.1754944e-38, %v359_v53  ;;  %vm358_vm9 = vcmp.eq.f32.partialorder %v357_v54, 8.507059e+37 }
 0x147   :  { %v2038_v48 = vpop.eup %2037 }
 0x148   :  { %v349_v49 = vmul.f32 %v2038_v48, %v347_v47  ;;  %vm354_vm6 = vweird.f32 %v2038_v48  ;;  %v156_v47 = vadd.f32 %v2423_v18, %v155_v37 }
 0x149   :  { %vm355_vm8 = vmor %vm353_vm7, %vm354_vm6 }
 0x14a   :  { %v350_v50 = vsub.f32 1.0, %v349_v49  ;;  %v340_v49 = vpop.f32.mrf.mxu0  ;;  %vm167_vm13 = vcmp.gt.f32.partialorder %v156_v47, 0.0 }
 0x14c   :  { %v351_v51 = vmul.f32 %v2038_v48, %v350_v50  ;;  %v341_v50 = vadd.f32 %v340_v49, %v2582_v46 }
 0x14e   :  { %v352_v52 = vadd.f32 %v2038_v48, %v351_v51  ;;  %v175_v51 = vmul.f32 0.01, %v156_v47  ;;  %454 = vrot.lane.b32.xlu2 %v341_v50, %s2271_s21 }
 0x150   :  { %v356_v55 = vsel %vm355_vm8, %v2038_v48, %v352_v52  ;;  %v182_v48 = vsel %vm166_vm12, %v153_v42, %v174_v45  ;;  %v159_v52 = vadd.f32 %v2423_v18, %v158_v44  ;;  %v183_v53 = vsel %vm167_vm13, %v156_v47, %v175_v51  ;;  %v2607_v18 = vld [vmem:[%s3030_s6] ss:$0 sm:$0xff] }
 0x151   :  { %v2456_v58 = vsel %vm358_vm9, %v360_v56, %v356_v55  ;;  %vm299_vm8 = vcmask 523264  }
 0x152   :  { %v374_v25 = vsub.f32 1.0, %v2456_v58  ;;  %v380_v27 = vmul.f32 0.0, %v2456_v58  ;;  %v176_v39 = vmul.f32 0.01, %v159_v52  ;;  %vm168_vm14 = vcmp.gt.f32.partialorder %v159_v52, 0.0 }
 0x154   :  { %v184_v55 = vsel %vm168_vm14, %v159_v52, %v176_v39 }
 0x1a6   :  { %v365_v57 = vpop.permute.xlu0 %364 }
 0x1a7   :  { %v367_v59 = vmul.f32 %v365_v57, %v2456_v58 }
 0x1a9   :  { %369 = vrot.lane.b32.xlu0 %v367_v59, %s2270_s30  ;;  %v408_v59 = vpop.permute.xlu2 %407 }
 0x1b0   :  { %v244_v58 = vpop.f32.mrf.mxu3 }
 0x1b1   :  { %v245_v60 = vadd.f32 %v2437_v32, %v244_v58  ;;  %v455_v37 = vpop.permute.xlu2 %454 }
 0x1b3   :  { %263 = vst.msk [vmem:[#allocation2 + $0x18] sm:$0xff] %vm259_vm5, %v245_v60 }
 0x21b   :  { %v370_v2 = vpop.permute.xlu0 %369 }
 0x21c   :  { %v372_v4 = vadd.f32 %v370_v2, %v298_v43  ;;  %v181_v43 = vsel %vm165_vm11, %v150_v36, %v173_v41 }
 0x21d   :  { %1952 = vmatmul.msk.f32.gmra.mxu3 %vm193_vm2, %v181_v43 }
 0x21e   :  { %2039 = vtanh.f32 %v372_v4 }
 0x224   :  { %v2040_v5 = vpop.eup %2039 }
 0x225   :  { %376 = vrot.lane.b32.xlu1 %v2040_v5, %s2271_s21  ;;  %1953 = vmatmul.msk.f32.gmra.mxu3 %vm193_vm2, %v182_v48 }
 0x22d   :  { %1954 = vmatmul.msk.f32.gmra.mxu3 %vm193_vm2, %v183_v53 }
 0x235   :  { %1955 = vmatmul.msk.f32.gmra.mxu3 %vm193_vm2, %v184_v55 }
 0x297   :  { %v377_v26 = vpop.permute.xlu1 %376 }
 0x298   :  { %v379_v28 = vmul.f32 %v377_v26, %v374_v25 }
 0x29a   :  { %v2568_v29 = vadd.f32 %v380_v27, %v379_v28 }
 0x29c   :  { %383 = vrot.lane.b32.xlu1 %v2568_v29, %s2271_s21 }
 0x2a0   :  { %v247_v2 = vpop.f32.mrf.mxu3 }
 0x2a1   :  { %v248_v3 = vadd.f32 %v2437_v32, %v247_v2 }
 0x2a3   :  { %264 = vst.msk [vmem:[#allocation2 + $0x20] sm:$0xff] %vm259_vm5, %v248_v3 }
 0x2a4   :  { %431 = vrot.lane.b32.xlu1 %v341_v50, %s2269_s4 }
 0x2a8   :  { %v250_v7 = vpop.f32.mrf.mxu3 }
 0x2a9   :  { %v251_v25 = vadd.f32 %v2437_v32, %v250_v7 }
 0x2ab   :  { %265 = vst.msk [vmem:[#allocation2 + $0x28] sm:$0xff] %vm259_vm5, %v251_v25 }
 0x2b0   :  { %v253_v30 = vpop.f32.mrf.mxu3 }
 0x2b1   :  { %v254_v33 = vadd.f32 %v2437_v32, %v253_v30 }
 0x2b3   :  { %266 = vst.msk [vmem:[#allocation2 + $0x30] sm:$0xff] %vm259_vm5, %v254_v33 }
 0x2b8   :  { %v256_v44 = vpop.f32.mrf.mxu3 }
 0x2b9   :  { %v257_v45 = vadd.f32 %v2437_v32, %v256_v44 }
 0x2bb   :  { %267 = vst.msk [vmem:[#allocation2 + $0x38] sm:$0xff] %vm259_vm5, %v257_v45 }
 0x30e   :  { %v2591_v54 = vpop.permute.xlu1 %383 }
 0x30f   :  { %1957 = vmatmul.msk.f32.vlgmr.msra.gmra.mxu2 %vm193_vm2, %v2591_v54 }
 0x310   :  { %674 = vmatpush.msra.mxu2 %v2390_v10 }
 0x312   :  { %675 = vmatpush.msra.mxu2 %v2394_v11 }
 0x314   :  { %676 = vmatpush.msra.mxu2 %v2398_v12 }
 0x316   :  { %677 = vmatpush.msra.mxu2 %v2401_v13  ;;  %v432_v50 = vpop.permute.xlu1 %431 }
 0x318   :  { %678 = vmatpush.msra.mxu2 %v2406_v14 }
 0x31a   :  { %679 = vmatpush.msra.mxu2 %v2408_v15 }
 0x31c   :  { %680 = vmatpush.msra.mxu2 %v2412_v16 }
 0x31e   :  { %681 = vmatpush.msra.mxu2 %v2416_v17 }
 0x392   :  { %v404_v56 = vpop.f32.mrf.mxu2 }
 0x393   :  { %v405_v57 = vadd.f32 %v2607_v18, %v404_v56 }
 0x395   :  { %v410_v0 = vadd.f32 %v408_v59, %v405_v57  ;;  %v434_v51 = vadd.f32 %v432_v50, %v405_v57 }
 0x397   :  { %v1958_v1 = vmul.f32 -1.442695, %v410_v0  ;;  %v1959_v52 = vmul.f32 -1.442695, %v434_v51 }
 0x399   :  { %2041 = vpow2.f32 %v1958_v1 }
 0x39f   :  { %v2042_v4 = vpop.eup %2041 }
 0x3a0   :  { %v414_v5 = vadd.f32 1.0, %v2042_v4 }
 0x3a2   :  { %2043 = vrcp.f32 %v414_v5  ;;  %v426_v31 = vand.u32 2147483648, %v414_v5  ;;  %v424_v35 = vand.u32 2147483647, %v414_v5  ;;  %vm420_vm0 = vweird.f32 %v414_v5 }
 0x3a4   :  { %v427_v38 = vor.u32 1.1754944e-38, %v426_v31  ;;  %vm425_vm3 = vcmp.eq.f32.partialorder %v424_v35, 8.507059e+37 }
 0x3a8   :  { %v2044_v26 = vpop.eup %2043 }
 0x3a9   :  { %v416_v27 = vmul.f32 %v2044_v26, %v414_v5  ;;  %vm421_vm15 = vweird.f32 %v2044_v26 }
 0x3aa   :  { %vm422_vm1 = vmor %vm420_vm0, %vm421_vm15 }
 0x3ab   :  { %v417_v28 = vsub.f32 1.0, %v416_v27 }
 0x3ad   :  { %v418_v34 = vmul.f32 %v2044_v26, %v417_v28  ;;  %v478_v28 = vld [vmem:[#allocation2 + $0x8] sm:$0xff] }
 0x3af   :  { %v419_v36 = vadd.f32 %v2044_v26, %v418_v34 }
 0x3b1   :  { %v423_v41 = vsel %vm422_vm1, %v2044_v26, %v419_v36 }
 0x3b2   :  { %v428_v42 = vsel %vm425_vm3, %v427_v38, %v423_v41 }
 0x3b3   :  { %v457_v43 = vmul.f32 %v455_v37, %v428_v42 }
 0x3b5   :  { %459 = vrot.lane.b32.xlu0 %v457_v43, %s2270_s30 }
 0x427   :  { %v460_v47 = vpop.permute.xlu0 %459 }
 0x428   :  { %v462_v48 = vadd.f32 %v460_v47, %v405_v57 }
 0x42a   :  { %2045 = vtanh.f32 %v462_v48 }
 0x42b   :  { %2047 = vpow2.f32 %v1959_v52 }
 0x430   :  { %v2046_v49 = vpop.eup %2045 }
 0x431   :  { %466 = vrot.lane.b32.xlu2 %v2046_v49, %s2271_s21  ;;  %v2048_v53 = vpop.eup %2047 }
 0x432   :  { %v438_v39 = vadd.f32 1.0, %v2048_v53 }
 0x434   :  { %2049 = vrcp.f32 %v438_v39  ;;  %v450_v60 = vand.u32 2147483648, %v438_v39  ;;  %vm444_vm5 = vweird.f32 %v438_v39  ;;  %v448_v0 = vand.u32 2147483647, %v438_v39 }
 0x436   :  { %v451_v2 = vor.u32 1.1754944e-38, %v450_v60  ;;  %vm449_vm7 = vcmp.eq.f32.partialorder %v448_v0, 8.507059e+37 }
 0x43a   :  { %v2050_v55 = vpop.eup %2049 }
 0x43b   :  { %v440_v56 = vmul.f32 %v2050_v55, %v438_v39  ;;  %vm445_vm4 = vweird.f32 %v2050_v55 }
 0x43c   :  { %vm446_vm6 = vmor %vm444_vm5, %vm445_vm4 }
 0x43d   :  { %v441_v32 = vsub.f32 1.0, %v440_v56 }
 0x43f   :  { %v442_v58 = vmul.f32 %v2050_v55, %v441_v32 }
 0x441   :  { %v443_v59 = vadd.f32 %v2050_v55, %v442_v58 }
 0x443   :  { %v447_v1 = vsel %vm446_vm6, %v2050_v55, %v443_v59 }
 0x444   :  { %v452_v3 = vsel %vm449_vm7, %v451_v2, %v447_v1 }
 0x445   :  { %v464_v57 = vsub.f32 1.0, %v452_v3  ;;  %v470_v7 = vmul.f32 0.0, %v452_v3 }
 0x48b   :  { %v467_v4 = vpop.permute.xlu2 %466 }
 0x48c   :  { %v469_v5 = vmul.f32 %v467_v4, %v464_v57 }
 0x48e   :  { %v2622_v25 = vadd.f32 %v470_v7, %v469_v5 }
 0x490   :  { %v480_v26 = vsel %vm193_vm2, %v2591_v54, %v2622_v25 }
 0x491   :  { %1960 = vmatmul.msk.f32.vlgmr.msrb.gmra.mxu3 %vm299_vm8, %v480_v26  ;;  %1961 = vmatmul.msk.f32.vlgmr.msrb.gmra.mxu2 %vm299_vm8, %v480_v26 }
 0x492   :  { %694 = vmatpush.msrb.mxu3 %v2464_v61  ;;  %762 = vmatpush.msrb.mxu2 %v2509_v20 }
 0x494   :  { %695 = vmatpush.msrb.mxu3 %v2466_v62  ;;  %763 = vmatpush.msrb.mxu2 %v2514_v21 }
 0x496   :  { %696 = vmatpush.msrb.mxu3 %v2470_v63  ;;  %764 = vmatpush.msrb.mxu2 %v2524_v23 }
 0x498   :  { %697 = vmatpush.msrb.mxu3 %v2489_v6  ;;  %765 = vmatpush.msrb.mxu2 %v2532_v24 }
 0x49a   :  { %698 = vmatpush.msrb.mxu3 %v2497_v8 }
 0x49c   :  { %699 = vmatpush.msrb.mxu3 %v2501_v9 }
 0x49e   :  { %700 = vmatpush.msrb.mxu3 %v2503_v19 }
 0x4a0   :  { %701 = vmatpush.msrb.mxu3 %v2517_v22 }
 0x514   :  { %v501_v54 = vpop.f32.mrf.mxu3  ;;  %v521_v50 = vpop.f32.mrf.mxu2 }
 0x515   :  { %v502_v27 = vadd.f32 %v501_v54, %v2451_v40  ;;  %v522_v51 = vadd.f32 %v521_v50, %v2582_v46 }
 0x517   :  { %545 = vrot.lane.b32.xlu0 %v502_v27, %s2270_s30  ;;  %v524_v30 = vadd.f32 %v502_v27, %v478_v28 }
 0x519   :  { %v1962_v31 = vmul.f32 -1.442695, %v524_v30 }
 0x51b   :  { %2051 = vpow2.f32 %v1962_v31 }
 0x521   :  { %v2052_v33 = vpop.eup %2051 }
 0x522   :  { %v528_v34 = vadd.f32 1.0, %v2052_v33 }
 0x524   :  { %2053 = vrcp.f32 %v528_v34  ;;  %v540_v42 = vand.u32 2147483648, %v528_v34  ;;  %vm534_vm10 = vweird.f32 %v528_v34  ;;  %v538_v43 = vand.u32 2147483647, %v528_v34 }
 0x526   :  { %v541_v45 = vor.u32 1.1754944e-38, %v540_v42  ;;  %vm539_vm12 = vcmp.eq.f32.partialorder %v538_v43, 8.507059e+37 }
 0x52a   :  { %v2054_v35 = vpop.eup %2053 }
 0x52b   :  { %v530_v36 = vmul.f32 %v2054_v35, %v528_v34  ;;  %vm535_vm9 = vweird.f32 %v2054_v35 }
 0x52c   :  { %vm536_vm11 = vmor %vm534_vm10, %vm535_vm9 }
 0x52d   :  { %v531_v37 = vsub.f32 1.0, %v530_v36 }
 0x52f   :  { %v532_v38 = vmul.f32 %v2054_v35, %v531_v37 }
 0x531   :  { %v533_v41 = vadd.f32 %v2054_v35, %v532_v38 }
 0x533   :  { %v537_v44 = vsel %vm536_vm11, %v2054_v35, %v533_v41 }
 0x534   :  { %v542_v48 = vsel %vm539_vm12, %v541_v45, %v537_v44 }
 0x535   :  { %v555_v55 = vsub.f32 1.0, %v542_v48  ;;  %v561_v32 = vmul.f32 %v542_v48, %v2568_v29 }
 0x589   :  { %v546_v47 = vpop.permute.xlu0 %545 }
 0x58a   :  { %v548_v49 = vmul.f32 %v546_v47, %v542_v48 }
 0x58c   :  { %550 = vrot.lane.b32.xlu1 %v548_v49, %s2270_s30 }
 0x594   :  { %588 = vrot.lane.b32.xlu1 %v502_v27, %s2269_s4 }
 0x59c   :  { %612 = vrot.lane.b32.xlu1 %v522_v51, %s2269_s4 }
 0x5fe   :  { %v551_v52 = vpop.permute.xlu1 %550 }
 0x5ff   :  { %v553_v53 = vadd.f32 %v551_v52, %v478_v28 }
 0x601   :  { %2055 = vtanh.f32 %v553_v53 }
 0x606   :  { %v589_v1 = vpop.permute.xlu1 %588 }
 0x607   :  { %v2056_v39 = vpop.eup %2055 }
 0x608   :  { %557 = vrot.lane.b32.xlu2 %v2056_v39, %s2271_s21 }
 0x60e   :  { %v613_v42 = vpop.permute.xlu1 %612 }
 0x610   :  { %635 = vrot.lane.b32.xlu2 %v522_v51, %s2271_s21 }
 0x662   :  { %v558_v56 = vpop.permute.xlu2 %557 }
 0x663   :  { %v560_v58 = vmul.f32 %v558_v56, %v555_v55 }
 0x665   :  { %v2650_v59 = vadd.f32 %v561_v32, %v560_v58 }
 0x667   :  { %564 = vrot.lane.b32.xlu0 %v2650_v59, %s2271_s21 }
 0x66a   :  { %v636_v34 = vpop.permute.xlu2 %635 }
 0x6d9   :  { %v2654_v60 = vpop.permute.xlu0 %564 }
 0x6da   :  { %1963 = vmatmul.msk.f32.vlgmr.msra.gmra.mxu3 %vm193_vm2, %v2654_v60 }
 0x6db   :  { %944 = vmatpush.msra.mxu3 %v2509_v20 }
 0x6dd   :  { %945 = vmatpush.msra.mxu3 %v2514_v21 }
 0x6df   :  { %946 = vmatpush.msra.mxu3 %v2524_v23 }
 0x6e1   :  { %947 = vmatpush.msra.mxu3 %v2532_v24 }
 0x75d   :  { %v585_v29 = vpop.f32.mrf.mxu3 }
 0x75e   :  { %v586_v0 = vadd.f32 %v2607_v18, %v585_v29 }
 0x760   :  { %v591_v2 = vadd.f32 %v589_v1, %v586_v0  ;;  %v615_v43 = vadd.f32 %v613_v42, %v586_v0 }
 0x762   :  { %v1964_v3 = vmul.f32 -1.442695, %v591_v2  ;;  %v1965_v44 = vmul.f32 -1.442695, %v615_v43 }
 0x764   :  { %2057 = vpow2.f32 %v1964_v3 }
 0x76a   :  { %v2058_v57 = vpop.eup %2057 }
 0x76b   :  { %v595_v4 = vadd.f32 1.0, %v2058_v57 }
 0x76d   :  { %2059 = vrcp.f32 %v595_v4  ;;  %v607_v54 = vand.u32 2147483648, %v595_v4  ;;  %v605_v28 = vand.u32 2147483647, %v595_v4  ;;  %vm601_vm14 = vweird.f32 %v595_v4 }
 0x76f   :  { %v608_v31 = vor.u32 1.1754944e-38, %v607_v54  ;;  %vm606_vm0 = vcmp.eq.f32.partialorder %v605_v28, 8.507059e+37 }
 0x773   :  { %v2060_v5 = vpop.eup %2059 }
 0x774   :  { %v597_v7 = vmul.f32 %v2060_v5, %v595_v4  ;;  %vm602_vm13 = vweird.f32 %v2060_v5 }
 0x775   :  { %vm603_vm15 = vmor %vm601_vm14, %vm602_vm13 }
 0x776   :  { %v598_v26 = vsub.f32 1.0, %v597_v7 }
 0x778   :  { %v599_v27 = vmul.f32 %v2060_v5, %v598_v26 }
 0x77a   :  { %v600_v30 = vadd.f32 %v2060_v5, %v599_v27 }
 0x77c   :  { %v604_v33 = vsel %vm603_vm15, %v2060_v5, %v600_v30 }
 0x77d   :  { %v609_v35 = vsel %vm606_vm0, %v608_v31, %v604_v33 }
 0x77e   :  { %v638_v36 = vmul.f32 %v636_v34, %v609_v35 }
 0x780   :  { %640 = vrot.lane.b32.xlu0 %v638_v36, %s2270_s30 }
 0x7f2   :  { %v641_v37 = vpop.permute.xlu0 %640 }
 0x7f3   :  { %v643_v38 = vadd.f32 %v641_v37, %v586_v0 }
 0x7f5   :  { %2061 = vtanh.f32 %v643_v38 }
 0x7f6   :  { %2063 = vpow2.f32 %v1965_v44 }
 0x7fb   :  { %v2062_v41 = vpop.eup %2061 }
 0x7fc   :  { %647 = vrot.lane.b32.xlu2 %v2062_v41, %s2271_s21  ;;  %v2064_v45 = vpop.eup %2063 }
 0x7fd   :  { %v619_v47 = vadd.f32 1.0, %v2064_v45 }
 0x7ff   :  { %2065 = vrcp.f32 %v619_v47  ;;  %v631_v53 = vand.u32 2147483648, %v619_v47  ;;  %vm625_vm3 = vweird.f32 %v619_v47  ;;  %v629_v39 = vand.u32 2147483647, %v619_v47 }
 0x801   :  { %v632_v56 = vor.u32 1.1754944e-38, %v631_v53  ;;  %vm630_vm5 = vcmp.eq.f32.partialorder %v629_v39, 8.507059e+37 }
 0x805   :  { %v2066_v48 = vpop.eup %2065 }
 0x806   :  { %v621_v49 = vmul.f32 %v2066_v48, %v619_v47  ;;  %vm626_vm1 = vweird.f32 %v2066_v48 }
 0x807   :  { %vm627_vm4 = vmor %vm625_vm3, %vm626_vm1 }
 0x808   :  { %v622_v50 = vsub.f32 1.0, %v621_v49 }
 0x80a   :  { %v623_v51 = vmul.f32 %v2066_v48, %v622_v50 }
 0x80c   :  { %v624_v52 = vadd.f32 %v2066_v48, %v623_v51 }
 0x80e   :  { %v628_v55 = vsel %vm627_vm4, %v2066_v48, %v624_v52 }
 0x80f   :  { %v633_v32 = vsel %vm630_vm5, %v632_v56, %v628_v55 }
 0x810   :  { %v645_v58 = vsub.f32 1.0, %v633_v32  ;;  %v651_v1 = vmul.f32 %v633_v32, %v2622_v25 }
 0x856   :  { %v648_v29 = vpop.permute.xlu2 %647 }
 0x857   :  { %v650_v0 = vmul.f32 %v648_v29, %v645_v58 }
 0x859   :  { %v2666_v2 = vadd.f32 %v651_v1, %v650_v0 }
 0x85b   :  { %v662_v3 = vsel %vm193_vm2, %v2654_v60, %v2666_v2 }
 0x85c   :  { %1966 = vmatmul.msk.f32.vlgmr.msra.gmra.mxu2 %vm299_vm8, %v662_v3  ;;  %1967 = vmatmul.msk.f32.vlgmr.msrb.gmra.mxu3 %vm299_vm8, %v662_v3 }
 0x85d   :  { %1038 = vmatpush.msra.mxu2 %v2390_v10  ;;  %1058 = vmatpush.msrb.mxu3 %v2464_v61 }
 0x85f   :  { %1039 = vmatpush.msra.mxu2 %v2394_v11  ;;  %1059 = vmatpush.msrb.mxu3 %v2466_v62 }
 0x861   :  { %1040 = vmatpush.msra.mxu2 %v2398_v12  ;;  %1060 = vmatpush.msrb.mxu3 %v2470_v63  ;;  %v660_v12 = vld [vmem:[#allocation2 + $0x10] sm:$0xff] }
 0x863   :  { %1041 = vmatpush.msra.mxu2 %v2401_v13  ;;  %1061 = vmatpush.msrb.mxu3 %v2489_v6 }
 0x865   :  { %1042 = vmatpush.msra.mxu2 %v2406_v14  ;;  %1062 = vmatpush.msrb.mxu3 %v2497_v8 }
 0x867   :  { %1043 = vmatpush.msra.mxu2 %v2408_v15  ;;  %1063 = vmatpush.msrb.mxu3 %v2501_v9 }
 0x869   :  { %1044 = vmatpush.msra.mxu2 %v2412_v16  ;;  %1064 = vmatpush.msrb.mxu3 %v2503_v19 }
 0x86b   :  { %1045 = vmatpush.msra.mxu2 %v2416_v17  ;;  %1065 = vmatpush.msrb.mxu3 %v2517_v22 }
 0x8df   :  { %v683_v10 = vpop.f32.mrf.mxu2  ;;  %v703_v33 = vpop.f32.mrf.mxu3 }
 0x8e0   :  { %v684_v11 = vadd.f32 %v683_v10, %v2451_v40  ;;  %v704_v34 = vadd.f32 %v703_v33, %v2582_v46 }
 0x8e2   :  { %727 = vrot.lane.b32.xlu0 %v684_v11, %s2270_s30  ;;  %v706_v13 = vadd.f32 %v684_v11, %v660_v12 }
 0x8e4   :  { %v1968_v14 = vmul.f32 -1.442695, %v706_v13 }
 0x8e6   :  { %2067 = vpow2.f32 %v1968_v14 }
 0x8ec   :  { %v2068_v15 = vpop.eup %2067 }
 0x8ed   :  { %v710_v60 = vadd.f32 1.0, %v2068_v15 }
 0x8ef   :  { %2069 = vrcp.f32 %v710_v60  ;;  %v722_v17 = vand.u32 2147483648, %v710_v60  ;;  %vm716_vm7 = vweird.f32 %v710_v60  ;;  %v720_v26 = vand.u32 2147483647, %v710_v60 }
 0x8f1   :  { %v723_v27 = vor.u32 1.1754944e-38, %v722_v17  ;;  %vm721_vm10 = vcmp.eq.f32.partialorder %v720_v26, 8.507059e+37 }
 0x8f5   :  { %v2070_v57 = vpop.eup %2069 }
 0x8f6   :  { %v712_v16 = vmul.f32 %v2070_v57, %v710_v60  ;;  %vm717_vm6 = vweird.f32 %v2070_v57 }
 0x8f7   :  { %vm718_vm9 = vmor %vm716_vm7, %vm717_vm6 }
 0x8f8   :  { %v713_v4 = vsub.f32 1.0, %v712_v16 }
 0x8fa   :  { %v714_v5 = vmul.f32 %v2070_v57, %v713_v4 }
 0x8fc   :  { %v715_v7 = vadd.f32 %v2070_v57, %v714_v5 }
 0x8fe   :  { %v719_v54 = vsel %vm718_vm9, %v2070_v57, %v715_v7 }
 0x8ff   :  { %v724_v30 = vsel %vm721_vm10, %v723_v27, %v719_v54 }
 0x900   :  { %v737_v38 = vsub.f32 1.0, %v724_v30  ;;  %v743_v42 = vmul.f32 %v724_v30, %v2650_v59 }
 0x954   :  { %v728_v28 = vpop.permute.xlu0 %727 }
 0x955   :  { %v730_v31 = vmul.f32 %v728_v28, %v724_v30 }
 0x957   :  { %732 = vrot.lane.b32.xlu1 %v730_v31, %s2270_s30 }
 0x95f   :  { %770 = vrot.lane.b32.xlu1 %v684_v11, %s2269_s4 }
 0x967   :  { %794 = vrot.lane.b32.xlu1 %v704_v34, %s2269_s4 }
 0x9c9   :  { %v733_v35 = vpop.permute.xlu1 %732 }
 0x9ca   :  { %v735_v36 = vadd.f32 %v733_v35, %v660_v12 }
 0x9cc   :  { %2071 = vtanh.f32 %v735_v36 }
 0x9d1   :  { %v771_v48 = vpop.permute.xlu1 %770 }
 0x9d2   :  { %v2072_v37 = vpop.eup %2071 }
 0x9d3   :  { %739 = vrot.lane.b32.xlu2 %v2072_v37, %s2271_s21 }
 0x9d9   :  { %v795_v11 = vpop.permute.xlu1 %794 }
 0x9db   :  { %817 = vrot.lane.b32.xlu2 %v704_v34, %s2271_s21 }
 0xa2d   :  { %v740_v41 = vpop.permute.xlu2 %739 }
 0xa2e   :  { %v742_v43 = vmul.f32 %v740_v41, %v737_v38 }
 0xa30   :  { %v2698_v44 = vadd.f32 %v743_v42, %v742_v43 }
 0xa32   :  { %746 = vrot.lane.b32.xlu0 %v2698_v44, %s2271_s21 }
 0xa35   :  { %v818_v58 = vpop.permute.xlu2 %817 }
 0xaa4   :  { %v2702_v45 = vpop.permute.xlu0 %746 }
 0xaa5   :  { %1969 = vmatmul.msk.f32.vlgmr.msrb.gmra.mxu2 %vm193_vm2, %v2702_v45 }
 0xaa6   :  { %1308 = vmatpush.msrb.mxu2 %v2509_v20 }
 0xaa8   :  { %1309 = vmatpush.msrb.mxu2 %v2514_v21 }
 0xaaa   :  { %1310 = vmatpush.msrb.mxu2 %v2524_v23 }
 0xaac   :  { %1311 = vmatpush.msrb.mxu2 %v2532_v24 }
 0xb28   :  { %v767_v59 = vpop.f32.mrf.mxu2 }
 0xb29   :  { %v768_v47 = vadd.f32 %v2607_v18, %v767_v59 }
 0xb2b   :  { %v773_v49 = vadd.f32 %v771_v48, %v768_v47  ;;  %v797_v12 = vadd.f32 %v795_v11, %v768_v47 }
 0xb2d   :  { %v1970_v50 = vmul.f32 -1.442695, %v773_v49  ;;  %v1971_v13 = vmul.f32 -1.442695, %v797_v12 }
 0xb2f   :  { %2073 = vpow2.f32 %v1970_v50 }
 0xb35   :  { %v2074_v51 = vpop.eup %2073 }
 0xb36   :  { %v777_v52 = vadd.f32 1.0, %v2074_v51 }
 0xb38   :  { %2075 = vrcp.f32 %v777_v52  ;;  %v789_v20 = vand.u32 2147483648, %v777_v52  ;;  %v787_v21 = vand.u32 2147483647, %v777_v52  ;;  %vm783_vm12 = vweird.f32 %v777_v52 }
 0xb3a   :  { %v790_v24 = vor.u32 1.1754944e-38, %v789_v20  ;;  %vm788_vm14 = vcmp.eq.f32.partialorder %v787_v21, 8.507059e+37 }
 0xb3e   :  { %v2076_v53 = vpop.eup %2075 }
 0xb3f   :  { %v779_v39 = vmul.f32 %v2076_v53, %v777_v52  ;;  %vm784_vm11 = vweird.f32 %v2076_v53 }
 0xb40   :  { %vm785_vm13 = vmor %vm783_vm12, %vm784_vm11 }
 0xb41   :  { %v780_v55 = vsub.f32 1.0, %v779_v39 }
 0xb43   :  { %v781_v56 = vmul.f32 %v2076_v53, %v780_v55 }
 0xb45   :  { %v782_v23 = vadd.f32 %v2076_v53, %v781_v56 }
 0xb47   :  { %v786_v32 = vsel %vm785_vm13, %v2076_v53, %v782_v23 }
 0xb48   :  { %v791_v29 = vsel %vm788_vm14, %v790_v24, %v786_v32  ;;  %v2754_v32 = vld [vmem:[#allocation5 + $0x70] sm:$0xff] }
 0xb49   :  { %v820_v0 = vmul.f32 %v818_v58, %v791_v29  ;;  %v2757_v58 = vld [vmem:[#allocation5 + $0x60] sm:$0xff] }
 0xb4a   :  { %v2763_v29 = vld [vmem:[#allocation5 + $0x40] sm:$0xff] }
 0xb4b   :  { %822 = vrot.lane.b32.xlu0 %v820_v0, %s2270_s30  ;;  %v2766_v0 = vld [vmem:[#allocation5 + $0x30] sm:$0xff] }
 0xbbd   :  { %v823_v1 = vpop.permute.xlu0 %822 }
 0xbbe   :  { %v825_v3 = vadd.f32 %v823_v1, %v768_v47  ;;  %v2769_v1 = vld [vmem:[#allocation5 + $0x20] sm:$0xff] }
 0xbc0   :  { %2077 = vtanh.f32 %v825_v3  ;;  %v2772_v3 = vld [vmem:[#allocation5 + $0x10] sm:$0xff] }
 0xbc1   :  { %2079 = vpow2.f32 %v1971_v13 }
 0xbc6   :  { %v2078_v10 = vpop.eup %2077 }
 0xbc7   :  { %829 = vrot.lane.b32.xlu2 %v2078_v10, %s2271_s21  ;;  %v2080_v14 = vpop.eup %2079  ;;  %v2775_v10 = vld [vmem:[#allocation5] sm:$0xff] }
 0xbc8   :  { %v801_v15 = vadd.f32 1.0, %v2080_v14 }
 0xbca   :  { %2081 = vrcp.f32 %v801_v15  ;;  %v813_v7 = vand.u32 2147483648, %v801_v15  ;;  %vm807_vm0 = vweird.f32 %v801_v15  ;;  %v811_v17 = vand.u32 2147483647, %v801_v15 }
 0xbcc   :  { %v814_v54 = vor.u32 1.1754944e-38, %v813_v7  ;;  %vm812_vm3 = vcmp.eq.f32.partialorder %v811_v17, 8.507059e+37 }
 0xbd0   :  { %v2082_v60 = vpop.eup %2081 }
 0xbd1   :  { %v803_v57 = vmul.f32 %v2082_v60, %v801_v15  ;;  %vm808_vm15 = vweird.f32 %v2082_v60 }
 0xbd2   :  { %vm809_vm1 = vmor %vm807_vm0, %vm808_vm15 }
 0xbd3   :  { %v804_v16 = vsub.f32 1.0, %v803_v57 }
 0xbd5   :  { %v805_v4 = vmul.f32 %v2082_v60, %v804_v16 }
 0xbd7   :  { %v806_v5 = vadd.f32 %v2082_v60, %v805_v4 }
 0xbd9   :  { %v810_v26 = vsel %vm809_vm1, %v2082_v60, %v806_v5 }
 0xbda   :  { %v815_v27 = vsel %vm812_vm3, %v814_v54, %v810_v26 }
 0xbdb   :  { %v827_v28 = vsub.f32 1.0, %v815_v27  ;;  %v833_v33 = vmul.f32 %v815_v27, %v2666_v2 }
 0xc21   :  { %v830_v30 = vpop.permute.xlu2 %829 }
 0xc22   :  { %v832_v31 = vmul.f32 %v830_v30, %v827_v28 }
 0xc24   :  { %v2714_v34 = vadd.f32 %v833_v33, %v832_v31 }
 0xc26   :  { %v844_v35 = vsel %vm193_vm2, %v2702_v45, %v2714_v34 }
 0xc27   :  { %1972 = vmatmul.msk.f32.vlgmr.msra.gmra.mxu0 %vm299_vm8, %v844_v35  ;;  %1973 = vmatmul.msk.f32.vlgmr.msrb.gmra.mxu1 %vm299_vm8, %v844_v35 }
 0xc28   :  { %1240 = vmatpush.msra.mxu0 %v2464_v61  ;;  %1422 = vmatpush.msrb.mxu1 %v2464_v61 }
 0xc2a   :  { %1241 = vmatpush.msra.mxu0 %v2466_v62  ;;  %1423 = vmatpush.msrb.mxu1 %v2466_v62 }
 0xc2c   :  { %1242 = vmatpush.msra.mxu0 %v2470_v63  ;;  %1424 = vmatpush.msrb.mxu1 %v2470_v63  ;;  %v842_v63 = vld [vmem:[#allocation2 + $0x18] sm:$0xff] }
 0xc2e   :  { %1243 = vmatpush.msra.mxu0 %v2489_v6  ;;  %1425 = vmatpush.msrb.mxu1 %v2489_v6 }
 0xc30   :  { %1244 = vmatpush.msra.mxu0 %v2497_v8  ;;  %1426 = vmatpush.msrb.mxu1 %v2497_v8 }
 0xc32   :  { %1245 = vmatpush.msra.mxu0 %v2501_v9  ;;  %1427 = vmatpush.msrb.mxu1 %v2501_v9 }
 0xc34   :  { %1246 = vmatpush.msra.mxu0 %v2503_v19  ;;  %1428 = vmatpush.msrb.mxu1 %v2503_v19 }
 0xc36   :  { %1247 = vmatpush.msra.mxu0 %v2517_v22  ;;  %1429 = vmatpush.msrb.mxu1 %v2517_v22 }
 0xca4   :  { %v865_v61 = vpop.f32.mrf.mxu0  ;;  %v885_v50 = vpop.f32.mrf.mxu1 }
 0xca5   :  { %v866_v62 = vadd.f32 %v865_v61, %v2451_v40  ;;  %v886_v51 = vadd.f32 %v885_v50, %v2582_v46 }
 0xca7   :  { %909 = vrot.lane.b32.xlu0 %v866_v62, %s2270_s30  ;;  %v888_v6 = vadd.f32 %v866_v62, %v842_v63 }
 0xca9   :  { %v1974_v8 = vmul.f32 -1.442695, %v888_v6 }
 0xcab   :  { %2083 = vpow2.f32 %v1974_v8 }
 0xcb1   :  { %v2084_v36 = vpop.eup %2083 }
 0xcb2   :  { %v892_v37 = vadd.f32 1.0, %v2084_v36 }
 0xcb4   :  { %2085 = vrcp.f32 %v892_v37  ;;  %v904_v43 = vand.u32 2147483648, %v892_v37  ;;  %vm898_vm5 = vweird.f32 %v892_v37  ;;  %v902_v22 = vand.u32 2147483647, %v892_v37 }
 0xcb6   :  { %v905_v59 = vor.u32 1.1754944e-38, %v904_v43  ;;  %vm903_vm7 = vcmp.eq.f32.partialorder %v902_v22, 8.507059e+37 }
 0xcba   :  { %v2086_v9 = vpop.eup %2085 }
 0xcbb   :  { %v894_v38 = vmul.f32 %v2086_v9, %v892_v37  ;;  %vm899_vm4 = vweird.f32 %v2086_v9 }
 0xcbc   :  { %vm900_vm6 = vmor %vm898_vm5, %vm899_vm4 }
 0xcbd   :  { %v895_v41 = vsub.f32 1.0, %v894_v38 }
 0xcbf   :  { %v896_v19 = vmul.f32 %v2086_v9, %v895_v41 }
 0xcc1   :  { %v897_v42 = vadd.f32 %v2086_v9, %v896_v19 }
 0xcc3   :  { %v901_v45 = vsel %vm900_vm6, %v2086_v9, %v897_v42 }
 0xcc4   :  { %v906_v48 = vsel %vm903_vm7, %v905_v59, %v901_v45 }
 0xcc5   :  { %v919_v55 = vsub.f32 1.0, %v906_v48  ;;  %v925_v56 = vmul.f32 %v906_v48, %v2698_v44  ;;  %v2760_v44 = vld [vmem:[#allocation5 + $0x50] sm:$0xff] }
 0xd19   :  { %v910_v47 = vpop.permute.xlu0 %909 }
 0xd1a   :  { %v912_v49 = vmul.f32 %v910_v47, %v906_v48 }
 0xd1c   :  { %914 = vrot.lane.b32.xlu1 %v912_v49, %s2270_s30 }
 0xd24   :  { %952 = vrot.lane.b32.xlu1 %v866_v62, %s2269_s4 }
 0xd2c   :  { %976 = vrot.lane.b32.xlu1 %v886_v51, %s2269_s4 }
 0xd8e   :  { %v915_v52 = vpop.permute.xlu1 %914 }
 0xd8f   :  { %v917_v53 = vadd.f32 %v915_v52, %v842_v63 }
 0xd91   :  { %2087 = vtanh.f32 %v917_v53  ;;  %v2171_v53 = vld [vmem:[%s3029_s5 + $0x18] sm:$0xff] }
 0xd96   :  { %v953_v13 = vpop.permute.xlu1 %952 }
 0xd97   :  { %v2088_v39 = vpop.eup %2087 }
 0xd98   :  { %921 = vrot.lane.b32.xlu2 %v2088_v39, %s2271_s21  ;;  %v2172_v39 = vld [vmem:[%s3029_s5 + $0x10] sm:$0xff] }
 0xd9e   :  { %v977_v62 = vpop.permute.xlu1 %976 }
 0xda0   :  { %999 = vrot.lane.b32.xlu2 %v886_v51, %s2271_s21 }
 0xdf2   :  { %v922_v20 = vpop.permute.xlu2 %921 }
 0xdf3   :  { %v924_v21 = vmul.f32 %v922_v20, %v919_v55  ;;  %v2173_v55 = vld [vmem:[%s3029_s5 + $0x8] sm:$0xff]  ;;  %v2174_v20 = vld [vmem:[%s3029_s5] sm:$0xff] }
 0xdf5   :  { %v2746_v23 = vadd.f32 %v925_v56, %v924_v21 }
 0xdf7   :  { %928 = vrot.lane.b32.xlu0 %v2746_v23, %s2271_s21 }
 0xe69   :  { %v2750_v24 = vpop.permute.xlu0 %928 }
 0xe6a   :  { %1975 = vmatmul.msk.f32.vlgmr.msra.gmra.mxu3 %vm193_vm2, %v2750_v24 }
 0xe6b   :  { %1402 = vmatpush.msra.mxu3 %v2754_v32 }
 0xe6d   :  { %1403 = vmatpush.msra.mxu3 %v2757_v58 }
 0xe6f   :  { %1404 = vmatpush.msra.mxu3 %v2760_v44 }
 0xe71   :  { %1405 = vmatpush.msra.mxu3 %v2763_v29 }
 0xe73   :  { %1406 = vmatpush.msra.mxu3 %v2766_v0 }
 0xe75   :  { %1407 = vmatpush.msra.mxu3 %v2769_v1 }
 0xe77   :  { %1408 = vmatpush.msra.mxu3 %v2772_v3 }
 0xe79   :  { %1409 = vmatpush.msra.mxu3 %v2775_v10 }
 0xeed   :  { %v949_v11 = vpop.f32.mrf.mxu3 }
 0xeee   :  { %v950_v12 = vadd.f32 %v2607_v18, %v949_v11  ;;  %v1000_v18 = vpop.permute.xlu2 %999 }
 0xef0   :  { %v955_v14 = vadd.f32 %v953_v13, %v950_v12  ;;  %v979_v63 = vadd.f32 %v977_v62, %v950_v12 }
 0xef2   :  { %v1976_v15 = vmul.f32 -1.442695, %v955_v14  ;;  %v1977_v6 = vmul.f32 -1.442695, %v979_v63 }
 0xef4   :  { %2089 = vpow2.f32 %v1976_v15 }
 0xefa   :  { %v2090_v60 = vpop.eup %2089 }
 0xefb   :  { %v959_v57 = vadd.f32 1.0, %v2090_v60 }
 0xefd   :  { %2091 = vrcp.f32 %v959_v57  ;;  %v971_v7 = vand.u32 2147483648, %v959_v57  ;;  %v969_v26 = vand.u32 2147483647, %v959_v57  ;;  %vm965_vm10 = vweird.f32 %v959_v57 }
 0xeff   :  { %v972_v27 = vor.u32 1.1754944e-38, %v971_v7  ;;  %vm970_vm12 = vcmp.eq.f32.partialorder %v969_v26, 8.507059e+37 }
 0xf03   :  { %v2092_v16 = vpop.eup %2091 }
 0xf04   :  { %v961_v4 = vmul.f32 %v2092_v16, %v959_v57  ;;  %vm966_vm9 = vweird.f32 %v2092_v16 }
 0xf05   :  { %vm967_vm11 = vmor %vm965_vm10, %vm966_vm9 }
 0xf06   :  { %v962_v5 = vsub.f32 1.0, %v961_v4 }
 0xf08   :  { %v963_v17 = vmul.f32 %v2092_v16, %v962_v5 }
 0xf0a   :  { %v964_v54 = vadd.f32 %v2092_v16, %v963_v17 }
 0xf0c   :  { %v968_v28 = vsel %vm967_vm11, %v2092_v16, %v964_v54 }
 0xf0d   :  { %v973_v30 = vsel %vm970_vm12, %v972_v27, %v968_v28 }
 0xf0e   :  { %v1002_v31 = vmul.f32 %v1000_v18, %v973_v30 }
 0xf10   :  { %1004 = vrot.lane.b32.xlu0 %v1002_v31, %s2270_s30 }
 0xf82   :  { %v1005_v33 = vpop.permute.xlu0 %1004 }
 0xf83   :  { %v1007_v35 = vadd.f32 %v1005_v33, %v950_v12 }
 0xf85   :  { %2093 = vtanh.f32 %v1007_v35 }
 0xf86   :  { %2095 = vpow2.f32 %v1977_v6 }
 0xf8b   :  { %v2094_v61 = vpop.eup %2093 }
 0xf8c   :  { %1011 = vrot.lane.b32.xlu2 %v2094_v61, %s2271_s21  ;;  %v2096_v8 = vpop.eup %2095 }
 0xf8d   :  { %v983_v36 = vadd.f32 1.0, %v2096_v8 }
 0xf8f   :  { %2097 = vrcp.f32 %v983_v36  ;;  %v995_v42 = vand.u32 2147483648, %v983_v36  ;;  %vm989_vm14 = vweird.f32 %v983_v36  ;;  %v993_v43 = vand.u32 2147483647, %v983_v36 }
 0xf91   :  { %v996_v45 = vor.u32 1.1754944e-38, %v995_v42  ;;  %vm994_vm0 = vcmp.eq.f32.partialorder %v993_v43, 8.507059e+37 }
 0xf95   :  { %v2098_v37 = vpop.eup %2097 }
 0xf96   :  { %v985_v9 = vmul.f32 %v2098_v37, %v983_v36  ;;  %vm990_vm13 = vweird.f32 %v2098_v37 }
 0xf97   :  { %vm991_vm15 = vmor %vm989_vm14, %vm990_vm13 }
 0xf98   :  { %v986_v38 = vsub.f32 1.0, %v985_v9 }
 0xf9a   :  { %v987_v41 = vmul.f32 %v2098_v37, %v986_v38 }
 0xf9c   :  { %v988_v19 = vadd.f32 %v2098_v37, %v987_v41 }
 0xf9e   :  { %v992_v22 = vsel %vm991_vm15, %v2098_v37, %v988_v19  ;;  %v2829_v37 = vld [vmem:[%s3030_s6] ss:$0 sm:$0xff] }
 0xf9f   :  { %v997_v59 = vsel %vm994_vm0, %v996_v45, %v992_v22 }
 0xfa0   :  { %v1009_v47 = vsub.f32 1.0, %v997_v59  ;;  %v1015_v50 = vmul.f32 %v997_v59, %v2714_v34 }
 0xfe6   :  { %v1012_v48 = vpop.permute.xlu2 %1011 }
 0xfe7   :  { %v1014_v49 = vmul.f32 %v1012_v48, %v1009_v47 }
 0xfe9   :  { %v2782_v51 = vadd.f32 %v1015_v50, %v1014_v49 }
 0xfeb   :  { %v1026_v52 = vsel %vm193_vm2, %v2750_v24, %v2782_v51  ;;  %v1024_v24 = vld [vmem:[#allocation2 + $0x20] sm:$0xff] }
 0xfec   :  { %1978 = vmatmul.msk.f32.vlgmr.msra.gmra.mxu2 %vm299_vm8, %v1026_v52  ;;  %1979 = vmatmul.msk.f32.vlgmr.msrb.gmra.mxu3 %vm299_vm8, %v1026_v52 }
 0xfed   :  { %1490 = vmatpush.msra.mxu2 %v2171_v53  ;;  %1672 = vmatpush.msrb.mxu3 %v2171_v53 }
 0xfef   :  { %1491 = vmatpush.msra.mxu2 %v2172_v39  ;;  %1673 = vmatpush.msrb.mxu3 %v2172_v39 }
 0xff1   :  { %1492 = vmatpush.msra.mxu2 %v2173_v55  ;;  %1674 = vmatpush.msrb.mxu3 %v2173_v55 }
 0xff3   :  { %1493 = vmatpush.msra.mxu2 %v2174_v20  ;;  %1675 = vmatpush.msrb.mxu3 %v2174_v20 }
0x106f   :  { %v1047_v56 = vpop.f32.mrf.mxu2  ;;  %v1067_v18 = vpop.f32.mrf.mxu3 }
0x1070   :  { %v1048_v21 = vadd.f32 %v1047_v56, %v2451_v40  ;;  %v1068_v30 = vadd.f32 %v1067_v18, %v2582_v46 }
0x1072   :  { %1091 = vrot.lane.b32.xlu0 %v1048_v21, %s2270_s30  ;;  %v1070_v11 = vadd.f32 %v1048_v21, %v1024_v24 }
0x1074   :  { %v1980_v12 = vmul.f32 -1.442695, %v1070_v11 }
0x1076   :  { %2099 = vpow2.f32 %v1980_v12 }
0x107c   :  { %v2100_v13 = vpop.eup %2099 }
0x107d   :  { %v1074_v14 = vadd.f32 1.0, %v2100_v13 }
0x107f   :  { %2101 = vrcp.f32 %v1074_v14  ;;  %v1086_v5 = vand.u32 2147483648, %v1074_v14  ;;  %vm1080_vm3 = vweird.f32 %v1074_v14  ;;  %v1084_v7 = vand.u32 2147483647, %v1074_v14 }
0x1081   :  { %v1087_v26 = vor.u32 1.1754944e-38, %v1086_v5  ;;  %vm1085_vm5 = vcmp.eq.f32.partialorder %v1084_v7, 8.507059e+37 }
0x1085   :  { %v2102_v15 = vpop.eup %2101 }
0x1086   :  { %v1076_v60 = vmul.f32 %v2102_v15, %v1074_v14  ;;  %vm1081_vm1 = vweird.f32 %v2102_v15 }
0x1087   :  { %vm1082_vm4 = vmor %vm1080_vm3, %vm1081_vm1 }
0x1088   :  { %v1077_v57 = vsub.f32 1.0, %v1076_v60 }
0x108a   :  { %v1078_v16 = vmul.f32 %v2102_v15, %v1077_v57 }
0x108c   :  { %v1079_v4 = vadd.f32 %v2102_v15, %v1078_v16 }
0x108e   :  { %v1083_v17 = vsel %vm1082_vm4, %v2102_v15, %v1079_v4 }
0x108f   :  { %v1088_v27 = vsel %vm1085_vm5, %v1087_v26, %v1083_v17 }
0x1090   :  { %v1101_v61 = vsub.f32 1.0, %v1088_v27  ;;  %v1107_v63 = vmul.f32 %v1088_v27, %v2746_v23 }
0x10e4   :  { %v1092_v54 = vpop.permute.xlu0 %1091 }
0x10e5   :  { %v1094_v28 = vmul.f32 %v1092_v54, %v1088_v27 }
0x10e7   :  { %1096 = vrot.lane.b32.xlu1 %v1094_v28, %s2270_s30  ;;  %v1206_v28 = vld [vmem:[#allocation2 + $0x28] sm:$0xff] }
0x10ef   :  { %1134 = vrot.lane.b32.xlu1 %v1048_v21, %s2269_s4 }
0x10f7   :  { %1158 = vrot.lane.b32.xlu1 %v1068_v30, %s2269_s4 }
0x1159   :  { %v1097_v31 = vpop.permute.xlu1 %1096 }
0x115a   :  { %v1099_v33 = vadd.f32 %v1097_v31, %v1024_v24 }
0x115c   :  { %2103 = vtanh.f32 %v1099_v33 }
0x1162   :  { %v2104_v35 = vpop.eup %2103 }
0x1163   :  { %1103 = vrot.lane.b32.xlu2 %v2104_v35, %s2271_s21 }
0x116b   :  { %1181 = vrot.lane.b32.xlu2 %v1068_v30, %s2271_s21 }
0x11bd   :  { %v1104_v62 = vpop.permute.xlu2 %1103 }
0x11be   :  { %v1106_v6 = vmul.f32 %v1104_v62, %v1101_v61 }
0x11c0   :  { %v2810_v8 = vadd.f32 %v1107_v63, %v1106_v6 }
0x11c2   :  { %1110 = vrot.lane.b32.xlu0 %v2810_v8, %s2271_s21 }
0x11c5   :  { %v1182_v45 = vpop.permute.xlu2 %1181 }
0x1234   :  { %v2814_v36 = vpop.permute.xlu0 %1110 }
0x1235   :  { %1981 = vmatmul.msk.f32.vlgmr.msrb.gmra.mxu0 %vm193_vm2, %v2814_v36 }
0x1236   :  { %1584 = vmatpush.msrb.mxu0 %v2754_v32 }
0x1238   :  { %1585 = vmatpush.msrb.mxu0 %v2757_v58  ;;  %v1135_v58 = vpop.permute.xlu1 %1134 }
0x123a   :  { %1586 = vmatpush.msrb.mxu0 %v2760_v44 }
0x123c   :  { %1587 = vmatpush.msrb.mxu0 %v2763_v29 }
0x123e   :  { %1588 = vmatpush.msrb.mxu0 %v2766_v0 }
0x1240   :  { %1589 = vmatpush.msrb.mxu0 %v2769_v1  ;;  %v1159_v52 = vpop.permute.xlu1 %1158 }
0x1242   :  { %1590 = vmatpush.msrb.mxu0 %v2772_v3 }
0x1244   :  { %1591 = vmatpush.msrb.mxu0 %v2775_v10 }
0x12b2   :  { %v1131_v23 = vpop.f32.mrf.mxu0 }
0x12b3   :  { %v1132_v32 = vadd.f32 %v2829_v37, %v1131_v23 }
0x12b5   :  { %v1137_v44 = vadd.f32 %v1135_v58, %v1132_v32  ;;  %v1161_v53 = vadd.f32 %v1159_v52, %v1132_v32  ;;  %v2182_v52 = vld [vmem:[#allocation5 + $0x18] sm:$0xff] }
0x12b7   :  { %v1982_v9 = vmul.f32 -1.442695, %v1137_v44  ;;  %v1983_v39 = vmul.f32 -1.442695, %v1161_v53  ;;  %v2183_v53 = vld [vmem:[#allocation5 + $0x8] sm:$0xff] }
0x12b9   :  { %2105 = vpow2.f32 %v1982_v9 }
0x12bf   :  { %v2106_v29 = vpop.eup %2105 }
0x12c0   :  { %v1141_v0 = vadd.f32 1.0, %v2106_v29 }
0x12c2   :  { %2107 = vrcp.f32 %v1141_v0  ;;  %v1153_v41 = vand.u32 2147483648, %v1141_v0  ;;  %v1151_v19 = vand.u32 2147483647, %v1141_v0  ;;  %vm1147_vm7 = vweird.f32 %v1141_v0 }
0x12c4   :  { %v1154_v43 = vor.u32 1.1754944e-38, %v1153_v41  ;;  %vm1152_vm10 = vcmp.eq.f32.partialorder %v1151_v19, 8.507059e+37 }
0x12c8   :  { %v2108_v1 = vpop.eup %2107 }
0x12c9   :  { %v1143_v38 = vmul.f32 %v2108_v1, %v1141_v0  ;;  %vm1148_vm6 = vweird.f32 %v2108_v1 }
0x12ca   :  { %vm1149_vm9 = vmor %vm1147_vm7, %vm1148_vm6 }
0x12cb   :  { %v1144_v3 = vsub.f32 1.0, %v1143_v38 }
0x12cd   :  { %v1145_v10 = vmul.f32 %v2108_v1, %v1144_v3 }
0x12cf   :  { %v1146_v42 = vadd.f32 %v2108_v1, %v1145_v10 }
0x12d1   :  { %v1150_v22 = vsel %vm1149_vm9, %v2108_v1, %v1146_v42 }
0x12d2   :  { %v1155_v59 = vsel %vm1152_vm10, %v1154_v43, %v1150_v22 }
0x12d3   :  { %v1184_v47 = vmul.f32 %v1182_v45, %v1155_v59  ;;  %v2176_v59 = vld [vmem:[#allocation5 + $0x78] sm:$0xff] }
0x12d5   :  { %1186 = vrot.lane.b32.xlu0 %v1184_v47, %s2270_s30  ;;  %v2177_v47 = vld [vmem:[#allocation5 + $0x68] sm:$0xff] }
0x1347   :  { %v1187_v48 = vpop.permute.xlu0 %1186 }
0x1348   :  { %v1189_v49 = vadd.f32 %v1187_v48, %v1132_v32  ;;  %v2178_v48 = vld [vmem:[#allocation5 + $0x58] sm:$0xff] }
0x134a   :  { %2109 = vtanh.f32 %v1189_v49  ;;  %v2179_v49 = vld [vmem:[#allocation5 + $0x48] sm:$0xff] }
0x134b   :  { %2111 = vpow2.f32 %v1983_v39 }
0x1350   :  { %v2110_v50 = vpop.eup %2109 }
0x1351   :  { %1193 = vrot.lane.b32.xlu2 %v2110_v50, %s2271_s21  ;;  %v2112_v55 = vpop.eup %2111  ;;  %v2181_v50 = vld [vmem:[#allocation5 + $0x28] sm:$0xff] }
0x1352   :  { %v1165_v20 = vadd.f32 1.0, %v2112_v55 }
0x1354   :  { %2113 = vrcp.f32 %v1165_v20  ;;  %v1177_v13 = vand.u32 2147483648, %v1165_v20  ;;  %vm1171_vm12 = vweird.f32 %v1165_v20  ;;  %v1175_v14 = vand.u32 2147483647, %v1165_v20 }
0x1356   :  { %v1178_v60 = vor.u32 1.1754944e-38, %v1177_v13  ;;  %vm1176_vm14 = vcmp.eq.f32.partialorder %v1175_v14, 8.507059e+37 }
0x135a   :  { %v2114_v56 = vpop.eup %2113 }
0x135b   :  { %v1167_v21 = vmul.f32 %v2114_v56, %v1165_v20  ;;  %vm1172_vm11 = vweird.f32 %v2114_v56 }
0x135c   :  { %vm1173_vm13 = vmor %vm1171_vm12, %vm1172_vm11 }
0x135d   :  { %v1168_v24 = vsub.f32 1.0, %v1167_v21 }
0x135f   :  { %v1169_v11 = vmul.f32 %v2114_v56, %v1168_v24 }
0x1361   :  { %v1170_v12 = vadd.f32 %v2114_v56, %v1169_v11 }
0x1363   :  { %v1174_v15 = vsel %vm1173_vm13, %v2114_v56, %v1170_v12 }
0x1364   :  { %v1179_v57 = vsel %vm1176_vm14, %v1178_v60, %v1174_v15 }
0x1365   :  { %v1191_v16 = vsub.f32 1.0, %v1179_v57  ;;  %v1197_v7 = vmul.f32 %v1179_v57, %v2782_v51 }
0x13ab   :  { %v1194_v4 = vpop.permute.xlu2 %1193 }
0x13ac   :  { %v1196_v5 = vmul.f32 %v1194_v4, %v1191_v16 }
0x13ae   :  { %v2835_v17 = vadd.f32 %v1197_v7, %v1196_v5 }
0x13b0   :  { %v1208_v26 = vsel %vm193_vm2, %v2814_v36, %v2835_v17 }
0x13b1   :  { %1984 = vmatmul.msk.f32.vlgmr.msra.gmra.mxu1 %vm299_vm8, %v1208_v26  ;;  %1985 = vmatmul.msk.f32.vlgmr.msra.gmra.mxu0 %vm299_vm8, %v1208_v26 }
0x142e   :  { %v1229_v54 = vpop.f32.mrf.mxu1  ;;  %v1249_v0 = vpop.f32.mrf.mxu0 }
0x142f   :  { %v1230_v27 = vadd.f32 %v1229_v54, %v2451_v40  ;;  %v1250_v1 = vadd.f32 %v1249_v0, %v2582_v46 }
0x1431   :  { %1273 = vrot.lane.b32.xlu0 %v1230_v27, %s2270_s30  ;;  %v1252_v18 = vadd.f32 %v1230_v27, %v1206_v28 }
0x1433   :  { %v1986_v30 = vmul.f32 -1.442695, %v1252_v18 }
0x1435   :  { %2115 = vpow2.f32 %v1986_v30 }
0x143b   :  { %v2116_v31 = vpop.eup %2115 }
0x143c   :  { %v1256_v33 = vadd.f32 1.0, %v2116_v31 }
0x143e   :  { %2117 = vrcp.f32 %v1256_v33  ;;  %v1268_v36 = vand.u32 2147483648, %v1256_v33  ;;  %vm1262_vm0 = vweird.f32 %v1256_v33  ;;  %v1266_v23 = vand.u32 2147483647, %v1256_v33 }
0x1440   :  { %v1269_v58 = vor.u32 1.1754944e-38, %v1268_v36  ;;  %vm1267_vm3 = vcmp.eq.f32.partialorder %v1266_v23, 8.507059e+37 }
0x1444   :  { %v2118_v35 = vpop.eup %2117 }
0x1445   :  { %v1258_v61 = vmul.f32 %v2118_v35, %v1256_v33  ;;  %vm1263_vm15 = vweird.f32 %v2118_v35 }
0x1446   :  { %vm1264_vm1 = vmor %vm1262_vm0, %vm1263_vm15 }
0x1447   :  { %v1259_v62 = vsub.f32 1.0, %v1258_v61 }
0x1449   :  { %v1260_v63 = vmul.f32 %v2118_v35, %v1259_v62 }
0x144b   :  { %v1261_v6 = vadd.f32 %v2118_v35, %v1260_v63 }
0x144d   :  { %v1265_v32 = vsel %vm1264_vm1, %v2118_v35, %v1261_v6 }
0x144e   :  { %v1270_v9 = vsel %vm1267_vm3, %v1269_v58, %v1265_v32 }
0x144f   :  { %v1283_v10 = vsub.f32 1.0, %v1270_v9  ;;  %v1289_v42 = vmul.f32 %v1270_v9, %v2810_v8  ;;  %v2180_v8 = vld [vmem:[#allocation5 + $0x38] sm:$0xff] }
0x14a3   :  { %v1274_v44 = vpop.permute.xlu0 %1273 }
0x14a4   :  { %v1276_v29 = vmul.f32 %v1274_v44, %v1270_v9 }
0x14a6   :  { %1278 = vrot.lane.b32.xlu1 %v1276_v29, %s2270_s30 }
0x14ae   :  { %1316 = vrot.lane.b32.xlu1 %v1230_v27, %s2269_s4 }
0x14b6   :  { %1340 = vrot.lane.b32.xlu1 %v1250_v1, %s2269_s4 }
0x1518   :  { %v1279_v38 = vpop.permute.xlu1 %1278 }
0x1519   :  { %v1281_v3 = vadd.f32 %v1279_v38, %v1206_v28 }
0x151b   :  { %2119 = vtanh.f32 %v1281_v3 }
0x1520   :  { %v1317_v20 = vpop.permute.xlu1 %1316 }
0x1521   :  { %v2120_v41 = vpop.eup %2119 }
0x1522   :  { %1285 = vrot.lane.b32.xlu2 %v2120_v41, %s2271_s21 }
0x1528   :  { %v1341_v30 = vpop.permute.xlu1 %1340 }
0x152a   :  { %1363 = vrot.lane.b32.xlu2 %v1250_v1, %s2271_s21 }
0x157c   :  { %v1286_v19 = vpop.permute.xlu2 %1285 }
0x157d   :  { %v1288_v43 = vmul.f32 %v1286_v19, %v1283_v10 }
0x157f   :  { %v2851_v22 = vadd.f32 %v1289_v42, %v1288_v43  ;;  %v1388_v43 = vld [vmem:[#allocation2 + $0x30] sm:$0xff] }
0x1581   :  { %1292 = vrot.lane.b32.xlu0 %v2851_v22, %s2271_s21 }
0x1584   :  { %v1364_v7 = vpop.permute.xlu2 %1363 }
0x15f3   :  { %v2855_v45 = vpop.permute.xlu0 %1292 }
0x15f4   :  { %1987 = vmatmul.msk.f32.vlgmr.msrb.gmra.mxu2 %vm193_vm2, %v2855_v45 }
0x15f5   :  { %1604 = vmatpush.msrb.mxu2 %v2176_v59 }
0x15f7   :  { %1605 = vmatpush.msrb.mxu2 %v2177_v47 }
0x15f9   :  { %1606 = vmatpush.msrb.mxu2 %v2178_v48 }
0x15fb   :  { %1607 = vmatpush.msrb.mxu2 %v2179_v49 }
0x15fd   :  { %1608 = vmatpush.msrb.mxu2 %v2180_v8 }
0x15ff   :  { %1609 = vmatpush.msrb.mxu2 %v2181_v50 }
0x1601   :  { %1610 = vmatpush.msrb.mxu2 %v2182_v52 }
0x1603   :  { %1611 = vmatpush.msrb.mxu2 %v2183_v53 }
0x1677   :  { %v1313_v39 = vpop.f32.mrf.mxu2 }
0x1678   :  { %v1314_v55 = vadd.f32 %v2829_v37, %v1313_v39 }
0x167a   :  { %v1319_v56 = vadd.f32 %v1317_v20, %v1314_v55  ;;  %v1343_v31 = vadd.f32 %v1341_v30, %v1314_v55 }
0x167c   :  { %v1988_v21 = vmul.f32 -1.442695, %v1319_v56  ;;  %v1989_v33 = vmul.f32 -1.442695, %v1343_v31 }
0x167e   :  { %2121 = vpow2.f32 %v1988_v21 }
0x1684   :  { %v2122_v24 = vpop.eup %2121 }
0x1685   :  { %v1323_v11 = vadd.f32 1.0, %v2122_v24 }
0x1687   :  { %2123 = vrcp.f32 %v1323_v11  ;;  %v1335_v15 = vand.u32 2147483648, %v1323_v11  ;;  %v1333_v57 = vand.u32 2147483647, %v1323_v11  ;;  %vm1329_vm5 = vweird.f32 %v1323_v11 }
0x1689   :  { %v1336_v4 = vor.u32 1.1754944e-38, %v1335_v15  ;;  %vm1334_vm7 = vcmp.eq.f32.partialorder %v1333_v57, 8.507059e+37 }
0x168d   :  { %v2124_v12 = vpop.eup %2123 }
0x168e   :  { %v1325_v13 = vmul.f32 %v2124_v12, %v1323_v11  ;;  %vm1330_vm4 = vweird.f32 %v2124_v12 }
0x168f   :  { %vm1331_vm6 = vmor %vm1329_vm5, %vm1330_vm4 }
0x1690   :  { %v1326_v14 = vsub.f32 1.0, %v1325_v13 }
0x1692   :  { %v1327_v60 = vmul.f32 %v2124_v12, %v1326_v14 }
0x1694   :  { %v1328_v16 = vadd.f32 %v2124_v12, %v1327_v60 }
0x1696   :  { %v1332_v5 = vsel %vm1331_vm6, %v2124_v12, %v1328_v16 }
0x1697   :  { %v1337_v26 = vsel %vm1334_vm7, %v1336_v4, %v1332_v5 }
0x1698   :  { %v1366_v54 = vmul.f32 %v1364_v7, %v1337_v26 }
0x169a   :  { %1368 = vrot.lane.b32.xlu0 %v1366_v54, %s2270_s30 }
0x170c   :  { %v1369_v27 = vpop.permute.xlu0 %1368 }
0x170d   :  { %v1371_v28 = vadd.f32 %v1369_v27, %v1314_v55 }
0x170f   :  { %2125 = vtanh.f32 %v1371_v28 }
0x1710   :  { %2127 = vpow2.f32 %v1989_v33 }
0x1715   :  { %v2126_v18 = vpop.eup %2125 }
0x1716   :  { %1375 = vrot.lane.b32.xlu2 %v2126_v18, %s2271_s21  ;;  %v2128_v35 = vpop.eup %2127 }
0x1717   :  { %v1347_v61 = vadd.f32 1.0, %v2128_v35 }
0x1719   :  { %2129 = vrcp.f32 %v1347_v61  ;;  %v1359_v32 = vand.u32 2147483648, %v1347_v61  ;;  %vm1353_vm10 = vweird.f32 %v1347_v61  ;;  %v1357_v58 = vand.u32 2147483647, %v1347_v61 }
0x171b   :  { %v1360_v9 = vor.u32 1.1754944e-38, %v1359_v32  ;;  %vm1358_vm12 = vcmp.eq.f32.partialorder %v1357_v58, 8.507059e+37 }
0x171f   :  { %v2130_v62 = vpop.eup %2129 }
0x1720   :  { %v1349_v63 = vmul.f32 %v2130_v62, %v1347_v61  ;;  %vm1354_vm9 = vweird.f32 %v2130_v62 }
0x1721   :  { %vm1355_vm11 = vmor %vm1353_vm10, %vm1354_vm9 }
0x1722   :  { %v1350_v6 = vsub.f32 1.0, %v1349_v63 }
0x1724   :  { %v1351_v36 = vmul.f32 %v2130_v62, %v1350_v6 }
0x1726   :  { %v1352_v23 = vadd.f32 %v2130_v62, %v1351_v36 }
0x1728   :  { %v1356_v44 = vsel %vm1355_vm11, %v2130_v62, %v1352_v23 }
0x1729   :  { %v1361_v29 = vsel %vm1358_vm12, %v1360_v9, %v1356_v44 }
0x172a   :  { %v1373_v0 = vsub.f32 1.0, %v1361_v29  ;;  %v1379_v3 = vmul.f32 %v1361_v29, %v2835_v17 }
0x1770   :  { %v1376_v1 = vpop.permute.xlu2 %1375 }
0x1771   :  { %v1378_v38 = vmul.f32 %v1376_v1, %v1373_v0 }
0x1773   :  { %v2863_v41 = vadd.f32 %v1379_v3, %v1378_v38 }
0x1775   :  { %v1390_v10 = vsel %vm193_vm2, %v2855_v45, %v2863_v41 }
0x1776   :  { %1990 = vmatmul.msk.f32.vlgmr.msra.gmra.mxu3 %vm299_vm8, %v1390_v10  ;;  %1991 = vmatmul.msk.f32.vlgmr.msrb.gmra.mxu1 %vm299_vm8, %v1390_v10 }
0x17f3   :  { %v1431_v12 = vpop.f32.mrf.mxu1 }
0x17f4   :  { %v1432_v13 = vadd.f32 %v1431_v12, %v2582_v46 }
0x17f9   :  { %v1411_v19 = vpop.f32.mrf.mxu3 }
0x17fa   :  { %v1412_v42 = vadd.f32 %v1411_v19, %v2451_v40 }
0x17fc   :  { %1455 = vrot.lane.b32.xlu0 %v1412_v42, %s2270_s30  ;;  %v1434_v59 = vadd.f32 %v1412_v42, %v1388_v43 }
0x17fe   :  { %v1992_v47 = vmul.f32 -1.442695, %v1434_v59 }
0x1800   :  { %2131 = vpow2.f32 %v1992_v47 }
0x1806   :  { %v2132_v48 = vpop.eup %2131 }
0x1807   :  { %v1438_v49 = vadd.f32 1.0, %v2132_v48 }
0x1809   :  { %2133 = vrcp.f32 %v1438_v49  ;;  %v1450_v39 = vand.u32 2147483648, %v1438_v49  ;;  %vm1444_vm14 = vweird.f32 %v1438_v49  ;;  %v1448_v55 = vand.u32 2147483647, %v1438_v49 }
0x180b   :  { %v1451_v56 = vor.u32 1.1754944e-38, %v1450_v39  ;;  %vm1449_vm0 = vcmp.eq.f32.partialorder %v1448_v55, 8.507059e+37 }
0x180f   :  { %v2134_v8 = vpop.eup %2133 }
0x1810   :  { %v1440_v50 = vmul.f32 %v2134_v8, %v1438_v49  ;;  %vm1445_vm13 = vweird.f32 %v2134_v8 }
0x1811   :  { %vm1446_vm15 = vmor %vm1444_vm14, %vm1445_vm13 }
0x1812   :  { %v1441_v52 = vsub.f32 1.0, %v1440_v50 }
0x1814   :  { %v1442_v45 = vmul.f32 %v2134_v8, %v1441_v52 }
0x1816   :  { %v1443_v53 = vadd.f32 %v2134_v8, %v1442_v45 }
0x1818   :  { %v1447_v20 = vsel %vm1446_vm15, %v2134_v8, %v1443_v53  ;;  %vm1904_vm15 = vcmask 7168  }
0x1819   :  { %v1452_v24 = vsel %vm1449_vm0, %v1451_v56, %v1447_v20 }
0x181a   :  { %v1465_v57 = vsub.f32 1.0, %v1452_v24  ;;  %v1471_v4 = vmul.f32 %v1452_v24, %v2851_v22 }
0x186e   :  { %v1456_v21 = vpop.permute.xlu0 %1455 }
0x186f   :  { %v1458_v11 = vmul.f32 %v1456_v21, %v1452_v24 }
0x1871   :  { %1460 = vrot.lane.b32.xlu1 %v1458_v11, %s2270_s30 }
0x1879   :  { %1498 = vrot.lane.b32.xlu1 %v1412_v42, %s2269_s4 }
0x1881   :  { %1522 = vrot.lane.b32.xlu1 %v1432_v13, %s2269_s4 }
0x18e3   :  { %v1461_v14 = vpop.permute.xlu1 %1460 }
0x18e4   :  { %v1463_v15 = vadd.f32 %v1461_v14, %v1388_v43 }
0x18e6   :  { %2135 = vtanh.f32 %v1463_v15 }
0x18eb   :  { %v1499_v28 = vpop.permute.xlu1 %1498 }
0x18ec   :  { %v2136_v60 = vpop.eup %2135 }
0x18ed   :  { %1467 = vrot.lane.b32.xlu2 %v2136_v60, %s2271_s21 }
0x18f3   :  { %v1523_v38 = vpop.permute.xlu1 %1522 }
0x18f5   :  { %1545 = vrot.lane.b32.xlu2 %v1432_v13, %s2271_s21  ;;  %v1570_v13 = vld [vmem:[#allocation2 + $0x38] sm:$0xff] }
0x1947   :  { %v1468_v16 = vpop.permute.xlu2 %1467 }
0x1948   :  { %v1470_v5 = vmul.f32 %v1468_v16, %v1465_v57 }
0x194a   :  { %v2879_v7 = vadd.f32 %v1471_v4, %v1470_v5 }
0x194c   :  { %1474 = vrot.lane.b32.xlu0 %v2879_v7, %s2271_s21 }
0x194f   :  { %v1546_v58 = vpop.permute.xlu2 %1545 }
0x19be   :  { %v1475_v26 = vpop.permute.xlu0 %1474 }
0x19bf   :  { %1993 = vmatmul.msk.f32.vlgmr.msra.gmra.mxu2 %vm193_vm2, %v1475_v26 }
0x1a42   :  { %v1495_v54 = vpop.f32.mrf.mxu2 }
0x1a43   :  { %v1496_v27 = vadd.f32 %v2829_v37, %v1495_v54 }
0x1a45   :  { %v1501_v18 = vadd.f32 %v1499_v28, %v1496_v27  ;;  %v1525_v3 = vadd.f32 %v1523_v38, %v1496_v27 }
0x1a47   :  { %v1994_v30 = vmul.f32 -1.442695, %v1501_v18  ;;  %v1995_v10 = vmul.f32 -1.442695, %v1525_v3 }
0x1a49   :  { %2137 = vpow2.f32 %v1994_v30 }
0x1a4f   :  { %v2138_v31 = vpop.eup %2137 }
0x1a50   :  { %v1505_v33 = vadd.f32 1.0, %v2138_v31 }
0x1a52   :  { %2139 = vrcp.f32 %v1505_v33  ;;  %v1517_v62 = vand.u32 2147483648, %v1505_v33  ;;  %v1515_v6 = vand.u32 2147483647, %v1505_v33  ;;  %vm1511_vm3 = vweird.f32 %v1505_v33 }
0x1a54   :  { %v1518_v23 = vor.u32 1.1754944e-38, %v1517_v62  ;;  %vm1516_vm5 = vcmp.eq.f32.partialorder %v1515_v6, 8.507059e+37  ;;  %v1761_v6 = vld [vmem:[#allocation8 + $0x10] sm:$0xff] }
0x1a58   :  { %v2140_v22 = vpop.eup %2139 }
0x1a59   :  { %v1507_v35 = vmul.f32 %v2140_v22, %v1505_v33  ;;  %vm1512_vm1 = vweird.f32 %v2140_v22 }
0x1a5a   :  { %vm1513_vm4 = vmor %vm1511_vm3, %vm1512_vm1 }
0x1a5b   :  { %v1508_v61 = vsub.f32 1.0, %v1507_v35 }
0x1a5d   :  { %v1509_v63 = vmul.f32 %v2140_v22, %v1508_v61 }
0x1a5f   :  { %v1510_v36 = vadd.f32 %v2140_v22, %v1509_v63 }
0x1a61   :  { %v1514_v32 = vsel %vm1513_vm4, %v2140_v22, %v1510_v36  ;;  %v1760_v36 = vld [vmem:[#allocation8 + $0x8] sm:$0xff] }
0x1a62   :  { %v1519_v44 = vsel %vm1516_vm5, %v1518_v23, %v1514_v32  ;;  %v1759_v23 = vld [vmem:[#allocation8] sm:$0xff] }
0x1a63   :  { %v1548_v9 = vmul.f32 %v1546_v58, %v1519_v44 }
0x1a65   :  { %1550 = vrot.lane.b32.xlu0 %v1548_v9, %s2270_s30 }
0x1ad7   :  { %v1551_v29 = vpop.permute.xlu0 %1550 }
0x1ad8   :  { %v1553_v0 = vadd.f32 %v1551_v29, %v1496_v27 }
0x1ada   :  { %2141 = vtanh.f32 %v1553_v0 }
0x1adb   :  { %2143 = vpow2.f32 %v1995_v10 }
0x1ae0   :  { %v2142_v1 = vpop.eup %2141 }
0x1ae1   :  { %1557 = vrot.lane.b32.xlu2 %v2142_v1, %s2271_s21  ;;  %v2144_v19 = vpop.eup %2143 }
0x1ae2   :  { %v1529_v42 = vadd.f32 1.0, %v2144_v19  ;;  %v2925_v19 = vld [vmem:[%s3035_s11] ss:$0 sm:$0xff] }
0x1ae4   :  { %2145 = vrcp.f32 %v1529_v42  ;;  %v1541_v8 = vand.u32 2147483648, %v1529_v42  ;;  %vm1535_vm7 = vweird.f32 %v1529_v42  ;;  %v1539_v50 = vand.u32 2147483647, %v1529_v42 }
0x1ae6   :  { %v1542_v45 = vor.u32 1.1754944e-38, %v1541_v8  ;;  %vm1540_vm10 = vcmp.eq.f32.partialorder %v1539_v50, 8.507059e+37 }
0x1aea   :  { %v2146_v43 = vpop.eup %2145 }
0x1aeb   :  { %v1531_v59 = vmul.f32 %v2146_v43, %v1529_v42  ;;  %vm1536_vm6 = vweird.f32 %v2146_v43 }
0x1aec   :  { %vm1537_vm9 = vmor %vm1535_vm7, %vm1536_vm6 }
0x1aed   :  { %v1532_v47 = vsub.f32 1.0, %v1531_v59 }
0x1aef   :  { %v1533_v48 = vmul.f32 %v2146_v43, %v1532_v47 }
0x1af1   :  { %v1534_v49 = vadd.f32 %v2146_v43, %v1533_v48 }
0x1af3   :  { %v1538_v52 = vsel %vm1537_vm9, %v2146_v43, %v1534_v49 }
0x1af4   :  { %v1543_v53 = vsel %vm1540_vm10, %v1542_v45, %v1538_v52 }
0x1af5   :  { %v1555_v39 = vsub.f32 1.0, %v1543_v53  ;;  %v1561_v56 = vmul.f32 %v1543_v53, %v2863_v41 }
0x1b3b   :  { %v1558_v55 = vpop.permute.xlu2 %1557 }
0x1b3c   :  { %v1560_v20 = vmul.f32 %v1558_v55, %v1555_v39  ;;  %v2930_v39 = vld [vmem:[#allocation4] ss:$0 sm:$0xff] }
0x1b3e   :  { %v2888_v21 = vadd.f32 %v1561_v56, %v1560_v20 }
0x1b40   :  { %v1572_v24 = vsel %vm193_vm2, %v1475_v26, %v2888_v21 }
0x1b41   :  { %1996 = vmatmul.msk.f32.vlgmr.msrb.gmra.mxu0 %vm299_vm8, %v1572_v24  ;;  %1997 = vmatmul.msk.f32.vlgmr.msrb.gmra.mxu2 %vm299_vm8, %v1572_v24 }
0x1bbe   :  { %v1593_v11 = vpop.f32.mrf.mxu0 }
0x1bbf   :  { %v1594_v12 = vadd.f32 %v1593_v11, %v2451_v40 }
0x1bc1   :  { %1637 = vrot.lane.b32.xlu0 %v1594_v12, %s2270_s30  ;;  %v1616_v14 = vadd.f32 %v1594_v12, %v1570_v13 }
0x1bc3   :  { %v1998_v15 = vmul.f32 -1.442695, %v1616_v14 }
0x1bc4   :  { %v1613_v22 = vpop.f32.mrf.mxu2 }
0x1bc5   :  { %2147 = vpow2.f32 %v1998_v15  ;;  %v1614_v35 = vadd.f32 %v1613_v22, %v2582_v46  ;;  %v1762_v46 = vld [vmem:[#allocation8 + $0x18] sm:$0xff] }
0x1bc6   :  { %1803 = vmatpush.msra.mxu1 %v1762_v46 }
0x1bc8   :  { %1804 = vmatpush.msra.mxu1 %v1761_v6 }
0x1bca   :  { %1805 = vmatpush.msra.mxu1 %v1760_v36 }
0x1bcb   :  { %v2148_v60 = vpop.eup %2147 }
0x1bcc   :  { %v1620_v57 = vadd.f32 1.0, %v2148_v60  ;;  %1806 = vmatpush.msra.mxu1 %v1759_v23 }
0x1bce   :  { %2149 = vrcp.f32 %v1620_v57  ;;  %v1632_v27 = vand.u32 2147483648, %v1620_v57  ;;  %vm1626_vm8 = vweird.f32 %v1620_v57  ;;  %v1630_v28 = vand.u32 2147483647, %v1620_v57 }
0x1bd0   :  { %v1633_v18 = vor.u32 1.1754944e-38, %v1632_v27  ;;  %vm1631_vm13 = vcmp.eq.f32.partialorder %v1630_v28, 8.507059e+37 }
0x1bd4   :  { %v2150_v16 = vpop.eup %2149 }
0x1bd5   :  { %v1622_v4 = vmul.f32 %v2150_v16, %v1620_v57  ;;  %vm1627_vm11 = vweird.f32 %v2150_v16 }
0x1bd6   :  { %vm1628_vm12 = vmor %vm1626_vm8, %vm1627_vm11 }
0x1bd7   :  { %v1623_v5 = vsub.f32 1.0, %v1622_v4 }
0x1bd9   :  { %v1624_v26 = vmul.f32 %v2150_v16, %v1623_v5 }
0x1bdb   :  { %v1625_v54 = vadd.f32 %v2150_v16, %v1624_v26 }
0x1bdd   :  { %v1629_v40 = vsel %vm1628_vm12, %v2150_v16, %v1625_v54 }
0x1bde   :  { %v1634_v31 = vsel %vm1631_vm13, %v1633_v18, %v1629_v40 }
0x1bdf   :  { %v1647_v32 = vsub.f32 1.0, %v1634_v31  ;;  %v1653_v44 = vmul.f32 %v1634_v31, %v2879_v7  ;;  %v2919_v7 = vld [vmem:[%s3034_s10] ss:$0 sm:$0xff] }
0x1c33   :  { %v1638_v30 = vpop.permute.xlu0 %1637 }
0x1c34   :  { %v1640_v33 = vmul.f32 %v1638_v30, %v1634_v31 }
0x1c36   :  { %1642 = vrot.lane.b32.xlu1 %v1640_v33, %s2270_s30 }
0x1c3e   :  { %1680 = vrot.lane.b32.xlu1 %v1594_v12, %s2269_s4 }
0x1c46   :  { %1704 = vrot.lane.b32.xlu1 %v1614_v35, %s2269_s4 }
0x1ca8   :  { %v1643_v61 = vpop.permute.xlu1 %1642 }
0x1ca9   :  { %v1645_v62 = vadd.f32 %v1643_v61, %v1570_v13 }
0x1cab   :  { %2151 = vtanh.f32 %v1645_v62 }
0x1cb0   :  { %v1681_v8 = vpop.permute.xlu1 %1680 }
0x1cb1   :  { %v2152_v63 = vpop.eup %2151 }
0x1cb2   :  { %1649 = vrot.lane.b32.xlu2 %v2152_v63, %s2271_s21 }
0x1cb8   :  { %v1705_v18 = vpop.permute.xlu1 %1704 }
0x1cba   :  { %1727 = vrot.lane.b32.xlu2 %v1614_v35, %s2271_s21 }
0x1cc2   :  { %473 = vrot.lane.b32.xlu2 %v2622_v25, %s2271_s21 }
0x1cca   :  { %836 = vrot.lane.b32.xlu2 %v2714_v34, %s2271_s21 }
0x1cd2   :  { %1382 = vrot.lane.b32.xlu2 %v2863_v41, %s2271_s21 }
0x1d0c   :  { %v1650_v58 = vpop.permute.xlu2 %1649 }
0x1d0d   :  { %v1652_v9 = vmul.f32 %v1650_v58, %v1647_v32 }
0x1d0f   :  { %v1654_v25 = vadd.f32 %v1653_v44, %v1652_v9 }
0x1d11   :  { %1656 = vrot.lane.b32.xlu0 %v1654_v25, %s2271_s21 }
0x1d14   :  { %v1728_v34 = vpop.permute.xlu2 %1727 }
0x1d1c   :  { %v474_v29 = vpop.permute.xlu2 %473 }
0x1d1d   :  { %476 = vst.msk [vmem:[#allocation3] sm:$0xff] %vm193_vm2, %v474_v29 }
0x1d24   :  { %v837_v41 = vpop.permute.xlu2 %836  ;;  %v1751_v0 = vld [vmem:[#allocation3] sm:$0xff] }
0x1d25   :  { %840 = vst.msk [vmem:[#allocation3 + $0x10] sm:$0xff] %vm193_vm2, %v837_v41  ;;  %2002 = vmatmul.msk.f32.vlgmr.msra.gmra.mxu1 %vm193_vm2, %v1751_v0 }
0x1d2c   :  { %v1383_v1 = vpop.permute.xlu2 %1382 }
0x1d2d   :  { %1386 = vst.msk [vmem:[#allocation3 + $0x28] sm:$0xff] %vm193_vm2, %v1383_v1 }
0x1d83   :  { %v1657_v38 = vpop.permute.xlu0 %1656 }
0x1d84   :  { %1914 = vst.msk [vmem:[#allocation10] sm:$0xff] %vm193_vm2, %v1657_v38  ;;  %1999 = vmatmul.msk.f32.vlgmr.msrb.gmra.mxu3 %vm193_vm2, %v1657_v38 }
0x1da2   :  { %v1808_v3 = vpop.f32.mrf.mxu1 }
0x1da3   :  { %v1809_v10 = vadd.f32 %v2919_v7, %v1808_v3 }
0x1da5   :  { %vm1832_vm14 = vcmp.gt.f32.partialorder %v1809_v10, 0.0  ;;  %v1840_v42 = vmul.f32 0.01, %v1809_v10 }
0x1da7   :  { %v1848_v43 = vsel %vm1832_vm14, %v1809_v10, %v1840_v42  ;;  %v1756_v10 = vld [vmem:[#allocation3 + $0x28] sm:$0xff] }
0x1da8   :  { %v1860_v59 = vmul.f32 %v2925_v19, %v1848_v43 }
0x1daa   :  { %v1868_v47 = vsel %vm193_vm2, %v1860_v59, 0.0 }
0x1dab   :  { %1869 = vadd.xlane.f32.xlu2 %v1868_v47 }
0x1e07   :  { %v1677_v48 = vpop.f32.mrf.mxu3 }
0x1e08   :  { %v1678_v49 = vadd.f32 %v2829_v37, %v1677_v48 }
0x1e0a   :  { %v1683_v50 = vadd.f32 %v1681_v8, %v1678_v49  ;;  %v1707_v30 = vadd.f32 %v1705_v18, %v1678_v49 }
0x1e0c   :  { %v2000_v52 = vmul.f32 -1.442695, %v1683_v50  ;;  %v2001_v31 = vmul.f32 -1.442695, %v1707_v30 }
0x1e0e   :  { %2153 = vpow2.f32 %v2000_v52 }
0x1e14   :  { %v2154_v45 = vpop.eup %2153 }
0x1e15   :  { %v1687_v53 = vadd.f32 1.0, %v2154_v45 }
0x1e17   :  { %2155 = vrcp.f32 %v1687_v53  ;;  %v1699_v37 = vand.u32 2147483648, %v1687_v53  ;;  %v1697_v13 = vand.u32 2147483647, %v1687_v53  ;;  %vm1693_vm1 = vweird.f32 %v1687_v53 }
0x1e19   :  { %v1700_v15 = vor.u32 1.1754944e-38, %v1699_v37  ;;  %vm1698_vm4 = vcmp.eq.f32.partialorder %v1697_v13, 8.507059e+37 }
0x1e1d   :  { %v2156_v55 = vpop.eup %2155 }
0x1e1e   :  { %v1870_v20 = vpop.xlane.xlu2 %1869  ;;  %v1689_v56 = vmul.f32 %v2156_v55, %v1687_v53  ;;  %vm1694_vm0 = vweird.f32 %v2156_v55 }
0x1e1f   :  { %v1896_v24 = vadd.f32 %v2930_v39, %v1870_v20  ;;  %vm1695_vm3 = vmor %vm1693_vm1, %vm1694_vm0 }
0x1e20   :  { %v1690_v11 = vsub.f32 1.0, %v1689_v56 }
0x1e21   :  { %1905 = vst.msk [vmem:[%s3037_s13] sm:$0xff] %vm1904_vm15, %v1896_v24 }
0x1e22   :  { %v1691_v12 = vmul.f32 %v2156_v55, %v1690_v11 }
0x1e24   :  { %v1692_v14 = vadd.f32 %v2156_v55, %v1691_v12 }
0x1e26   :  { %v1696_v60 = vsel %vm1695_vm3, %v2156_v55, %v1692_v14 }
0x1e27   :  { %v1701_v57 = vsel %vm1698_vm4, %v1700_v15, %v1696_v60 }
0x1e28   :  { %v1730_v16 = vmul.f32 %v1728_v34, %v1701_v57 }
0x1e2a   :  { %1732 = vrot.lane.b32.xlu0 %v1730_v16, %s2270_s30 }
0x1e32   :  { %654 = vrot.lane.b32.xlu0 %v2666_v2, %s2271_s21 }
0x1e3a   :  { %1018 = vrot.lane.b32.xlu0 %v2782_v51, %s2271_s21  ;;  %v1753_v51 = vld [vmem:[#allocation3 + $0x10] sm:$0xff] }
0x1e42   :  { %1564 = vrot.lane.b32.xlu0 %v2888_v21, %s2271_s21 }
0x1e9c   :  { %v1733_v4 = vpop.permute.xlu0 %1732 }
0x1e9d   :  { %v1735_v5 = vadd.f32 %v1733_v4, %v1678_v49 }
0x1e9f   :  { %2157 = vtanh.f32 %v1735_v5 }
0x1ea0   :  { %2159 = vpow2.f32 %v2001_v31 }
0x1ea4   :  { %v655_v26 = vpop.permute.xlu0 %654 }
0x1ea5   :  { %v2158_v54 = vpop.eup %2157  ;;  %658 = vst.msk [vmem:[#allocation3 + $0x8] sm:$0xff] %vm193_vm2, %v655_v26 }
0x1ea6   :  { %1739 = vrot.lane.b32.xlu1 %v2158_v54, %s2271_s21  ;;  %v2160_v33 = vpop.eup %2159 }
0x1ea7   :  { %v1711_v22 = vadd.f32 1.0, %v2160_v33 }
0x1ea9   :  { %2161 = vrcp.f32 %v1711_v22  ;;  %v1723_v46 = vand.u32 2147483648, %v1711_v22  ;;  %vm1717_vm6 = vweird.f32 %v1711_v22  ;;  %v1721_v6 = vand.u32 2147483647, %v1711_v22 }
0x1eab   :  { %v1724_v23 = vor.u32 1.1754944e-38, %v1723_v46  ;;  %vm1722_vm9 = vcmp.eq.f32.partialorder %v1721_v6, 8.507059e+37 }
0x1eac   :  { %v1019_v27 = vpop.permute.xlu0 %1018  ;;  %v1752_v28 = vld [vmem:[#allocation3 + $0x8] sm:$0xff] }
0x1ead   :  { %1022 = vst.msk [vmem:[#allocation3 + $0x18] sm:$0xff] %vm193_vm2, %v1019_v27  ;;  %2003 = vmatmul.msk.f32.gmra.mxu1 %vm193_vm2, %v1752_v28 }
0x1eae   :  { %1200 = vrot.lane.b32.xlu1 %v2835_v17, %s2271_s21 }
0x1eaf   :  { %v2162_v35 = vpop.eup %2161 }
0x1eb0   :  { %v1713_v61 = vmul.f32 %v2162_v35, %v1711_v22  ;;  %vm1718_vm5 = vweird.f32 %v2162_v35 }
0x1eb1   :  { %vm1719_vm7 = vmor %vm1717_vm6, %vm1718_vm5 }
0x1eb2   :  { %v1714_v62 = vsub.f32 1.0, %v1713_v61 }
0x1eb4   :  { %v1565_v2 = vpop.permute.xlu0 %1564  ;;  %v1754_v40 = vld [vmem:[#allocation3 + $0x18] sm:$0xff]  ;;  %v1715_v17 = vmul.f32 %v2162_v35, %v1714_v62 }
0x1eb5   :  { %1568 = vst.msk [vmem:[#allocation3 + $0x30] sm:$0xff] %vm193_vm2, %v1565_v2  ;;  %2004 = vmatmul.msk.f32.gmra.mxu1 %vm193_vm2, %v1753_v51 }
0x1eb6   :  { %v1716_v63 = vadd.f32 %v2162_v35, %v1715_v17 }
0x1eb8   :  { %v1720_v36 = vsel %vm1719_vm7, %v2162_v35, %v1716_v63 }
0x1eb9   :  { %v1725_v32 = vsel %vm1722_vm9, %v1724_v23, %v1720_v36 }
0x1eba   :  { %v1737_v58 = vsub.f32 1.0, %v1725_v32  ;;  %v1743_v9 = vmul.f32 %v1725_v32, %v2888_v21 }
0x1ebc   :  { %v1757_v47 = vld [vmem:[#allocation3 + $0x30] sm:$0xff] }
0x1ebd   :  { %2005 = vmatmul.msk.f32.gmra.mxu1 %vm193_vm2, %v1754_v40 }
0x1f18   :  { %v1740_v44 = vpop.permute.xlu1 %1739 }
0x1f19   :  { %v1742_v25 = vmul.f32 %v1740_v44, %v1737_v58 }
0x1f1b   :  { %v1744_v34 = vadd.f32 %v1743_v9, %v1742_v25 }
0x1f1d   :  { %1746 = vrot.lane.b32.xlu1 %v1744_v34, %s2271_s21 }
0x1f20   :  { %v1201_v29 = vpop.permute.xlu1 %1200 }
0x1f21   :  { %1204 = vst.msk [vmem:[#allocation3 + $0x20] sm:$0xff] %vm193_vm2, %v1201_v29 }
0x1f28   :  { %v1755_v41 = vld [vmem:[#allocation3 + $0x20] sm:$0xff] }
0x1f29   :  { %2006 = vmatmul.msk.f32.gmra.mxu1 %vm193_vm2, %v1755_v41 }
0x1f2a   :  { %v1811_v0 = vpop.f32.mrf.mxu1 }
0x1f2b   :  { %v1812_v1 = vadd.f32 %v2919_v7, %v1811_v0 }
0x1f2d   :  { %vm1833_vm10 = vcmp.gt.f32.partialorder %v1812_v1, 0.0  ;;  %v1841_v38 = vmul.f32 0.01, %v1812_v1 }
0x1f2f   :  { %v1849_v3 = vsel %vm1833_vm10, %v1812_v1, %v1841_v38 }
0x1f30   :  { %v1861_v42 = vmul.f32 %v2925_v19, %v1849_v3 }
0x1f31   :  { %2007 = vmatmul.msk.f32.gmra.mxu1 %vm193_vm2, %v1756_v10 }
0x1f32   :  { %v1814_v21 = vpop.f32.mrf.mxu1  ;;  %v1871_v43 = vsel %vm193_vm2, %v1861_v42, 0.0 }
0x1f33   :  { %1872 = vadd.xlane.f32.xlu0 %v1871_v43  ;;  %v1815_v59 = vadd.f32 %v2919_v7, %v1814_v21 }
0x1f35   :  { %v1842_v49 = vmul.f32 0.01, %v1815_v59  ;;  %vm1834_vm11 = vcmp.gt.f32.partialorder %v1815_v59, 0.0 }
0x1f37   :  { %v1850_v45 = vsel %vm1834_vm11, %v1815_v59, %v1842_v49 }
0x1f38   :  { %v1862_v20 = vmul.f32 %v2925_v19, %v1850_v45 }
0x1f39   :  { %2008 = vmatmul.msk.f32.gmra.mxu1 %vm193_vm2, %v1757_v47 }
0x1f3a   :  { %v1817_v48 = vpop.f32.mrf.mxu1  ;;  %v1874_v56 = vsel %vm193_vm2, %v1862_v20, 0.0 }
0x1f3b   :  { %v1818_v8 = vadd.f32 %v2919_v7, %v1817_v48 }
0x1f3d   :  { %vm1835_vm8 = vcmp.gt.f32.partialorder %v1818_v8, 0.0  ;;  %v1843_v50 = vmul.f32 0.01, %v1818_v8 }
0x1f3f   :  { %v1851_v52 = vsel %vm1835_vm8, %v1818_v8, %v1843_v50 }
0x1f40   :  { %v1863_v53 = vmul.f32 %v2925_v19, %v1851_v52 }
0x1f42   :  { %v1877_v55 = vsel %vm193_vm2, %v1863_v53, 0.0 }
0x1f43   :  { %1878 = vadd.xlane.f32.xlu2 %v1877_v55 }
0x1f47   :  { %1875 = vadd.xlane.f32.xlu1 %v1874_v56 }
0x1f8f   :  { %v1747_v24 = vpop.permute.xlu1 %1746 }
0x1f90   :  { %1750 = vst.msk [vmem:[#allocation3 + $0x38] sm:$0xff] %vm193_vm2, %v1747_v24 }
0x1f91   :  { %1915 = vst.msk [vmem:[#allocation10 + $0x8] sm:$0xff] %vm193_vm2, %v1747_v24 }
0x1f92   :  { %1930 = dma.vmem_to_hbm [thread:$0]  %s1923_s2, 256, %s1925_s29, [#allocation7], %s2266_s26, %s2266_s26, %s2267_s27  }
0x1f97   :  { %v1758_v11 = vld [vmem:[#allocation3 + $0x38] sm:$0xff] }
0x1f98   :  { %2009 = vmatmul.msk.f32.gmra.mxu1 %vm193_vm2, %v1758_v11 }
0x1fa6   :  { %v1873_v37 = vpop.xlane.xlu0 %1872  ;;  %v1820_v12 = vpop.f32.mrf.mxu1 }
0x1fa7   :  { %v1897_v13 = vadd.f32 %v2930_v39, %v1873_v37  ;;  %v1821_v14 = vadd.f32 %v2919_v7, %v1820_v12 }
0x1fa9   :  { %1906 = vst.msk [vmem:[%s3037_s13 + $0x8] sm:$0xff] %vm1904_vm15, %v1897_v13  ;;  %vm1836_vm12 = vcmp.gt.f32.partialorder %v1821_v14, 0.0  ;;  %v1844_v15 = vmul.f32 0.01, %v1821_v14 }
0x1fab   :  { %v1852_v60 = vsel %vm1836_vm12, %v1821_v14, %v1844_v15 }
0x1fac   :  { %v1864_v57 = vmul.f32 %v2925_v19, %v1852_v60 }
0x1fae   :  { %v1823_v16 = vpop.f32.mrf.mxu1  ;;  %v1880_v4 = vsel %vm193_vm2, %v1864_v57, 0.0 }
0x1faf   :  { %v1824_v5 = vadd.f32 %v2919_v7, %v1823_v16  ;;  %1881 = vadd.xlane.f32.xlu2 %v1880_v4 }
0x1fb1   :  { %vm1837_vm13 = vcmp.gt.f32.partialorder %v1824_v5, 0.0  ;;  %v1845_v26 = vmul.f32 0.01, %v1824_v5 }
0x1fb3   :  { %v1853_v54 = vsel %vm1837_vm13, %v1824_v5, %v1845_v26 }
0x1fb4   :  { %v1865_v27 = vmul.f32 %v2925_v19, %v1853_v54 }
0x1fb6   :  { %v1879_v28 = vpop.xlane.xlu2 %1878  ;;  %v1826_v2 = vpop.f32.mrf.mxu1  ;;  %v1883_v51 = vsel %vm193_vm2, %v1865_v27, 0.0 }
0x1fb7   :  { %v1899_v40 = vadd.f32 %v2930_v39, %v1879_v28  ;;  %v1827_v18 = vadd.f32 %v2919_v7, %v1826_v2  ;;  %1884 = vadd.xlane.f32.xlu0 %v1883_v51 }
0x1fb9   :  { %1908 = vst.msk [vmem:[%s3037_s13 + $0x18] sm:$0xff] %vm1904_vm15, %v1899_v40  ;;  %vm1838_vm14 = vcmp.gt.f32.partialorder %v1827_v18, 0.0  ;;  %v1846_v30 = vmul.f32 0.01, %v1827_v18 }
0x1fba   :  { %v1876_v31 = vpop.xlane.xlu1 %1875 }
0x1fbb   :  { %v1898_v33 = vadd.f32 %v2930_v39, %v1876_v31  ;;  %v1854_v22 = vsel %vm1838_vm14, %v1827_v18, %v1846_v30 }
0x1fbc   :  { %v1866_v35 = vmul.f32 %v2925_v19, %v1854_v22 }
0x1fbd   :  { %1907 = vst.msk [vmem:[%s3037_s13 + $0x10] sm:$0xff] %vm1904_vm15, %v1898_v33 }
0x1fbe   :  { %v1886_v61 = vsel %vm193_vm2, %v1866_v35, 0.0 }
0x1fbf   :  { %1887 = vadd.xlane.f32.xlu1 %v1886_v61 }
0x2015   :  { %v1829_v62 = vpop.f32.mrf.mxu1 }
0x2016   :  { %v1830_v17 = vadd.f32 %v2919_v7, %v1829_v62 }
0x2018   :  { %vm1839_vm0 = vcmp.gt.f32.partialorder %v1830_v17, 0.0  ;;  %v1847_v63 = vmul.f32 0.01, %v1830_v17 }
0x201a   :  { %v1855_v46 = vsel %vm1839_vm0, %v1830_v17, %v1847_v63 }
0x201b   :  { %v1867_v6 = vmul.f32 %v2925_v19, %v1855_v46 }
0x201d   :  { %v1889_v36 = vsel %vm193_vm2, %v1867_v6, 0.0 }
0x201e   :  { %1890 = vadd.xlane.f32.xlu2 %v1889_v36 }
0x2022   :  { %v1882_v23 = vpop.xlane.xlu2 %1881 }
0x2023   :  { %v1900_v32 = vadd.f32 %v2930_v39, %v1882_v23 }
0x2025   :  { %1909 = vst.msk [vmem:[%s3037_s13 + $0x20] sm:$0xff] %vm1904_vm15, %v1900_v32 }
0x202a   :  { %v1885_v58 = vpop.xlane.xlu0 %1884 }
0x202b   :  { %v1901_v44 = vadd.f32 %v2930_v39, %v1885_v58 }
0x202d   :  { %1910 = vst.msk [vmem:[%s3037_s13 + $0x28] sm:$0xff] %vm1904_vm15, %v1901_v44 }
0x2032   :  { %v1888_v7 = vpop.xlane.xlu1 %1887 }
0x2033   :  { %v1902_v19 = vadd.f32 %v2930_v39, %v1888_v7 }
0x2035   :  { %1911 = vst.msk [vmem:[%s3037_s13 + $0x30] sm:$0xff] %vm1904_vm15, %v1902_v19 }
0x2091   :  { %v1891_v9 = vpop.xlane.xlu2 %1890 }
0x2092   :  { %v1903_v25 = vadd.f32 %v2930_v39, %v1891_v9 }
0x2094   :  { %1912 = vst.msk [vmem:[%s3037_s13 + $0x38] sm:$0xff] %vm1904_vm15, %v1903_v25 }
0x2095   :  { %2260 = dma.done.wait [#allocation7], 256  }
0x2096   :  { %2261 = vsyncadd [#allocation7], 4294967040 }
0x2097   :  { %1937 = vsyncpa [#allocation6], 1 }
0x2098   :  { %1938 = vsyncpa [#allocation9], 1 }
0x2099   :  { %1939 = vsyncpa [#allocation7], 1 }

</bundles_post_ra>
